<compile_context>
chip_gen: v7x
topology: tpu7x:2x2x1
jax: 0.10.0
libtpu: 0.0.40
codegen_flags: <defaults>
</compile_context>

<pallas_src>
import functools
import numpy as np
import jax
import jax.numpy as jnp
from jax import lax
from jax.experimental import pallas as pl
from jax.experimental.pallas import tpu as pltpu

EPS = 1e-6
NEG_INF = -1e9


# ---------------------------------------------------------------------------
# Shared math (pure jnp; usable inside the Pallas kernel and by the reference).
# ---------------------------------------------------------------------------
def _layer_norm(v, gamma, beta):
    # a*(x-mean)/(std+eps)+b, std uses Bessel correction (torch.std default).
    d = v.shape[-1]
    mean = jnp.mean(v, axis=-1, keepdims=True)
    var = jnp.sum((v - mean) ** 2, axis=-1, keepdims=True) / (d - 1)
    std = jnp.sqrt(var)
    return gamma * (v - mean) / (std + EPS) + beta


def _attention(q, k, v, bias_ref, batch, t_q, t_k, num_heads):
    """Multi-head attention on flattened rows.

    q: (B*Tq, D) already scaled by 1/sqrt(dk); k, v: (B*Tk, D)
    bias_ref[b]: additive score bias, (Tq, Tk) or (1, Tk)
    Returns the lane-concatenated per-head context, (B*Tq, D).
    """
    d = q.shape[-1]
    dk = d // num_heads
    rows = []
    for b in range(batch):                      # static unroll (B small)
        qb = q[b * t_q:(b + 1) * t_q]
        kb = k[b * t_k:(b + 1) * t_k]
        vb = v[b * t_k:(b + 1) * t_k]
        bias_b = bias_ref[b]                    # additive (0 / -1e9)
        heads = []
        for h in range(num_heads):              # static unroll
            qh = qb[:, h * dk:(h + 1) * dk]
            kh = kb[:, h * dk:(h + 1) * dk]
            vh = vb[:, h * dk:(h + 1) * dk]
            # q @ k^T without materializing a transpose (transposed-B matmul).
            s = lax.dot_general(qh, kh, (((1,), (1,)), ((), ())),
                                preferred_element_type=jnp.float32) + bias_b
            m = jnp.max(s, axis=-1, keepdims=True)
            e = jnp.exp(s - m)
            denom = jnp.sum(e, axis=-1, keepdims=True)
            p = e * pl.reciprocal(denom, approx=True)      # EUP reciprocal
            heads.append(jnp.dot(p, vh, preferred_element_type=jnp.float32))
        rows.append(jnp.concatenate(heads, axis=-1))       # (Tq, D)
    return jnp.concatenate(rows, axis=0)                   # (B*Tq, D)


# ---------------------------------------------------------------------------
# Fused decoder-stack kernel: grid = (num_layers,), full batch resident.
# ---------------------------------------------------------------------------
def decoder_stack_kernel(x_ref, mem_ref, tbias_ref, sbias_ref,
                         wqkv_s_ref, bqkv_s_ref, wo_s_ref, bo_s_ref,
                         wq_c_ref, bq_c_ref, wkv_c_ref, bkv_c_ref,
                         wo_c_ref, bo_c_ref,
                         w1_ref, b1_ref, w2_ref, b2_ref,
                         lng_ref, lnb_ref, fng_ref, fnb_ref,
                         out_ref, *, num_heads, batch, seq_q, seq_kv):
    l = pl.program_id(0)
    n_layers = pl.num_programs(0)
    d = x_ref.shape[-1]
    dk = d // num_heads
    scale = 1.0 / float(dk) ** 0.5

    # Load the activation into the resident output block at layer 0; the output
    # BlockSpec index is constant over l, so this buffer carries across layers.
    @pl.when(l == 0)
    def _():
        out_ref[...] = x_ref[...]

    x = out_ref[...]            # (B*T, D) resident activation
    mem = mem_ref[...]          # (B*S, D)

    lng = lng_ref[0]            # (3, D) per-sublayer LN gammas
    lnb = lnb_ref[0]

    # Sublayer 0: masked self-attention (dropout == identity in eval mode).
    xn = _layer_norm(x, lng[0:1], lnb[0:1])
    qkv = jnp.dot(xn, wqkv_s_ref[0],
                  preferred_element_type=jnp.float32) + bqkv_s_ref[0]
    q = qkv[:, :d] * scale                      # scale folded into q
    k = qkv[:, d:2 * d]
    v = qkv[:, 2 * d:]
    ctx = _attention(q, k, v, tbias_ref, batch, seq_q, seq_q, num_heads)
    x = x + jnp.dot(ctx, wo_s_ref[0],
                    preferred_element_type=jnp.float32) + bo_s_ref[0]

    # Sublayer 1: cross-attention over encoder memory.
    xn = _layer_norm(x, lng[1:2], lnb[1:2])
    q = (jnp.dot(xn, wq_c_ref[0],
                 preferred_element_type=jnp.float32) + bq_c_ref[0]) * scale
    kv = jnp.dot(mem, wkv_c_ref[0],
                 preferred_element_type=jnp.float32) + bkv_c_ref[0]
    k = kv[:, :d]
    v = kv[:, d:]
    ctx = _attention(q, k, v, sbias_ref, batch, seq_q, seq_kv, num_heads)
    x = x + jnp.dot(ctx, wo_c_ref[0],
                    preferred_element_type=jnp.float32) + bo_c_ref[0]

    # Sublayer 2: position-wise feed-forward.
    xn = _layer_norm(x, lng[2:3], lnb[2:3])
    hid = jnp.maximum(
        jnp.dot(xn, w1_ref[0], preferred_element_type=jnp.float32) + b1_ref[0],
        0.0)
    x = x + jnp.dot(hid, w2_ref[0],
                    preferred_element_type=jnp.float32) + b2_ref[0]

    # Carry (or, on the last layer, apply the final LayerNorm and finish).
    @pl.when(l < n_layers - 1)
    def _():
        out_ref[...] = x

    @pl.when(l == n_layers - 1)
    def _():
        out_ref[...] = _layer_norm(x, fng_ref[...], fnb_ref[...])


def _cost_estimate(B, T, S, D, F, H, L):
    matmul_flops = (2 * B * T * D * 3 * D            # fused self qkv proj
                    + 4 * B * T * T * D              # self scores + p@v
                    + 2 * B * T * D * D              # self out proj
                    + 2 * B * T * D * D              # cross q proj
                    + 4 * B * S * D * D              # fused cross kv proj
                    + 4 * B * T * S * D              # cross scores + p@v
                    + 2 * B * T * D * D              # cross out proj
                    + 4 * B * T * D * F)             # FFN
    flops = L * matmul_flops
    transcendentals = L * B * H * (T * T + T * S)    # softmax exp
    per_layer_w = (5 * D * D + 2 * D * F + 3 * D + D + D + 2 * D + D + F + D
                   + 6 * D)
    bytes_accessed = 4 * (2 * B * T * D + B * S * D + B * T * T + B * S
                          + L * per_layer_w + 2 * D)
    return pl.CostEstimate(flops=int(flops), transcendentals=int(transcendentals),
                           bytes_accessed=int(bytes_accessed))


# ---------------------------------------------------------------------------
# Wrapper: one pallas_call for the whole decoder stack + final norm.
# ---------------------------------------------------------------------------
def decoder_forward(x, memory, src_mask, tgt_mask, params, num_heads):
    B, T, D = x.shape
    S = memory.shape[1]
    L = params["w_self"].shape[0]
    F = params["w1"].shape[-1]

    # Wrapper-side (plain XLA) weight re-layout: fuse Q/K/V (self) and K/V
    # (cross) into wide matmuls; Wo stays (D, D) for the full-K output proj.
    w_self, b_self = params["w_self"], params["b_self"]
    w_cross, b_cross = params["w_cross"], params["b_cross"]
    wqkv_s = jnp.concatenate([w_self[:, 0], w_self[:, 1], w_self[:, 2]], axis=-1)
    bqkv_s = b_self[:, :3].reshape(L, 1, 3 * D)
    wo_s, bo_s = w_self[:, 3], b_self[:, 3:4]
    wq_c, bq_c = w_cross[:, 0], b_cross[:, 0:1]
    wkv_c = jnp.concatenate([w_cross[:, 1], w_cross[:, 2]], axis=-1)
    bkv_c = b_cross[:, 1:3].reshape(L, 1, 2 * D)
    wo_c, bo_c = w_cross[:, 3], b_cross[:, 3:4]

    # Masks -> additive score biases, computed once (0 where attended, -1e9
    # where masked; identical softmax result to masked_fill for any row with
    # at least one attended position).
    tgt_bias = jnp.where(tgt_mask > 0, 0.0, NEG_INF).astype(jnp.float32)
    src_bias = jnp.where(src_mask > 0, 0.0, NEG_INF).astype(jnp.float32)

    xf = x.reshape(B * T, D)
    memf = memory.reshape(B * S, D)

    kernel = functools.partial(decoder_stack_kernel, num_heads=num_heads,
                               batch=B, seq_q=T, seq_kv=S)

    const2 = lambda l: (0, 0)          # whole-array blocks, resident over l
    const3 = lambda l: (0, 0, 0)
    layer3 = lambda l: (l, 0, 0)       # per-layer weight blocks

    # Explicit scoped-VMEM budget: double-buffered per-layer weights plus
    # resident activations/biases plus headroom for in-kernel intermediates.
    per_layer_weight_bytes = 4 * (8 * D * D + 2 * D * F + 14 * D + 2 * F)
    act_bytes = 4 * (3 * B * T * D + B * S * D + B * T * T + B * S)
    vmem_limit = int(min(64 * 1024 * 1024,
                         2 * per_layer_weight_bytes + 2 * act_bytes
                         + 16 * 1024 * 1024))

    out = pl.pallas_call(
        kernel,
        out_shape=jax.ShapeDtypeStruct((B * T, D), jnp.float32),
        grid=(L,),
        in_specs=[
            pl.BlockSpec((B * T, D), const2),        # x (flattened rows)
            pl.BlockSpec((B * S, D), const2),        # memory (flattened rows)
            pl.BlockSpec((B, T, T), const3),         # tgt additive bias
            pl.BlockSpec((B, 1, S), const3),         # src additive bias
            pl.BlockSpec((1, D, 3 * D), layer3),     # self fused Wq|Wk|Wv
            pl.BlockSpec((1, 1, 3 * D), layer3),     # self fused bq|bk|bv
            pl.BlockSpec((1, D, D), layer3),         # self Wo
            pl.BlockSpec((1, 1, D), layer3),         # self bo
            pl.BlockSpec((1, D, D), layer3),         # cross Wq
            pl.BlockSpec((1, 1, D), layer3),         # cross bq
            pl.BlockSpec((1, D, 2 * D), layer3),     # cross fused Wk|Wv
            pl.BlockSpec((1, 1, 2 * D), layer3),     # cross fused bk|bv
            pl.BlockSpec((1, D, D), layer3),         # cross Wo
            pl.BlockSpec((1, 1, D), layer3),         # cross bo
            pl.BlockSpec((1, D, F), layer3),         # ffn W1
            pl.BlockSpec((1, 1, F), layer3),         # ffn b1
            pl.BlockSpec((1, F, D), layer3),         # ffn W2
            pl.BlockSpec((1, 1, D), layer3),         # ffn b2
            pl.BlockSpec((1, 3, D), layer3),         # sublayer LN gammas
            pl.BlockSpec((1, 3, D), layer3),         # sublayer LN betas
            pl.BlockSpec((1, D), const2),            # final LN gamma
            pl.BlockSpec((1, D), const2),            # final LN beta
        ],
        out_specs=pl.BlockSpec((B * T, D), const2),  # resident activation carry
        compiler_params=pltpu.CompilerParams(
            dimension_semantics=("arbitrary",),
            vmem_limit_bytes=vmem_limit),
        cost_estimate=_cost_estimate(B, T, S, D, F, num_heads, L),
    )(xf, memf, tgt_bias, src_bias,
      wqkv_s, bqkv_s, wo_s, bo_s,
      wq_c, bq_c, wkv_c, bkv_c, wo_c, bo_c,
      params["w1"], params["b1"], params["w2"], params["b2"],
      params["ln_g"], params["ln_b"],
      params["norm_g"], params["norm_b"])
    return out.reshape(B, T, D)


# ---------------------------------------------------------------------------
# Pure-JAX reference (per-batch, per-head loop, exact math) for verification.
# ---------------------------------------------------------------------------
def _mha_ref(q_in, kv_in, mask, w, b, num_heads):
    d = q_in.shape[-1]
    dk = d // num_heads
    scale = 1.0 / float(dk) ** 0.5
    q = q_in @ w[0] + b[0:1]
    k = kv_in @ w[1] + b[1:2]
    v = kv_in @ w[2] + b[2:3]
    outs = []
    for h in range(num_heads):
        qh = q[:, h * dk:(h + 1) * dk]
        kh = k[:, h * dk:(h + 1) * dk]
        vh = v[:, h * dk:(h + 1) * dk]
        scores = (qh @ kh.T) * scale
        scores = jnp.where(mask > 0, scores, jnp.float32(NEG_INF))
        m = jnp.max(scores, axis=-1, keepdims=True)
        e = jnp.exp(scores - m)
        p = e / jnp.sum(e, axis=-1, keepdims=True)
        outs.append(p @ vh)
    return jnp.concatenate(outs, axis=-1) @ w[3] + b[3:4]


def decoder_reference(x, memory, src_mask, tgt_mask, params, num_heads):
    L = params["w_self"].shape[0]
    outs = []
    for bi in range(x.shape[0]):
        xb, mb = x[bi], memory[bi]
        tm, sm = tgt_mask[bi], src_mask[bi]
        for li in range(L):
            xn = _layer_norm(xb, params["ln_g"][li, 0:1], params["ln_b"][li, 0:1])
            xb = xb + _mha_ref(xn, xn, tm, params["w_self"][li],
                               params["b_self"][li], num_heads)
            xn = _layer_norm(xb, params["ln_g"][li, 1:2], params["ln_b"][li, 1:2])
            xb = xb + _mha_ref(xn, mb, sm, params["w_cross"][li],
                               params["b_cross"][li], num_heads)
            xn = _layer_norm(xb, params["ln_g"][li, 2:3], params["ln_b"][li, 2:3])
            hid = jnp.maximum(xn @ params["w1"][li] + params["b1"][li], 0.0)
            xb = xb + hid @ params["w2"][li] + params["b2"][li]
        outs.append(_layer_norm(xb, params["norm_g"], params["norm_b"]))
    return jnp.stack(outs, axis=0)


# ---------------------------------------------------------------------------
# Deterministic parameter construction (synthetic; no checkpoint loading).
# ---------------------------------------------------------------------------
def init_params(key, n_layers, d_model, d_ff):
    ks = jax.random.split(key, 8)
    L = n_layers
    return {
        "w_self":  0.05 * jax.random.normal(ks[0], (L, 4, d_model, d_model), jnp.float32),
        "b_self":  0.02 * jax.random.normal(ks[1], (L, 4, d_model), jnp.float32),
        "w_cross": 0.05 * jax.random.normal(ks[2], (L, 4, d_model, d_model), jnp.float32),
        "b_cross": 0.02 * jax.random.normal(ks[3], (L, 4, d_model), jnp.float32),
        "w1":      0.05 * jax.random.normal(ks[4], (L, d_model, d_ff), jnp.float32),
        "b1":      0.02 * jax.random.normal(ks[5], (L, 1, d_ff), jnp.float32),
        "w2":      0.05 * jax.random.normal(ks[6], (L, d_ff, d_model), jnp.float32),
        "b2":      0.02 * jax.random.normal(ks[7], (L, 1, d_model), jnp.float32),
        "ln_g":    jnp.ones((L, 3, d_model), jnp.float32),
        "ln_b":    jnp.zeros((L, 3, d_model), jnp.float32),
        "norm_g":  jnp.ones((1, d_model), jnp.float32),
        "norm_b":  jnp.zeros((1, d_model), jnp.float32),
    }


if __name__ == "__main__":
    B, T, S, D, H, FF, N = 2, 8, 8, 32, 4, 64, 2
    key = jax.random.PRNGKey(0)
    kx, kmem, kp = jax.random.split(key, 3)

    x = jax.random.normal(kx, (B, T, D), jnp.float32)
    memory = jax.random.normal(kmem, (B, S, D), jnp.float32)
    tgt_mask = jnp.tile(jnp.tril(jnp.ones((T, T), jnp.float32))[None], (B, 1, 1))
    src_mask = jnp.ones((B, 1, S), jnp.float32)
    params = init_params(kp, N, D, FF)

    out = decoder_forward(x, memory, src_mask, tgt_mask, params, H)
    out = jax.block_until_ready(out)

    ref = decoder_reference(x, memory, src_mask, tgt_mask, params, H)
    np.testing.assert_allclose(np.asarray(out), np.asarray(ref), rtol=2e-3, atol=2e-3)
    print("KERNEL_OK")
</pallas_src>

<mosaic_0001>
module attributes {stable_mosaic.version = 11 : i64} {
  func.func @decoder_stack_kernel(%arg0: i32, %arg1: memref<16x32xf32, #tpu.memory_space<vmem>>, %arg2: memref<16x32xf32, #tpu.memory_space<vmem>>, %arg3: memref<2x8x8xf32, #tpu.memory_space<vmem>>, %arg4: memref<2x1x8xf32, #tpu.memory_space<vmem>>, %arg5: memref<1x32x96xf32, #tpu.memory_space<vmem>>, %arg6: memref<1x1x96xf32, #tpu.memory_space<vmem>>, %arg7: memref<1x32x32xf32, #tpu.memory_space<vmem>>, %arg8: memref<1x1x32xf32, #tpu.memory_space<vmem>>, %arg9: memref<1x32x32xf32, #tpu.memory_space<vmem>>, %arg10: memref<1x1x32xf32, #tpu.memory_space<vmem>>, %arg11: memref<1x32x64xf32, #tpu.memory_space<vmem>>, %arg12: memref<1x1x64xf32, #tpu.memory_space<vmem>>, %arg13: memref<1x32x32xf32, #tpu.memory_space<vmem>>, %arg14: memref<1x1x32xf32, #tpu.memory_space<vmem>>, %arg15: memref<1x32x64xf32, #tpu.memory_space<vmem>>, %arg16: memref<1x1x64xf32, #tpu.memory_space<vmem>>, %arg17: memref<1x64x32xf32, #tpu.memory_space<vmem>>, %arg18: memref<1x1x32xf32, #tpu.memory_space<vmem>>, %arg19: memref<1x3x32xf32, #tpu.memory_space<vmem>>, %arg20: memref<1x3x32xf32, #tpu.memory_space<vmem>>, %arg21: memref<1x32xf32, #tpu.memory_space<vmem>>, %arg22: memref<1x32xf32, #tpu.memory_space<vmem>>, %arg23: memref<16x32xf32, #tpu.memory_space<vmem>>) attributes {dimension_semantics = [#tpu.dimension_semantics<arbitrary>], iteration_bounds = array<i64: 2>, scalar_prefetch = 0 : i64, scratch_operands = 0 : i64, tpu.core_type = #tpu.core_type<tc>, window_params = [{pipeline_mode = #tpu.pipeline_mode<synchronous>, transform_indices = @transform_0, window_bounds = array<i64: 16, 32>}, {pipeline_mode = #tpu.pipeline_mode<synchronous>, transform_indices = @transform_1, window_bounds = array<i64: 16, 32>}, {pipeline_mode = #tpu.pipeline_mode<synchronous>, transform_indices = @transform_2, window_bounds = array<i64: 2, 8, 8>}, {pipeline_mode = #tpu.pipeline_mode<synchronous>, transform_indices = @transform_3, window_bounds = array<i64: 2, 1, 8>}, {transform_indices = @transform_4, window_bounds = array<i64: 1, 32, 96>}, {transform_indices = @transform_5, window_bounds = array<i64: 1, 1, 96>}, {transform_indices = @transform_6, window_bounds = array<i64: 1, 32, 32>}, {transform_indices = @transform_7, window_bounds = array<i64: 1, 1, 32>}, {transform_indices = @transform_8, window_bounds = array<i64: 1, 32, 32>}, {transform_indices = @transform_9, window_bounds = array<i64: 1, 1, 32>}, {transform_indices = @transform_10, window_bounds = array<i64: 1, 32, 64>}, {transform_indices = @transform_11, window_bounds = array<i64: 1, 1, 64>}, {transform_indices = @transform_12, window_bounds = array<i64: 1, 32, 32>}, {transform_indices = @transform_13, window_bounds = array<i64: 1, 1, 32>}, {transform_indices = @transform_14, window_bounds = array<i64: 1, 32, 64>}, {transform_indices = @transform_15, window_bounds = array<i64: 1, 1, 64>}, {transform_indices = @transform_16, window_bounds = array<i64: 1, 64, 32>}, {transform_indices = @transform_17, window_bounds = array<i64: 1, 1, 32>}, {transform_indices = @transform_18, window_bounds = array<i64: 1, 3, 32>}, {transform_indices = @transform_19, window_bounds = array<i64: 1, 3, 32>}, {pipeline_mode = #tpu.pipeline_mode<synchronous>, transform_indices = @transform_20, window_bounds = array<i64: 1, 32>}, {pipeline_mode = #tpu.pipeline_mode<synchronous>, transform_indices = @transform_21, window_bounds = array<i64: 1, 32>}, {pipeline_mode = #tpu.pipeline_mode<synchronous>, transform_indices = @transform_22, window_bounds = array<i64: 16, 32>}]} {
    %c0_i32 = arith.constant 0 : i32
    %0 = arith.cmpi eq, %arg0, %c0_i32 : i32
    %1 = arith.extui %0 : i1 to i32
    %c0_i32_0 = arith.constant 0 : i32
    %2 = arith.cmpi ne, %1, %c0_i32_0 : i32
    scf.if %2 {
      %c0_154 = arith.constant 0 : index
      %c0_155 = arith.constant 0 : index
      %440 = vector.load %arg1[%c0_154, %c0_155] : memref<16x32xf32, #tpu.memory_space<vmem>>, vector<16x32xf32>
      %c0_156 = arith.constant 0 : index
      %c0_157 = arith.constant 0 : index
      %441 = vector.load %arg23[%c0_156, %c0_157] : memref<16x32xf32, #tpu.memory_space<vmem>>, vector<16x32xf32>
      tpu.vector_store %arg23[%c0_156, %c0_157], %440 {strides = array<i32>} : memref<16x32xf32, #tpu.memory_space<vmem>>, vector<16x32xf32>,
    } else {
    }
    %c0 = arith.constant 0 : index
    %c0_1 = arith.constant 0 : index
    %3 = vector.load %arg23[%c0, %c0_1] : memref<16x32xf32, #tpu.memory_space<vmem>>, vector<16x32xf32>
    %c0_2 = arith.constant 0 : index
    %c0_3 = arith.constant 0 : index
    %4 = vector.load %arg2[%c0_2, %c0_3] : memref<16x32xf32, #tpu.memory_space<vmem>>, vector<16x32xf32>
    %c0_4 = arith.constant 0 : index
    %c0_5 = arith.constant 0 : index
    %c0_6 = arith.constant 0 : index
    %5 = vector.load %arg19[%c0_4, %c0_5, %c0_6] : memref<1x3x32xf32, #tpu.memory_space<vmem>>, vector<1x3x32xf32>
    %6 = vector.shape_cast %5 : vector<1x3x32xf32> to vector<3x32xf32>
    %c0_7 = arith.constant 0 : index
    %c0_8 = arith.constant 0 : index
    %c0_9 = arith.constant 0 : index
    %7 = vector.load %arg20[%c0_7, %c0_8, %c0_9] : memref<1x3x32xf32, #tpu.memory_space<vmem>>, vector<1x3x32xf32>
    %8 = vector.shape_cast %7 : vector<1x3x32xf32> to vector<3x32xf32>
    %9 = vector.extract_strided_slice %6 {offsets = [0, 0], sizes = [1, 32], strides = [1, 1]} : vector<3x32xf32> to vector<1x32xf32>
    %10 = vector.extract_strided_slice %8 {offsets = [0, 0], sizes = [1, 32], strides = [1, 1]} : vector<3x32xf32> to vector<1x32xf32>
    %cst = arith.constant dense<0.000000e+00> : vector<16xf32>
    %11 = vector.multi_reduction <add>, %3, %cst [1] : vector<16x32xf32> to vector<16xf32>
    %12 = vector.shape_cast %11 : vector<16xf32> to vector<16x1xf32>
    %cst_10 = arith.constant 3.200000e+01 : f32
    %13 = vector.broadcast %cst_10 : f32 to vector<16x1xf32>
    %14 = arith.divf %12, %13 : vector<16x1xf32>
    %15 = vector.broadcast %14 : vector<16x1xf32> to vector<16x32xf32>
    %16 = arith.subf %3, %15 : vector<16x32xf32>
    %17 = arith.mulf %16, %16 : vector<16x32xf32>
    %cst_11 = arith.constant dense<0.000000e+00> : vector<16xf32>
    %18 = vector.multi_reduction <add>, %17, %cst_11 [1] : vector<16x32xf32> to vector<16xf32>
    %19 = vector.shape_cast %18 : vector<16xf32> to vector<16x1xf32>
    %cst_12 = arith.constant 3.100000e+01 : f32
    %20 = vector.broadcast %cst_12 : f32 to vector<16x1xf32>
    %21 = arith.divf %19, %20 : vector<16x1xf32>
    %22 = math.sqrt %21 : vector<16x1xf32>
    %23 = vector.broadcast %14 : vector<16x1xf32> to vector<16x32xf32>
    %24 = arith.subf %3, %23 : vector<16x32xf32>
    %25 = vector.broadcast %9 : vector<1x32xf32> to vector<16x32xf32>
    %26 = arith.mulf %25, %24 : vector<16x32xf32>
    %cst_13 = arith.constant 9.99999997E-7 : f32
    %27 = vector.broadcast %cst_13 : f32 to vector<16x1xf32>
    %28 = arith.addf %22, %27 : vector<16x1xf32>
    %29 = vector.broadcast %28 : vector<16x1xf32> to vector<16x32xf32>
    %30 = arith.divf %26, %29 : vector<16x32xf32>
    %31 = vector.broadcast %10 : vector<1x32xf32> to vector<16x32xf32>
    %32 = arith.addf %30, %31 : vector<16x32xf32>
    %c0_14 = arith.constant 0 : index
    %c0_15 = arith.constant 0 : index
    %c0_16 = arith.constant 0 : index
    %33 = vector.load %arg5[%c0_14, %c0_15, %c0_16] : memref<1x32x96xf32, #tpu.memory_space<vmem>>, vector<1x32x96xf32>
    %34 = vector.shape_cast %33 : vector<1x32x96xf32> to vector<32x96xf32>
    %cst_17 = arith.constant dense<0.000000e+00> : vector<16x96xf32>
    %35 = tpu.matmul %32, %34, %cst_17 {dimension_numbers = #tpu.dot_dimension_numbers<[1], [0], [0], [1], [0, 0, 1, 1], [], []>} : vector<16x32xf32>, vector<32x96xf32>, vector<16x96xf32> -> vector<16x96xf32>
    %c0_18 = arith.constant 0 : index
    %c0_19 = arith.constant 0 : index
    %c0_20 = arith.constant 0 : index
    %36 = vector.load %arg6[%c0_18, %c0_19, %c0_20] : memref<1x1x96xf32, #tpu.memory_space<vmem>>, vector<1x1x96xf32>
    %37 = vector.shape_cast %36 : vector<1x1x96xf32> to vector<1x96xf32>
    %38 = vector.broadcast %37 : vector<1x96xf32> to vector<16x96xf32>
    %39 = arith.addf %35, %38 : vector<16x96xf32>
    %40 = vector.extract_strided_slice %39 {offsets = [0, 0], sizes = [16, 32], strides = [1, 1]} : vector<16x96xf32> to vector<16x32xf32>
    %cst_21 = arith.constant 0.353553385 : f32
    %41 = vector.broadcast %cst_21 : f32 to vector<16x32xf32>
    %42 = arith.mulf %40, %41 : vector<16x32xf32>
    %43 = vector.extract_strided_slice %39 {offsets = [0, 32], sizes = [16, 32], strides = [1, 1]} : vector<16x96xf32> to vector<16x32xf32>
    %44 = vector.extract_strided_slice %39 {offsets = [0, 64], sizes = [16, 32], strides = [1, 1]} : vector<16x96xf32> to vector<16x32xf32>
    %45 = vector.extract_strided_slice %42 {offsets = [0, 0], sizes = [8, 32], strides = [1, 1]} : vector<16x32xf32> to vector<8x32xf32>
    %46 = vector.extract_strided_slice %43 {offsets = [0, 0], sizes = [8, 32], strides = [1, 1]} : vector<16x32xf32> to vector<8x32xf32>
    %47 = vector.extract_strided_slice %44 {offsets = [0, 0], sizes = [8, 32], strides = [1, 1]} : vector<16x32xf32> to vector<8x32xf32>
    %c0_22 = arith.constant 0 : index
    %c0_23 = arith.constant 0 : index
    %c0_24 = arith.constant 0 : index
    %48 = vector.load %arg3[%c0_22, %c0_23, %c0_24] : memref<2x8x8xf32, #tpu.memory_space<vmem>>, vector<1x8x8xf32>
    %49 = vector.shape_cast %48 : vector<1x8x8xf32> to vector<8x8xf32>
    %50 = vector.extract_strided_slice %45 {offsets = [0, 0], sizes = [8, 8], strides = [1, 1]} : vector<8x32xf32> to vector<8x8xf32>
    %51 = vector.extract_strided_slice %46 {offsets = [0, 0], sizes = [8, 8], strides = [1, 1]} : vector<8x32xf32> to vector<8x8xf32>
    %52 = vector.extract_strided_slice %47 {offsets = [0, 0], sizes = [8, 8], strides = [1, 1]} : vector<8x32xf32> to vector<8x8xf32>
    %cst_25 = arith.constant dense<0.000000e+00> : vector<8x8xf32>
    %53 = tpu.matmul %50, %51, %cst_25 {dimension_numbers = #tpu.dot_dimension_numbers<[1], [1], [0], [0], [0, 0, 1, 0], [], []>} : vector<8x8xf32>, vector<8x8xf32>, vector<8x8xf32> -> vector<8x8xf32>
    %54 = arith.addf %53, %49 : vector<8x8xf32>
    %cst_26 = arith.constant dense<0xFF800000> : vector<8xf32>
    %55 = vector.multi_reduction <maximumf>, %54, %cst_26 [1] : vector<8x8xf32> to vector<8xf32>
    %56 = vector.shape_cast %55 : vector<8xf32> to vector<8x1xf32>
    %57 = vector.broadcast %56 : vector<8x1xf32> to vector<8x8xf32>
    %58 = arith.subf %54, %57 : vector<8x8xf32>
    %59 = math.exp %58 : vector<8x8xf32>
    %cst_27 = arith.constant dense<0.000000e+00> : vector<8xf32>
    %60 = vector.multi_reduction <add>, %59, %cst_27 [1] : vector<8x8xf32> to vector<8xf32>
    %61 = vector.shape_cast %60 : vector<8xf32> to vector<8x1xf32>
    %62 = tpu.reciprocal %61 {approx = true} : vector<8x1xf32> -> vector<8x1xf32>
    %63 = vector.broadcast %62 : vector<8x1xf32> to vector<8x8xf32>
    %64 = arith.mulf %59, %63 : vector<8x8xf32>
    %cst_28 = arith.constant dense<0.000000e+00> : vector<8x8xf32>
    %65 = tpu.matmul %64, %52, %cst_28 {dimension_numbers = #tpu.dot_dimension_numbers<[1], [0], [0], [1], [0, 0, 1, 1], [], []>} : vector<8x8xf32>, vector<8x8xf32>, vector<8x8xf32> -> vector<8x8xf32>
    %66 = vector.extract_strided_slice %45 {offsets = [0, 8], sizes = [8, 8], strides = [1, 1]} : vector<8x32xf32> to vector<8x8xf32>
    %67 = vector.extract_strided_slice %46 {offsets = [0, 8], sizes = [8, 8], strides = [1, 1]} : vector<8x32xf32> to vector<8x8xf32>
    %68 = vector.extract_strided_slice %47 {offsets = [0, 8], sizes = [8, 8], strides = [1, 1]} : vector<8x32xf32> to vector<8x8xf32>
    %cst_29 = arith.constant dense<0.000000e+00> : vector<8x8xf32>
    %69 = tpu.matmul %66, %67, %cst_29 {dimension_numbers = #tpu.dot_dimension_numbers<[1], [1], [0], [0], [0, 0, 1, 0], [], []>} : vector<8x8xf32>, vector<8x8xf32>, vector<8x8xf32> -> vector<8x8xf32>
    %70 = arith.addf %69, %49 : vector<8x8xf32>
    %cst_30 = arith.constant dense<0xFF800000> : vector<8xf32>
    %71 = vector.multi_reduction <maximumf>, %70, %cst_30 [1] : vector<8x8xf32> to vector<8xf32>
    %72 = vector.shape_cast %71 : vector<8xf32> to vector<8x1xf32>
    %73 = vector.broadcast %72 : vector<8x1xf32> to vector<8x8xf32>
    %74 = arith.subf %70, %73 : vector<8x8xf32>
    %75 = math.exp %74 : vector<8x8xf32>
    %cst_31 = arith.constant dense<0.000000e+00> : vector<8xf32>
    %76 = vector.multi_reduction <add>, %75, %cst_31 [1] : vector<8x8xf32> to vector<8xf32>
    %77 = vector.shape_cast %76 : vector<8xf32> to vector<8x1xf32>
    %78 = tpu.reciprocal %77 {approx = true} : vector<8x1xf32> -> vector<8x1xf32>
    %79 = vector.broadcast %78 : vector<8x1xf32> to vector<8x8xf32>
    %80 = arith.mulf %75, %79 : vector<8x8xf32>
    %cst_32 = arith.constant dense<0.000000e+00> : vector<8x8xf32>
    %81 = tpu.matmul %80, %68, %cst_32 {dimension_numbers = #tpu.dot_dimension_numbers<[1], [0], [0], [1], [0, 0, 1, 1], [], []>} : vector<8x8xf32>, vector<8x8xf32>, vector<8x8xf32> -> vector<8x8xf32>
    %82 = vector.extract_strided_slice %45 {offsets = [0, 16], sizes = [8, 8], strides = [1, 1]} : vector<8x32xf32> to vector<8x8xf32>
    %83 = vector.extract_strided_slice %46 {offsets = [0, 16], sizes = [8, 8], strides = [1, 1]} : vector<8x32xf32> to vector<8x8xf32>
    %84 = vector.extract_strided_slice %47 {offsets = [0, 16], sizes = [8, 8], strides = [1, 1]} : vector<8x32xf32> to vector<8x8xf32>
    %cst_33 = arith.constant dense<0.000000e+00> : vector<8x8xf32>
    %85 = tpu.matmul %82, %83, %cst_33 {dimension_numbers = #tpu.dot_dimension_numbers<[1], [1], [0], [0], [0, 0, 1, 0], [], []>} : vector<8x8xf32>, vector<8x8xf32>, vector<8x8xf32> -> vector<8x8xf32>
    %86 = arith.addf %85, %49 : vector<8x8xf32>
    %cst_34 = arith.constant dense<0xFF800000> : vector<8xf32>
    %87 = vector.multi_reduction <maximumf>, %86, %cst_34 [1] : vector<8x8xf32> to vector<8xf32>
    %88 = vector.shape_cast %87 : vector<8xf32> to vector<8x1xf32>
    %89 = vector.broadcast %88 : vector<8x1xf32> to vector<8x8xf32>
    %90 = arith.subf %86, %89 : vector<8x8xf32>
    %91 = math.exp %90 : vector<8x8xf32>
    %cst_35 = arith.constant dense<0.000000e+00> : vector<8xf32>
    %92 = vector.multi_reduction <add>, %91, %cst_35 [1] : vector<8x8xf32> to vector<8xf32>
    %93 = vector.shape_cast %92 : vector<8xf32> to vector<8x1xf32>
    %94 = tpu.reciprocal %93 {approx = true} : vector<8x1xf32> -> vector<8x1xf32>
    %95 = vector.broadcast %94 : vector<8x1xf32> to vector<8x8xf32>
    %96 = arith.mulf %91, %95 : vector<8x8xf32>
    %cst_36 = arith.constant dense<0.000000e+00> : vector<8x8xf32>
    %97 = tpu.matmul %96, %84, %cst_36 {dimension_numbers = #tpu.dot_dimension_numbers<[1], [0], [0], [1], [0, 0, 1, 1], [], []>} : vector<8x8xf32>, vector<8x8xf32>, vector<8x8xf32> -> vector<8x8xf32>
    %98 = vector.extract_strided_slice %45 {offsets = [0, 24], sizes = [8, 8], strides = [1, 1]} : vector<8x32xf32> to vector<8x8xf32>
    %99 = vector.extract_strided_slice %46 {offsets = [0, 24], sizes = [8, 8], strides = [1, 1]} : vector<8x32xf32> to vector<8x8xf32>
    %100 = vector.extract_strided_slice %47 {offsets = [0, 24], sizes = [8, 8], strides = [1, 1]} : vector<8x32xf32> to vector<8x8xf32>
    %cst_37 = arith.constant dense<0.000000e+00> : vector<8x8xf32>
    %101 = tpu.matmul %98, %99, %cst_37 {dimension_numbers = #tpu.dot_dimension_numbers<[1], [1], [0], [0], [0, 0, 1, 0], [], []>} : vector<8x8xf32>, vector<8x8xf32>, vector<8x8xf32> -> vector<8x8xf32>
    %102 = arith.addf %101, %49 : vector<8x8xf32>
    %cst_38 = arith.constant dense<0xFF800000> : vector<8xf32>
    %103 = vector.multi_reduction <maximumf>, %102, %cst_38 [1] : vector<8x8xf32> to vector<8xf32>
    %104 = vector.shape_cast %103 : vector<8xf32> to vector<8x1xf32>
    %105 = vector.broadcast %104 : vector<8x1xf32> to vector<8x8xf32>
    %106 = arith.subf %102, %105 : vector<8x8xf32>
    %107 = math.exp %106 : vector<8x8xf32>
    %cst_39 = arith.constant dense<0.000000e+00> : vector<8xf32>
    %108 = vector.multi_reduction <add>, %107, %cst_39 [1] : vector<8x8xf32> to vector<8xf32>
    %109 = vector.shape_cast %108 : vector<8xf32> to vector<8x1xf32>
    %110 = tpu.reciprocal %109 {approx = true} : vector<8x1xf32> -> vector<8x1xf32>
    %111 = vector.broadcast %110 : vector<8x1xf32> to vector<8x8xf32>
    %112 = arith.mulf %107, %111 : vector<8x8xf32>
    %cst_40 = arith.constant dense<0.000000e+00> : vector<8x8xf32>
    %113 = tpu.matmul %112, %100, %cst_40 {dimension_numbers = #tpu.dot_dimension_numbers<[1], [0], [0], [1], [0, 0, 1, 1], [], []>} : vector<8x8xf32>, vector<8x8xf32>, vector<8x8xf32> -> vector<8x8xf32>
    %114 = tpu.concatenate %65, %81, %97, %113 in 1 : vector<8x8xf32>, vector<8x8xf32>, vector<8x8xf32>, vector<8x8xf32> -> vector<8x32xf32>
    %115 = vector.extract_strided_slice %42 {offsets = [8, 0], sizes = [8, 32], strides = [1, 1]} : vector<16x32xf32> to vector<8x32xf32>
    %116 = vector.extract_strided_slice %43 {offsets = [8, 0], sizes = [8, 32], strides = [1, 1]} : vector<16x32xf32> to vector<8x32xf32>
    %117 = vector.extract_strided_slice %44 {offsets = [8, 0], sizes = [8, 32], strides = [1, 1]} : vector<16x32xf32> to vector<8x32xf32>
    %c1 = arith.constant 1 : index
    %c0_41 = arith.constant 0 : index
    %c0_42 = arith.constant 0 : index
    %118 = vector.load %arg3[%c1, %c0_41, %c0_42] : memref<2x8x8xf32, #tpu.memory_space<vmem>>, vector<1x8x8xf32>
    %119 = vector.shape_cast %118 : vector<1x8x8xf32> to vector<8x8xf32>
    %120 = vector.extract_strided_slice %115 {offsets = [0, 0], sizes = [8, 8], strides = [1, 1]} : vector<8x32xf32> to vector<8x8xf32>
    %121 = vector.extract_strided_slice %116 {offsets = [0, 0], sizes = [8, 8], strides = [1, 1]} : vector<8x32xf32> to vector<8x8xf32>
    %122 = vector.extract_strided_slice %117 {offsets = [0, 0], sizes = [8, 8], strides = [1, 1]} : vector<8x32xf32> to vector<8x8xf32>
    %cst_43 = arith.constant dense<0.000000e+00> : vector<8x8xf32>
    %123 = tpu.matmul %120, %121, %cst_43 {dimension_numbers = #tpu.dot_dimension_numbers<[1], [1], [0], [0], [0, 0, 1, 0], [], []>} : vector<8x8xf32>, vector<8x8xf32>, vector<8x8xf32> -> vector<8x8xf32>
    %124 = arith.addf %123, %119 : vector<8x8xf32>
    %cst_44 = arith.constant dense<0xFF800000> : vector<8xf32>
    %125 = vector.multi_reduction <maximumf>, %124, %cst_44 [1] : vector<8x8xf32> to vector<8xf32>
    %126 = vector.shape_cast %125 : vector<8xf32> to vector<8x1xf32>
    %127 = vector.broadcast %126 : vector<8x1xf32> to vector<8x8xf32>
    %128 = arith.subf %124, %127 : vector<8x8xf32>
    %129 = math.exp %128 : vector<8x8xf32>
    %cst_45 = arith.constant dense<0.000000e+00> : vector<8xf32>
    %130 = vector.multi_reduction <add>, %129, %cst_45 [1] : vector<8x8xf32> to vector<8xf32>
    %131 = vector.shape_cast %130 : vector<8xf32> to vector<8x1xf32>
    %132 = tpu.reciprocal %131 {approx = true} : vector<8x1xf32> -> vector<8x1xf32>
    %133 = vector.broadcast %132 : vector<8x1xf32> to vector<8x8xf32>
    %134 = arith.mulf %129, %133 : vector<8x8xf32>
    %cst_46 = arith.constant dense<0.000000e+00> : vector<8x8xf32>
    %135 = tpu.matmul %134, %122, %cst_46 {dimension_numbers = #tpu.dot_dimension_numbers<[1], [0], [0], [1], [0, 0, 1, 1], [], []>} : vector<8x8xf32>, vector<8x8xf32>, vector<8x8xf32> -> vector<8x8xf32>
    %136 = vector.extract_strided_slice %115 {offsets = [0, 8], sizes = [8, 8], strides = [1, 1]} : vector<8x32xf32> to vector<8x8xf32>
    %137 = vector.extract_strided_slice %116 {offsets = [0, 8], sizes = [8, 8], strides = [1, 1]} : vector<8x32xf32> to vector<8x8xf32>
    %138 = vector.extract_strided_slice %117 {offsets = [0, 8], sizes = [8, 8], strides = [1, 1]} : vector<8x32xf32> to vector<8x8xf32>
    %cst_47 = arith.constant dense<0.000000e+00> : vector<8x8xf32>
    %139 = tpu.matmul %136, %137, %cst_47 {dimension_numbers = #tpu.dot_dimension_numbers<[1], [1], [0], [0], [0, 0, 1, 0], [], []>} : vector<8x8xf32>, vector<8x8xf32>, vector<8x8xf32> -> vector<8x8xf32>
    %140 = arith.addf %139, %119 : vector<8x8xf32>
    %cst_48 = arith.constant dense<0xFF800000> : vector<8xf32>
    %141 = vector.multi_reduction <maximumf>, %140, %cst_48 [1] : vector<8x8xf32> to vector<8xf32>
    %142 = vector.shape_cast %141 : vector<8xf32> to vector<8x1xf32>
    %143 = vector.broadcast %142 : vector<8x1xf32> to vector<8x8xf32>
    %144 = arith.subf %140, %143 : vector<8x8xf32>
    %145 = math.exp %144 : vector<8x8xf32>
    %cst_49 = arith.constant dense<0.000000e+00> : vector<8xf32>
    %146 = vector.multi_reduction <add>, %145, %cst_49 [1] : vector<8x8xf32> to vector<8xf32>
    %147 = vector.shape_cast %146 : vector<8xf32> to vector<8x1xf32>
    %148 = tpu.reciprocal %147 {approx = true} : vector<8x1xf32> -> vector<8x1xf32>
    %149 = vector.broadcast %148 : vector<8x1xf32> to vector<8x8xf32>
    %150 = arith.mulf %145, %149 : vector<8x8xf32>
    %cst_50 = arith.constant dense<0.000000e+00> : vector<8x8xf32>
    %151 = tpu.matmul %150, %138, %cst_50 {dimension_numbers = #tpu.dot_dimension_numbers<[1], [0], [0], [1], [0, 0, 1, 1], [], []>} : vector<8x8xf32>, vector<8x8xf32>, vector<8x8xf32> -> vector<8x8xf32>
    %152 = vector.extract_strided_slice %115 {offsets = [0, 16], sizes = [8, 8], strides = [1, 1]} : vector<8x32xf32> to vector<8x8xf32>
    %153 = vector.extract_strided_slice %116 {offsets = [0, 16], sizes = [8, 8], strides = [1, 1]} : vector<8x32xf32> to vector<8x8xf32>
    %154 = vector.extract_strided_slice %117 {offsets = [0, 16], sizes = [8, 8], strides = [1, 1]} : vector<8x32xf32> to vector<8x8xf32>
    %cst_51 = arith.constant dense<0.000000e+00> : vector<8x8xf32>
    %155 = tpu.matmul %152, %153, %cst_51 {dimension_numbers = #tpu.dot_dimension_numbers<[1], [1], [0], [0], [0, 0, 1, 0], [], []>} : vector<8x8xf32>, vector<8x8xf32>, vector<8x8xf32> -> vector<8x8xf32>
    %156 = arith.addf %155, %119 : vector<8x8xf32>
    %cst_52 = arith.constant dense<0xFF800000> : vector<8xf32>
    %157 = vector.multi_reduction <maximumf>, %156, %cst_52 [1] : vector<8x8xf32> to vector<8xf32>
    %158 = vector.shape_cast %157 : vector<8xf32> to vector<8x1xf32>
    %159 = vector.broadcast %158 : vector<8x1xf32> to vector<8x8xf32>
    %160 = arith.subf %156, %159 : vector<8x8xf32>
    %161 = math.exp %160 : vector<8x8xf32>
    %cst_53 = arith.constant dense<0.000000e+00> : vector<8xf32>
    %162 = vector.multi_reduction <add>, %161, %cst_53 [1] : vector<8x8xf32> to vector<8xf32>
    %163 = vector.shape_cast %162 : vector<8xf32> to vector<8x1xf32>
    %164 = tpu.reciprocal %163 {approx = true} : vector<8x1xf32> -> vector<8x1xf32>
    %165 = vector.broadcast %164 : vector<8x1xf32> to vector<8x8xf32>
    %166 = arith.mulf %161, %165 : vector<8x8xf32>
    %cst_54 = arith.constant dense<0.000000e+00> : vector<8x8xf32>
    %167 = tpu.matmul %166, %154, %cst_54 {dimension_numbers = #tpu.dot_dimension_numbers<[1], [0], [0], [1], [0, 0, 1, 1], [], []>} : vector<8x8xf32>, vector<8x8xf32>, vector<8x8xf32> -> vector<8x8xf32>
    %168 = vector.extract_strided_slice %115 {offsets = [0, 24], sizes = [8, 8], strides = [1, 1]} : vector<8x32xf32> to vector<8x8xf32>
    %169 = vector.extract_strided_slice %116 {offsets = [0, 24], sizes = [8, 8], strides = [1, 1]} : vector<8x32xf32> to vector<8x8xf32>
    %170 = vector.extract_strided_slice %117 {offsets = [0, 24], sizes = [8, 8], strides = [1, 1]} : vector<8x32xf32> to vector<8x8xf32>
    %cst_55 = arith.constant dense<0.000000e+00> : vector<8x8xf32>
    %171 = tpu.matmul %168, %169, %cst_55 {dimension_numbers = #tpu.dot_dimension_numbers<[1], [1], [0], [0], [0, 0, 1, 0], [], []>} : vector<8x8xf32>, vector<8x8xf32>, vector<8x8xf32> -> vector<8x8xf32>
    %172 = arith.addf %171, %119 : vector<8x8xf32>
    %cst_56 = arith.constant dense<0xFF800000> : vector<8xf32>
    %173 = vector.multi_reduction <maximumf>, %172, %cst_56 [1] : vector<8x8xf32> to vector<8xf32>
    %174 = vector.shape_cast %173 : vector<8xf32> to vector<8x1xf32>
    %175 = vector.broadcast %174 : vector<8x1xf32> to vector<8x8xf32>
    %176 = arith.subf %172, %175 : vector<8x8xf32>
    %177 = math.exp %176 : vector<8x8xf32>
    %cst_57 = arith.constant dense<0.000000e+00> : vector<8xf32>
    %178 = vector.multi_reduction <add>, %177, %cst_57 [1] : vector<8x8xf32> to vector<8xf32>
    %179 = vector.shape_cast %178 : vector<8xf32> to vector<8x1xf32>
    %180 = tpu.reciprocal %179 {approx = true} : vector<8x1xf32> -> vector<8x1xf32>
    %181 = vector.broadcast %180 : vector<8x1xf32> to vector<8x8xf32>
    %182 = arith.mulf %177, %181 : vector<8x8xf32>
    %cst_58 = arith.constant dense<0.000000e+00> : vector<8x8xf32>
    %183 = tpu.matmul %182, %170, %cst_58 {dimension_numbers = #tpu.dot_dimension_numbers<[1], [0], [0], [1], [0, 0, 1, 1], [], []>} : vector<8x8xf32>, vector<8x8xf32>, vector<8x8xf32> -> vector<8x8xf32>
    %184 = tpu.concatenate %135, %151, %167, %183 in 1 : vector<8x8xf32>, vector<8x8xf32>, vector<8x8xf32>, vector<8x8xf32> -> vector<8x32xf32>
    %185 = tpu.concatenate %114, %184 in 0 : vector<8x32xf32>, vector<8x32xf32> -> vector<16x32xf32>
    %c0_59 = arith.constant 0 : index
    %c0_60 = arith.constant 0 : index
    %c0_61 = arith.constant 0 : index
    %186 = vector.load %arg7[%c0_59, %c0_60, %c0_61] : memref<1x32x32xf32, #tpu.memory_space<vmem>>, vector<1x32x32xf32>
    %187 = vector.shape_cast %186 : vector<1x32x32xf32> to vector<32x32xf32>
    %cst_62 = arith.constant dense<0.000000e+00> : vector<16x32xf32>
    %188 = tpu.matmul %185, %187, %cst_62 {dimension_numbers = #tpu.dot_dimension_numbers<[1], [0], [0], [1], [0, 0, 1, 1], [], []>} : vector<16x32xf32>, vector<32x32xf32>, vector<16x32xf32> -> vector<16x32xf32>
    %189 = arith.addf %3, %188 : vector<16x32xf32>
    %c0_63 = arith.constant 0 : index
    %c0_64 = arith.constant 0 : index
    %c0_65 = arith.constant 0 : index
    %190 = vector.load %arg8[%c0_63, %c0_64, %c0_65] : memref<1x1x32xf32, #tpu.memory_space<vmem>>, vector<1x1x32xf32>
    %191 = vector.shape_cast %190 : vector<1x1x32xf32> to vector<1x32xf32>
    %192 = vector.broadcast %191 : vector<1x32xf32> to vector<16x32xf32>
    %193 = arith.addf %189, %192 : vector<16x32xf32>
    %194 = vector.extract_strided_slice %6 {offsets = [1, 0], sizes = [1, 32], strides = [1, 1]} : vector<3x32xf32> to vector<1x32xf32>
    %195 = vector.extract_strided_slice %8 {offsets = [1, 0], sizes = [1, 32], strides = [1, 1]} : vector<3x32xf32> to vector<1x32xf32>
    %cst_66 = arith.constant dense<0.000000e+00> : vector<16xf32>
    %196 = vector.multi_reduction <add>, %193, %cst_66 [1] : vector<16x32xf32> to vector<16xf32>
    %197 = vector.shape_cast %196 : vector<16xf32> to vector<16x1xf32>
    %cst_67 = arith.constant 3.200000e+01 : f32
    %198 = vector.broadcast %cst_67 : f32 to vector<16x1xf32>
    %199 = arith.divf %197, %198 : vector<16x1xf32>
    %200 = vector.broadcast %199 : vector<16x1xf32> to vector<16x32xf32>
    %201 = arith.subf %193, %200 : vector<16x32xf32>
    %202 = arith.mulf %201, %201 : vector<16x32xf32>
    %cst_68 = arith.constant dense<0.000000e+00> : vector<16xf32>
    %203 = vector.multi_reduction <add>, %202, %cst_68 [1] : vector<16x32xf32> to vector<16xf32>
    %204 = vector.shape_cast %203 : vector<16xf32> to vector<16x1xf32>
    %cst_69 = arith.constant 3.100000e+01 : f32
    %205 = vector.broadcast %cst_69 : f32 to vector<16x1xf32>
    %206 = arith.divf %204, %205 : vector<16x1xf32>
    %207 = math.sqrt %206 : vector<16x1xf32>
    %208 = vector.broadcast %199 : vector<16x1xf32> to vector<16x32xf32>
    %209 = arith.subf %193, %208 : vector<16x32xf32>
    %210 = vector.broadcast %194 : vector<1x32xf32> to vector<16x32xf32>
    %211 = arith.mulf %210, %209 : vector<16x32xf32>
    %cst_70 = arith.constant 9.99999997E-7 : f32
    %212 = vector.broadcast %cst_70 : f32 to vector<16x1xf32>
    %213 = arith.addf %207, %212 : vector<16x1xf32>
    %214 = vector.broadcast %213 : vector<16x1xf32> to vector<16x32xf32>
    %215 = arith.divf %211, %214 : vector<16x32xf32>
    %216 = vector.broadcast %195 : vector<1x32xf32> to vector<16x32xf32>
    %217 = arith.addf %215, %216 : vector<16x32xf32>
    %c0_71 = arith.constant 0 : index
    %c0_72 = arith.constant 0 : index
    %c0_73 = arith.constant 0 : index
    %218 = vector.load %arg9[%c0_71, %c0_72, %c0_73] : memref<1x32x32xf32, #tpu.memory_space<vmem>>, vector<1x32x32xf32>
    %219 = vector.shape_cast %218 : vector<1x32x32xf32> to vector<32x32xf32>
    %cst_74 = arith.constant dense<0.000000e+00> : vector<16x32xf32>
    %220 = tpu.matmul %217, %219, %cst_74 {dimension_numbers = #tpu.dot_dimension_numbers<[1], [0], [0], [1], [0, 0, 1, 1], [], []>} : vector<16x32xf32>, vector<32x32xf32>, vector<16x32xf32> -> vector<16x32xf32>
    %c0_75 = arith.constant 0 : index
    %c0_76 = arith.constant 0 : index
    %c0_77 = arith.constant 0 : index
    %221 = vector.load %arg10[%c0_75, %c0_76, %c0_77] : memref<1x1x32xf32, #tpu.memory_space<vmem>>, vector<1x1x32xf32>
    %222 = vector.shape_cast %221 : vector<1x1x32xf32> to vector<1x32xf32>
    %223 = vector.broadcast %222 : vector<1x32xf32> to vector<16x32xf32>
    %224 = arith.addf %220, %223 : vector<16x32xf32>
    %cst_78 = arith.constant 0.353553385 : f32
    %225 = vector.broadcast %cst_78 : f32 to vector<16x32xf32>
    %226 = arith.mulf %224, %225 : vector<16x32xf32>
    %c0_79 = arith.constant 0 : index
    %c0_80 = arith.constant 0 : index
    %c0_81 = arith.constant 0 : index
    %227 = vector.load %arg11[%c0_79, %c0_80, %c0_81] : memref<1x32x64xf32, #tpu.memory_space<vmem>>, vector<1x32x64xf32>
    %228 = vector.shape_cast %227 : vector<1x32x64xf32> to vector<32x64xf32>
    %cst_82 = arith.constant dense<0.000000e+00> : vector<16x64xf32>
    %229 = tpu.matmul %4, %228, %cst_82 {dimension_numbers = #tpu.dot_dimension_numbers<[1], [0], [0], [1], [0, 0, 1, 1], [], []>} : vector<16x32xf32>, vector<32x64xf32>, vector<16x64xf32> -> vector<16x64xf32>
    %c0_83 = arith.constant 0 : index
    %c0_84 = arith.constant 0 : index
    %c0_85 = arith.constant 0 : index
    %230 = vector.load %arg12[%c0_83, %c0_84, %c0_85] : memref<1x1x64xf32, #tpu.memory_space<vmem>>, vector<1x1x64xf32>
    %231 = vector.shape_cast %230 : vector<1x1x64xf32> to vector<1x64xf32>
    %232 = vector.broadcast %231 : vector<1x64xf32> to vector<16x64xf32>
    %233 = arith.addf %229, %232 : vector<16x64xf32>
    %234 = vector.extract_strided_slice %233 {offsets = [0, 0], sizes = [16, 32], strides = [1, 1]} : vector<16x64xf32> to vector<16x32xf32>
    %235 = vector.extract_strided_slice %233 {offsets = [0, 32], sizes = [16, 32], strides = [1, 1]} : vector<16x64xf32> to vector<16x32xf32>
    %236 = vector.extract_strided_slice %226 {offsets = [0, 0], sizes = [8, 32], strides = [1, 1]} : vector<16x32xf32> to vector<8x32xf32>
    %237 = vector.extract_strided_slice %234 {offsets = [0, 0], sizes = [8, 32], strides = [1, 1]} : vector<16x32xf32> to vector<8x32xf32>
    %238 = vector.extract_strided_slice %235 {offsets = [0, 0], sizes = [8, 32], strides = [1, 1]} : vector<16x32xf32> to vector<8x32xf32>
    %c0_86 = arith.constant 0 : index
    %c0_87 = arith.constant 0 : index
    %c0_88 = arith.constant 0 : index
    %239 = vector.load %arg4[%c0_86, %c0_87, %c0_88] : memref<2x1x8xf32, #tpu.memory_space<vmem>>, vector<1x1x8xf32>
    %240 = vector.shape_cast %239 : vector<1x1x8xf32> to vector<1x8xf32>
    %241 = vector.extract_strided_slice %236 {offsets = [0, 0], sizes = [8, 8], strides = [1, 1]} : vector<8x32xf32> to vector<8x8xf32>
    %242 = vector.extract_strided_slice %237 {offsets = [0, 0], sizes = [8, 8], strides = [1, 1]} : vector<8x32xf32> to vector<8x8xf32>
    %243 = vector.extract_strided_slice %238 {offsets = [0, 0], sizes = [8, 8], strides = [1, 1]} : vector<8x32xf32> to vector<8x8xf32>
    %cst_89 = arith.constant dense<0.000000e+00> : vector<8x8xf32>
    %244 = tpu.matmul %241, %242, %cst_89 {dimension_numbers = #tpu.dot_dimension_numbers<[1], [1], [0], [0], [0, 0, 1, 0], [], []>} : vector<8x8xf32>, vector<8x8xf32>, vector<8x8xf32> -> vector<8x8xf32>
    %245 = vector.broadcast %240 : vector<1x8xf32> to vector<8x8xf32>
    %246 = arith.addf %244, %245 : vector<8x8xf32>
    %cst_90 = arith.constant dense<0xFF800000> : vector<8xf32>
    %247 = vector.multi_reduction <maximumf>, %246, %cst_90 [1] : vector<8x8xf32> to vector<8xf32>
    %248 = vector.shape_cast %247 : vector<8xf32> to vector<8x1xf32>
    %249 = vector.broadcast %248 : vector<8x1xf32> to vector<8x8xf32>
    %250 = arith.subf %246, %249 : vector<8x8xf32>
    %251 = math.exp %250 : vector<8x8xf32>
    %cst_91 = arith.constant dense<0.000000e+00> : vector<8xf32>
    %252 = vector.multi_reduction <add>, %251, %cst_91 [1] : vector<8x8xf32> to vector<8xf32>
    %253 = vector.shape_cast %252 : vector<8xf32> to vector<8x1xf32>
    %254 = tpu.reciprocal %253 {approx = true} : vector<8x1xf32> -> vector<8x1xf32>
    %255 = vector.broadcast %254 : vector<8x1xf32> to vector<8x8xf32>
    %256 = arith.mulf %251, %255 : vector<8x8xf32>
    %cst_92 = arith.constant dense<0.000000e+00> : vector<8x8xf32>
    %257 = tpu.matmul %256, %243, %cst_92 {dimension_numbers = #tpu.dot_dimension_numbers<[1], [0], [0], [1], [0, 0, 1, 1], [], []>} : vector<8x8xf32>, vector<8x8xf32>, vector<8x8xf32> -> vector<8x8xf32>
    %258 = vector.extract_strided_slice %236 {offsets = [0, 8], sizes = [8, 8], strides = [1, 1]} : vector<8x32xf32> to vector<8x8xf32>
    %259 = vector.extract_strided_slice %237 {offsets = [0, 8], sizes = [8, 8], strides = [1, 1]} : vector<8x32xf32> to vector<8x8xf32>
    %260 = vector.extract_strided_slice %238 {offsets = [0, 8], sizes = [8, 8], strides = [1, 1]} : vector<8x32xf32> to vector<8x8xf32>
    %cst_93 = arith.constant dense<0.000000e+00> : vector<8x8xf32>
    %261 = tpu.matmul %258, %259, %cst_93 {dimension_numbers = #tpu.dot_dimension_numbers<[1], [1], [0], [0], [0, 0, 1, 0], [], []>} : vector<8x8xf32>, vector<8x8xf32>, vector<8x8xf32> -> vector<8x8xf32>
    %262 = vector.broadcast %240 : vector<1x8xf32> to vector<8x8xf32>
    %263 = arith.addf %261, %262 : vector<8x8xf32>
    %cst_94 = arith.constant dense<0xFF800000> : vector<8xf32>
    %264 = vector.multi_reduction <maximumf>, %263, %cst_94 [1] : vector<8x8xf32> to vector<8xf32>
    %265 = vector.shape_cast %264 : vector<8xf32> to vector<8x1xf32>
    %266 = vector.broadcast %265 : vector<8x1xf32> to vector<8x8xf32>
    %267 = arith.subf %263, %266 : vector<8x8xf32>
    %268 = math.exp %267 : vector<8x8xf32>
    %cst_95 = arith.constant dense<0.000000e+00> : vector<8xf32>
    %269 = vector.multi_reduction <add>, %268, %cst_95 [1] : vector<8x8xf32> to vector<8xf32>
    %270 = vector.shape_cast %269 : vector<8xf32> to vector<8x1xf32>
    %271 = tpu.reciprocal %270 {approx = true} : vector<8x1xf32> -> vector<8x1xf32>
    %272 = vector.broadcast %271 : vector<8x1xf32> to vector<8x8xf32>
    %273 = arith.mulf %268, %272 : vector<8x8xf32>
    %cst_96 = arith.constant dense<0.000000e+00> : vector<8x8xf32>
    %274 = tpu.matmul %273, %260, %cst_96 {dimension_numbers = #tpu.dot_dimension_numbers<[1], [0], [0], [1], [0, 0, 1, 1], [], []>} : vector<8x8xf32>, vector<8x8xf32>, vector<8x8xf32> -> vector<8x8xf32>
    %275 = vector.extract_strided_slice %236 {offsets = [0, 16], sizes = [8, 8], strides = [1, 1]} : vector<8x32xf32> to vector<8x8xf32>
    %276 = vector.extract_strided_slice %237 {offsets = [0, 16], sizes = [8, 8], strides = [1, 1]} : vector<8x32xf32> to vector<8x8xf32>
    %277 = vector.extract_strided_slice %238 {offsets = [0, 16], sizes = [8, 8], strides = [1, 1]} : vector<8x32xf32> to vector<8x8xf32>
    %cst_97 = arith.constant dense<0.000000e+00> : vector<8x8xf32>
    %278 = tpu.matmul %275, %276, %cst_97 {dimension_numbers = #tpu.dot_dimension_numbers<[1], [1], [0], [0], [0, 0, 1, 0], [], []>} : vector<8x8xf32>, vector<8x8xf32>, vector<8x8xf32> -> vector<8x8xf32>
    %279 = vector.broadcast %240 : vector<1x8xf32> to vector<8x8xf32>
    %280 = arith.addf %278, %279 : vector<8x8xf32>
    %cst_98 = arith.constant dense<0xFF800000> : vector<8xf32>
    %281 = vector.multi_reduction <maximumf>, %280, %cst_98 [1] : vector<8x8xf32> to vector<8xf32>
    %282 = vector.shape_cast %281 : vector<8xf32> to vector<8x1xf32>
    %283 = vector.broadcast %282 : vector<8x1xf32> to vector<8x8xf32>
    %284 = arith.subf %280, %283 : vector<8x8xf32>
    %285 = math.exp %284 : vector<8x8xf32>
    %cst_99 = arith.constant dense<0.000000e+00> : vector<8xf32>
    %286 = vector.multi_reduction <add>, %285, %cst_99 [1] : vector<8x8xf32> to vector<8xf32>
    %287 = vector.shape_cast %286 : vector<8xf32> to vector<8x1xf32>
    %288 = tpu.reciprocal %287 {approx = true} : vector<8x1xf32> -> vector<8x1xf32>
    %289 = vector.broadcast %288 : vector<8x1xf32> to vector<8x8xf32>
    %290 = arith.mulf %285, %289 : vector<8x8xf32>
    %cst_100 = arith.constant dense<0.000000e+00> : vector<8x8xf32>
    %291 = tpu.matmul %290, %277, %cst_100 {dimension_numbers = #tpu.dot_dimension_numbers<[1], [0], [0], [1], [0, 0, 1, 1], [], []>} : vector<8x8xf32>, vector<8x8xf32>, vector<8x8xf32> -> vector<8x8xf32>
    %292 = vector.extract_strided_slice %236 {offsets = [0, 24], sizes = [8, 8], strides = [1, 1]} : vector<8x32xf32> to vector<8x8xf32>
    %293 = vector.extract_strided_slice %237 {offsets = [0, 24], sizes = [8, 8], strides = [1, 1]} : vector<8x32xf32> to vector<8x8xf32>
    %294 = vector.extract_strided_slice %238 {offsets = [0, 24], sizes = [8, 8], strides = [1, 1]} : vector<8x32xf32> to vector<8x8xf32>
    %cst_101 = arith.constant dense<0.000000e+00> : vector<8x8xf32>
    %295 = tpu.matmul %292, %293, %cst_101 {dimension_numbers = #tpu.dot_dimension_numbers<[1], [1], [0], [0], [0, 0, 1, 0], [], []>} : vector<8x8xf32>, vector<8x8xf32>, vector<8x8xf32> -> vector<8x8xf32>
    %296 = vector.broadcast %240 : vector<1x8xf32> to vector<8x8xf32>
    %297 = arith.addf %295, %296 : vector<8x8xf32>
    %cst_102 = arith.constant dense<0xFF800000> : vector<8xf32>
    %298 = vector.multi_reduction <maximumf>, %297, %cst_102 [1] : vector<8x8xf32> to vector<8xf32>
    %299 = vector.shape_cast %298 : vector<8xf32> to vector<8x1xf32>
    %300 = vector.broadcast %299 : vector<8x1xf32> to vector<8x8xf32>
    %301 = arith.subf %297, %300 : vector<8x8xf32>
    %302 = math.exp %301 : vector<8x8xf32>
    %cst_103 = arith.constant dense<0.000000e+00> : vector<8xf32>
    %303 = vector.multi_reduction <add>, %302, %cst_103 [1] : vector<8x8xf32> to vector<8xf32>
    %304 = vector.shape_cast %303 : vector<8xf32> to vector<8x1xf32>
    %305 = tpu.reciprocal %304 {approx = true} : vector<8x1xf32> -> vector<8x1xf32>
    %306 = vector.broadcast %305 : vector<8x1xf32> to vector<8x8xf32>
    %307 = arith.mulf %302, %306 : vector<8x8xf32>
    %cst_104 = arith.constant dense<0.000000e+00> : vector<8x8xf32>
    %308 = tpu.matmul %307, %294, %cst_104 {dimension_numbers = #tpu.dot_dimension_numbers<[1], [0], [0], [1], [0, 0, 1, 1], [], []>} : vector<8x8xf32>, vector<8x8xf32>, vector<8x8xf32> -> vector<8x8xf32>
    %309 = tpu.concatenate %257, %274, %291, %308 in 1 : vector<8x8xf32>, vector<8x8xf32>, vector<8x8xf32>, vector<8x8xf32> -> vector<8x32xf32>
    %310 = vector.extract_strided_slice %226 {offsets = [8, 0], sizes = [8, 32], strides = [1, 1]} : vector<16x32xf32> to vector<8x32xf32>
    %311 = vector.extract_strided_slice %234 {offsets = [8, 0], sizes = [8, 32], strides = [1, 1]} : vector<16x32xf32> to vector<8x32xf32>
    %312 = vector.extract_strided_slice %235 {offsets = [8, 0], sizes = [8, 32], strides = [1, 1]} : vector<16x32xf32> to vector<8x32xf32>
    %c1_105 = arith.constant 1 : index
    %c0_106 = arith.constant 0 : index
    %c0_107 = arith.constant 0 : index
    %313 = vector.load %arg4[%c1_105, %c0_106, %c0_107] : memref<2x1x8xf32, #tpu.memory_space<vmem>>, vector<1x1x8xf32>
    %314 = vector.shape_cast %313 : vector<1x1x8xf32> to vector<1x8xf32>
    %315 = vector.extract_strided_slice %310 {offsets = [0, 0], sizes = [8, 8], strides = [1, 1]} : vector<8x32xf32> to vector<8x8xf32>
    %316 = vector.extract_strided_slice %311 {offsets = [0, 0], sizes = [8, 8], strides = [1, 1]} : vector<8x32xf32> to vector<8x8xf32>
    %317 = vector.extract_strided_slice %312 {offsets = [0, 0], sizes = [8, 8], strides = [1, 1]} : vector<8x32xf32> to vector<8x8xf32>
    %cst_108 = arith.constant dense<0.000000e+00> : vector<8x8xf32>
    %318 = tpu.matmul %315, %316, %cst_108 {dimension_numbers = #tpu.dot_dimension_numbers<[1], [1], [0], [0], [0, 0, 1, 0], [], []>} : vector<8x8xf32>, vector<8x8xf32>, vector<8x8xf32> -> vector<8x8xf32>
    %319 = vector.broadcast %314 : vector<1x8xf32> to vector<8x8xf32>
    %320 = arith.addf %318, %319 : vector<8x8xf32>
    %cst_109 = arith.constant dense<0xFF800000> : vector<8xf32>
    %321 = vector.multi_reduction <maximumf>, %320, %cst_109 [1] : vector<8x8xf32> to vector<8xf32>
    %322 = vector.shape_cast %321 : vector<8xf32> to vector<8x1xf32>
    %323 = vector.broadcast %322 : vector<8x1xf32> to vector<8x8xf32>
    %324 = arith.subf %320, %323 : vector<8x8xf32>
    %325 = math.exp %324 : vector<8x8xf32>
    %cst_110 = arith.constant dense<0.000000e+00> : vector<8xf32>
    %326 = vector.multi_reduction <add>, %325, %cst_110 [1] : vector<8x8xf32> to vector<8xf32>
    %327 = vector.shape_cast %326 : vector<8xf32> to vector<8x1xf32>
    %328 = tpu.reciprocal %327 {approx = true} : vector<8x1xf32> -> vector<8x1xf32>
    %329 = vector.broadcast %328 : vector<8x1xf32> to vector<8x8xf32>
    %330 = arith.mulf %325, %329 : vector<8x8xf32>
    %cst_111 = arith.constant dense<0.000000e+00> : vector<8x8xf32>
    %331 = tpu.matmul %330, %317, %cst_111 {dimension_numbers = #tpu.dot_dimension_numbers<[1], [0], [0], [1], [0, 0, 1, 1], [], []>} : vector<8x8xf32>, vector<8x8xf32>, vector<8x8xf32> -> vector<8x8xf32>
    %332 = vector.extract_strided_slice %310 {offsets = [0, 8], sizes = [8, 8], strides = [1, 1]} : vector<8x32xf32> to vector<8x8xf32>
    %333 = vector.extract_strided_slice %311 {offsets = [0, 8], sizes = [8, 8], strides = [1, 1]} : vector<8x32xf32> to vector<8x8xf32>
    %334 = vector.extract_strided_slice %312 {offsets = [0, 8], sizes = [8, 8], strides = [1, 1]} : vector<8x32xf32> to vector<8x8xf32>
    %cst_112 = arith.constant dense<0.000000e+00> : vector<8x8xf32>
    %335 = tpu.matmul %332, %333, %cst_112 {dimension_numbers = #tpu.dot_dimension_numbers<[1], [1], [0], [0], [0, 0, 1, 0], [], []>} : vector<8x8xf32>, vector<8x8xf32>, vector<8x8xf32> -> vector<8x8xf32>
    %336 = vector.broadcast %314 : vector<1x8xf32> to vector<8x8xf32>
    %337 = arith.addf %335, %336 : vector<8x8xf32>
    %cst_113 = arith.constant dense<0xFF800000> : vector<8xf32>
    %338 = vector.multi_reduction <maximumf>, %337, %cst_113 [1] : vector<8x8xf32> to vector<8xf32>
    %339 = vector.shape_cast %338 : vector<8xf32> to vector<8x1xf32>
    %340 = vector.broadcast %339 : vector<8x1xf32> to vector<8x8xf32>
    %341 = arith.subf %337, %340 : vector<8x8xf32>
    %342 = math.exp %341 : vector<8x8xf32>
    %cst_114 = arith.constant dense<0.000000e+00> : vector<8xf32>
    %343 = vector.multi_reduction <add>, %342, %cst_114 [1] : vector<8x8xf32> to vector<8xf32>
    %344 = vector.shape_cast %343 : vector<8xf32> to vector<8x1xf32>
    %345 = tpu.reciprocal %344 {approx = true} : vector<8x1xf32> -> vector<8x1xf32>
    %346 = vector.broadcast %345 : vector<8x1xf32> to vector<8x8xf32>
    %347 = arith.mulf %342, %346 : vector<8x8xf32>
    %cst_115 = arith.constant dense<0.000000e+00> : vector<8x8xf32>
    %348 = tpu.matmul %347, %334, %cst_115 {dimension_numbers = #tpu.dot_dimension_numbers<[1], [0], [0], [1], [0, 0, 1, 1], [], []>} : vector<8x8xf32>, vector<8x8xf32>, vector<8x8xf32> -> vector<8x8xf32>
    %349 = vector.extract_strided_slice %310 {offsets = [0, 16], sizes = [8, 8], strides = [1, 1]} : vector<8x32xf32> to vector<8x8xf32>
    %350 = vector.extract_strided_slice %311 {offsets = [0, 16], sizes = [8, 8], strides = [1, 1]} : vector<8x32xf32> to vector<8x8xf32>
    %351 = vector.extract_strided_slice %312 {offsets = [0, 16], sizes = [8, 8], strides = [1, 1]} : vector<8x32xf32> to vector<8x8xf32>
    %cst_116 = arith.constant dense<0.000000e+00> : vector<8x8xf32>
    %352 = tpu.matmul %349, %350, %cst_116 {dimension_numbers = #tpu.dot_dimension_numbers<[1], [1], [0], [0], [0, 0, 1, 0], [], []>} : vector<8x8xf32>, vector<8x8xf32>, vector<8x8xf32> -> vector<8x8xf32>
    %353 = vector.broadcast %314 : vector<1x8xf32> to vector<8x8xf32>
    %354 = arith.addf %352, %353 : vector<8x8xf32>
    %cst_117 = arith.constant dense<0xFF800000> : vector<8xf32>
    %355 = vector.multi_reduction <maximumf>, %354, %cst_117 [1] : vector<8x8xf32> to vector<8xf32>
    %356 = vector.shape_cast %355 : vector<8xf32> to vector<8x1xf32>
    %357 = vector.broadcast %356 : vector<8x1xf32> to vector<8x8xf32>
    %358 = arith.subf %354, %357 : vector<8x8xf32>
    %359 = math.exp %358 : vector<8x8xf32>
    %cst_118 = arith.constant dense<0.000000e+00> : vector<8xf32>
    %360 = vector.multi_reduction <add>, %359, %cst_118 [1] : vector<8x8xf32> to vector<8xf32>
    %361 = vector.shape_cast %360 : vector<8xf32> to vector<8x1xf32>
    %362 = tpu.reciprocal %361 {approx = true} : vector<8x1xf32> -> vector<8x1xf32>
    %363 = vector.broadcast %362 : vector<8x1xf32> to vector<8x8xf32>
    %364 = arith.mulf %359, %363 : vector<8x8xf32>
    %cst_119 = arith.constant dense<0.000000e+00> : vector<8x8xf32>
    %365 = tpu.matmul %364, %351, %cst_119 {dimension_numbers = #tpu.dot_dimension_numbers<[1], [0], [0], [1], [0, 0, 1, 1], [], []>} : vector<8x8xf32>, vector<8x8xf32>, vector<8x8xf32> -> vector<8x8xf32>
    %366 = vector.extract_strided_slice %310 {offsets = [0, 24], sizes = [8, 8], strides = [1, 1]} : vector<8x32xf32> to vector<8x8xf32>
    %367 = vector.extract_strided_slice %311 {offsets = [0, 24], sizes = [8, 8], strides = [1, 1]} : vector<8x32xf32> to vector<8x8xf32>
    %368 = vector.extract_strided_slice %312 {offsets = [0, 24], sizes = [8, 8], strides = [1, 1]} : vector<8x32xf32> to vector<8x8xf32>
    %cst_120 = arith.constant dense<0.000000e+00> : vector<8x8xf32>
    %369 = tpu.matmul %366, %367, %cst_120 {dimension_numbers = #tpu.dot_dimension_numbers<[1], [1], [0], [0], [0, 0, 1, 0], [], []>} : vector<8x8xf32>, vector<8x8xf32>, vector<8x8xf32> -> vector<8x8xf32>
    %370 = vector.broadcast %314 : vector<1x8xf32> to vector<8x8xf32>
    %371 = arith.addf %369, %370 : vector<8x8xf32>
    %cst_121 = arith.constant dense<0xFF800000> : vector<8xf32>
    %372 = vector.multi_reduction <maximumf>, %371, %cst_121 [1] : vector<8x8xf32> to vector<8xf32>
    %373 = vector.shape_cast %372 : vector<8xf32> to vector<8x1xf32>
    %374 = vector.broadcast %373 : vector<8x1xf32> to vector<8x8xf32>
    %375 = arith.subf %371, %374 : vector<8x8xf32>
    %376 = math.exp %375 : vector<8x8xf32>
    %cst_122 = arith.constant dense<0.000000e+00> : vector<8xf32>
    %377 = vector.multi_reduction <add>, %376, %cst_122 [1] : vector<8x8xf32> to vector<8xf32>
    %378 = vector.shape_cast %377 : vector<8xf32> to vector<8x1xf32>
    %379 = tpu.reciprocal %378 {approx = true} : vector<8x1xf32> -> vector<8x1xf32>
    %380 = vector.broadcast %379 : vector<8x1xf32> to vector<8x8xf32>
    %381 = arith.mulf %376, %380 : vector<8x8xf32>
    %cst_123 = arith.constant dense<0.000000e+00> : vector<8x8xf32>
    %382 = tpu.matmul %381, %368, %cst_123 {dimension_numbers = #tpu.dot_dimension_numbers<[1], [0], [0], [1], [0, 0, 1, 1], [], []>} : vector<8x8xf32>, vector<8x8xf32>, vector<8x8xf32> -> vector<8x8xf32>
    %383 = tpu.concatenate %331, %348, %365, %382 in 1 : vector<8x8xf32>, vector<8x8xf32>, vector<8x8xf32>, vector<8x8xf32> -> vector<8x32xf32>
    %384 = tpu.concatenate %309, %383 in 0 : vector<8x32xf32>, vector<8x32xf32> -> vector<16x32xf32>
    %c0_124 = arith.constant 0 : index
    %c0_125 = arith.constant 0 : index
    %c0_126 = arith.constant 0 : index
    %385 = vector.load %arg13[%c0_124, %c0_125, %c0_126] : memref<1x32x32xf32, #tpu.memory_space<vmem>>, vector<1x32x32xf32>
    %386 = vector.shape_cast %385 : vector<1x32x32xf32> to vector<32x32xf32>
    %cst_127 = arith.constant dense<0.000000e+00> : vector<16x32xf32>
    %387 = tpu.matmul %384, %386, %cst_127 {dimension_numbers = #tpu.dot_dimension_numbers<[1], [0], [0], [1], [0, 0, 1, 1], [], []>} : vector<16x32xf32>, vector<32x32xf32>, vector<16x32xf32> -> vector<16x32xf32>
    %388 = arith.addf %193, %387 : vector<16x32xf32>
    %c0_128 = arith.constant 0 : index
    %c0_129 = arith.constant 0 : index
    %c0_130 = arith.constant 0 : index
    %389 = vector.load %arg14[%c0_128, %c0_129, %c0_130] : memref<1x1x32xf32, #tpu.memory_space<vmem>>, vector<1x1x32xf32>
    %390 = vector.shape_cast %389 : vector<1x1x32xf32> to vector<1x32xf32>
    %391 = vector.broadcast %390 : vector<1x32xf32> to vector<16x32xf32>
    %392 = arith.addf %388, %391 : vector<16x32xf32>
    %393 = vector.extract_strided_slice %6 {offsets = [2, 0], sizes = [1, 32], strides = [1, 1]} : vector<3x32xf32> to vector<1x32xf32>
    %394 = vector.extract_strided_slice %8 {offsets = [2, 0], sizes = [1, 32], strides = [1, 1]} : vector<3x32xf32> to vector<1x32xf32>
    %cst_131 = arith.constant dense<0.000000e+00> : vector<16xf32>
    %395 = vector.multi_reduction <add>, %392, %cst_131 [1] : vector<16x32xf32> to vector<16xf32>
    %396 = vector.shape_cast %395 : vector<16xf32> to vector<16x1xf32>
    %cst_132 = arith.constant 3.200000e+01 : f32
    %397 = vector.broadcast %cst_132 : f32 to vector<16x1xf32>
    %398 = arith.divf %396, %397 : vector<16x1xf32>
    %399 = vector.broadcast %398 : vector<16x1xf32> to vector<16x32xf32>
    %400 = arith.subf %392, %399 : vector<16x32xf32>
    %401 = arith.mulf %400, %400 : vector<16x32xf32>
    %cst_133 = arith.constant dense<0.000000e+00> : vector<16xf32>
    %402 = vector.multi_reduction <add>, %401, %cst_133 [1] : vector<16x32xf32> to vector<16xf32>
    %403 = vector.shape_cast %402 : vector<16xf32> to vector<16x1xf32>
    %cst_134 = arith.constant 3.100000e+01 : f32
    %404 = vector.broadcast %cst_134 : f32 to vector<16x1xf32>
    %405 = arith.divf %403, %404 : vector<16x1xf32>
    %406 = math.sqrt %405 : vector<16x1xf32>
    %407 = vector.broadcast %398 : vector<16x1xf32> to vector<16x32xf32>
    %408 = arith.subf %392, %407 : vector<16x32xf32>
    %409 = vector.broadcast %393 : vector<1x32xf32> to vector<16x32xf32>
    %410 = arith.mulf %409, %408 : vector<16x32xf32>
    %cst_135 = arith.constant 9.99999997E-7 : f32
    %411 = vector.broadcast %cst_135 : f32 to vector<16x1xf32>
    %412 = arith.addf %406, %411 : vector<16x1xf32>
    %413 = vector.broadcast %412 : vector<16x1xf32> to vector<16x32xf32>
    %414 = arith.divf %410, %413 : vector<16x32xf32>
    %415 = vector.broadcast %394 : vector<1x32xf32> to vector<16x32xf32>
    %416 = arith.addf %414, %415 : vector<16x32xf32>
    %c0_136 = arith.constant 0 : index
    %c0_137 = arith.constant 0 : index
    %c0_138 = arith.constant 0 : index
    %417 = vector.load %arg15[%c0_136, %c0_137, %c0_138] : memref<1x32x64xf32, #tpu.memory_space<vmem>>, vector<1x32x64xf32>
    %418 = vector.shape_cast %417 : vector<1x32x64xf32> to vector<32x64xf32>
    %cst_139 = arith.constant dense<0.000000e+00> : vector<16x64xf32>
    %419 = tpu.matmul %416, %418, %cst_139 {dimension_numbers = #tpu.dot_dimension_numbers<[1], [0], [0], [1], [0, 0, 1, 1], [], []>} : vector<16x32xf32>, vector<32x64xf32>, vector<16x64xf32> -> vector<16x64xf32>
    %c0_140 = arith.constant 0 : index
    %c0_141 = arith.constant 0 : index
    %c0_142 = arith.constant 0 : index
    %420 = vector.load %arg16[%c0_140, %c0_141, %c0_142] : memref<1x1x64xf32, #tpu.memory_space<vmem>>, vector<1x1x64xf32>
    %421 = vector.shape_cast %420 : vector<1x1x64xf32> to vector<1x64xf32>
    %422 = vector.broadcast %421 : vector<1x64xf32> to vector<16x64xf32>
    %423 = arith.addf %419, %422 : vector<16x64xf32>
    %cst_143 = arith.constant 0.000000e+00 : f32
    %424 = vector.broadcast %cst_143 : f32 to vector<16x64xf32>
    %425 = arith.maximumf %423, %424 : vector<16x64xf32>
    %c0_144 = arith.constant 0 : index
    %c0_145 = arith.constant 0 : index
    %c0_146 = arith.constant 0 : index
    %426 = vector.load %arg17[%c0_144, %c0_145, %c0_146] : memref<1x64x32xf32, #tpu.memory_space<vmem>>, vector<1x64x32xf32>
    %427 = vector.shape_cast %426 : vector<1x64x32xf32> to vector<64x32xf32>
    %cst_147 = arith.constant dense<0.000000e+00> : vector<16x32xf32>
    %428 = tpu.matmul %425, %427, %cst_147 {dimension_numbers = #tpu.dot_dimension_numbers<[1], [0], [0], [1], [0, 0, 1, 1], [], []>} : vector<16x64xf32>, vector<64x32xf32>, vector<16x32xf32> -> vector<16x32xf32>
    %429 = arith.addf %392, %428 : vector<16x32xf32>
    %c0_148 = arith.constant 0 : index
    %c0_149 = arith.constant 0 : index
    %c0_150 = arith.constant 0 : index
    %430 = vector.load %arg18[%c0_148, %c0_149, %c0_150] : memref<1x1x32xf32, #tpu.memory_space<vmem>>, vector<1x1x32xf32>
    %431 = vector.shape_cast %430 : vector<1x1x32xf32> to vector<1x32xf32>
    %432 = vector.broadcast %431 : vector<1x32xf32> to vector<16x32xf32>
    %433 = arith.addf %429, %432 : vector<16x32xf32>
    %c1_i32 = arith.constant 1 : i32
    %434 = arith.cmpi slt, %arg0, %c1_i32 : i32
    %435 = arith.extui %434 : i1 to i32
    %c0_i32_151 = arith.constant 0 : i32
    %436 = arith.cmpi ne, %435, %c0_i32_151 : i32
    scf.if %436 {
      %c0_154 = arith.constant 0 : index
      %c0_155 = arith.constant 0 : index
      %440 = vector.load %arg23[%c0_154, %c0_155] : memref<16x32xf32, #tpu.memory_space<vmem>>, vector<16x32xf32>
      tpu.vector_store %arg23[%c0_154, %c0_155], %433 {strides = array<i32>} : memref<16x32xf32, #tpu.memory_space<vmem>>, vector<16x32xf32>,
    } else {
    }
    %c1_i32_152 = arith.constant 1 : i32
    %437 = arith.cmpi eq, %arg0, %c1_i32_152 : i32
    %438 = arith.extui %437 : i1 to i32
    %c0_i32_153 = arith.constant 0 : i32
    %439 = arith.cmpi ne, %438, %c0_i32_153 : i32
    scf.if %439 {
      %c0_154 = arith.constant 0 : index
      %c0_155 = arith.constant 0 : index
      %440 = vector.load %arg21[%c0_154, %c0_155] : memref<1x32xf32, #tpu.memory_space<vmem>>, vector<1x32xf32>
      %c0_156 = arith.constant 0 : index
      %c0_157 = arith.constant 0 : index
      %441 = vector.load %arg22[%c0_156, %c0_157] : memref<1x32xf32, #tpu.memory_space<vmem>>, vector<1x32xf32>
      %cst_158 = arith.constant dense<0.000000e+00> : vector<16xf32>
      %442 = vector.multi_reduction <add>, %433, %cst_158 [1] : vector<16x32xf32> to vector<16xf32>
      %443 = vector.shape_cast %442 : vector<16xf32> to vector<16x1xf32>
      %cst_159 = arith.constant 3.200000e+01 : f32
      %444 = vector.broadcast %cst_159 : f32 to vector<16x1xf32>
      %445 = arith.divf %443, %444 : vector<16x1xf32>
      %446 = vector.broadcast %445 : vector<16x1xf32> to vector<16x32xf32>
      %447 = arith.subf %433, %446 : vector<16x32xf32>
      %448 = arith.mulf %447, %447 : vector<16x32xf32>
      %cst_160 = arith.constant dense<0.000000e+00> : vector<16xf32>
      %449 = vector.multi_reduction <add>, %448, %cst_160 [1] : vector<16x32xf32> to vector<16xf32>
      %450 = vector.shape_cast %449 : vector<16xf32> to vector<16x1xf32>
      %cst_161 = arith.constant 3.100000e+01 : f32
      %451 = vector.broadcast %cst_161 : f32 to vector<16x1xf32>
      %452 = arith.divf %450, %451 : vector<16x1xf32>
      %453 = math.sqrt %452 : vector<16x1xf32>
      %454 = vector.broadcast %445 : vector<16x1xf32> to vector<16x32xf32>
      %455 = arith.subf %433, %454 : vector<16x32xf32>
      %456 = vector.broadcast %440 : vector<1x32xf32> to vector<16x32xf32>
      %457 = arith.mulf %456, %455 : vector<16x32xf32>
      %cst_162 = arith.constant 9.99999997E-7 : f32
      %458 = vector.broadcast %cst_162 : f32 to vector<16x1xf32>
      %459 = arith.addf %453, %458 : vector<16x1xf32>
      %460 = vector.broadcast %459 : vector<16x1xf32> to vector<16x32xf32>
      %461 = arith.divf %457, %460 : vector<16x32xf32>
      %462 = vector.broadcast %441 : vector<1x32xf32> to vector<16x32xf32>
      %463 = arith.addf %461, %462 : vector<16x32xf32>
      %c0_163 = arith.constant 0 : index
      %c0_164 = arith.constant 0 : index
      %464 = vector.load %arg23[%c0_163, %c0_164] : memref<16x32xf32, #tpu.memory_space<vmem>>, vector<16x32xf32>
      tpu.vector_store %arg23[%c0_163, %c0_164], %463 {strides = array<i32>} : memref<16x32xf32, #tpu.memory_space<vmem>>, vector<16x32xf32>,
    } else {
    }
    return
  }
  func.func @transform_0(%arg0: i32) -> (i32, i32) {
    %c0_i32 = arith.constant 0 : i32
    %c0_i32_0 = arith.constant 0 : i32
    %c0_i32_1 = arith.constant 0 : i32
    return %c0_i32, %c0_i32_0 : i32, i32
  }
  func.func @transform_1(%arg0: i32) -> (i32, i32) {
    %c0_i32 = arith.constant 0 : i32
    %c0_i32_0 = arith.constant 0 : i32
    %c0_i32_1 = arith.constant 0 : i32
    return %c0_i32, %c0_i32_0 : i32, i32
  }
  func.func @transform_2(%arg0: i32) -> (i32, i32, i32) {
    %c0_i32 = arith.constant 0 : i32
    %c0_i32_0 = arith.constant 0 : i32
    %c0_i32_1 = arith.constant 0 : i32
    %c0_i32_2 = arith.constant 0 : i32
    return %c0_i32, %c0_i32_0, %c0_i32_1 : i32, i32, i32
  }
  func.func @transform_3(%arg0: i32) -> (i32, i32, i32) {
    %c0_i32 = arith.constant 0 : i32
    %c0_i32_0 = arith.constant 0 : i32
    %c0_i32_1 = arith.constant 0 : i32
    %c0_i32_2 = arith.constant 0 : i32
    return %c0_i32, %c0_i32_0, %c0_i32_1 : i32, i32, i32
  }
  func.func @transform_4(%arg0: i32) -> (i32, i32, i32) {
    %c0_i32 = arith.constant 0 : i32
    %c0_i32_0 = arith.constant 0 : i32
    %c0_i32_1 = arith.constant 0 : i32
    return %arg0, %c0_i32, %c0_i32_0 : i32, i32, i32
  }
  func.func @transform_5(%arg0: i32) -> (i32, i32, i32) {
    %c0_i32 = arith.constant 0 : i32
    %c0_i32_0 = arith.constant 0 : i32
    %c0_i32_1 = arith.constant 0 : i32
    return %arg0, %c0_i32, %c0_i32_0 : i32, i32, i32
  }
  func.func @transform_6(%arg0: i32) -> (i32, i32, i32) {
    %c0_i32 = arith.constant 0 : i32
    %c0_i32_0 = arith.constant 0 : i32
    %c0_i32_1 = arith.constant 0 : i32
    return %arg0, %c0_i32, %c0_i32_0 : i32, i32, i32
  }
  func.func @transform_7(%arg0: i32) -> (i32, i32, i32) {
    %c0_i32 = arith.constant 0 : i32
    %c0_i32_0 = arith.constant 0 : i32
    %c0_i32_1 = arith.constant 0 : i32
    return %arg0, %c0_i32, %c0_i32_0 : i32, i32, i32
  }
  func.func @transform_8(%arg0: i32) -> (i32, i32, i32) {
    %c0_i32 = arith.constant 0 : i32
    %c0_i32_0 = arith.constant 0 : i32
    %c0_i32_1 = arith.constant 0 : i32
    return %arg0, %c0_i32, %c0_i32_0 : i32, i32, i32
  }
  func.func @transform_9(%arg0: i32) -> (i32, i32, i32) {
    %c0_i32 = arith.constant 0 : i32
    %c0_i32_0 = arith.constant 0 : i32
    %c0_i32_1 = arith.constant 0 : i32
    return %arg0, %c0_i32, %c0_i32_0 : i32, i32, i32
  }
  func.func @transform_10(%arg0: i32) -> (i32, i32, i32) {
    %c0_i32 = arith.constant 0 : i32
    %c0_i32_0 = arith.constant 0 : i32
    %c0_i32_1 = arith.constant 0 : i32
    return %arg0, %c0_i32, %c0_i32_0 : i32, i32, i32
  }
  func.func @transform_11(%arg0: i32) -> (i32, i32, i32) {
    %c0_i32 = arith.constant 0 : i32
    %c0_i32_0 = arith.constant 0 : i32
    %c0_i32_1 = arith.constant 0 : i32
    return %arg0, %c0_i32, %c0_i32_0 : i32, i32, i32
  }
  func.func @transform_12(%arg0: i32) -> (i32, i32, i32) {
    %c0_i32 = arith.constant 0 : i32
    %c0_i32_0 = arith.constant 0 : i32
    %c0_i32_1 = arith.constant 0 : i32
    return %arg0, %c0_i32, %c0_i32_0 : i32, i32, i32
  }
  func.func @transform_13(%arg0: i32) -> (i32, i32, i32) {
    %c0_i32 = arith.constant 0 : i32
    %c0_i32_0 = arith.constant 0 : i32
    %c0_i32_1 = arith.constant 0 : i32
    return %arg0, %c0_i32, %c0_i32_0 : i32, i32, i32
  }
  func.func @transform_14(%arg0: i32) -> (i32, i32, i32) {
    %c0_i32 = arith.constant 0 : i32
    %c0_i32_0 = arith.constant 0 : i32
    %c0_i32_1 = arith.constant 0 : i32
    return %arg0, %c0_i32, %c0_i32_0 : i32, i32, i32
  }
  func.func @transform_15(%arg0: i32) -> (i32, i32, i32) {
    %c0_i32 = arith.constant 0 : i32
    %c0_i32_0 = arith.constant 0 : i32
    %c0_i32_1 = arith.constant 0 : i32
    return %arg0, %c0_i32, %c0_i32_0 : i32, i32, i32
  }
  func.func @transform_16(%arg0: i32) -> (i32, i32, i32) {
    %c0_i32 = arith.constant 0 : i32
    %c0_i32_0 = arith.constant 0 : i32
    %c0_i32_1 = arith.constant 0 : i32
    return %arg0, %c0_i32, %c0_i32_0 : i32, i32, i32
  }
  func.func @transform_17(%arg0: i32) -> (i32, i32, i32) {
    %c0_i32 = arith.constant 0 : i32
    %c0_i32_0 = arith.constant 0 : i32
    %c0_i32_1 = arith.constant 0 : i32
    return %arg0, %c0_i32, %c0_i32_0 : i32, i32, i32
  }
  func.func @transform_18(%arg0: i32) -> (i32, i32, i32) {
    %c0_i32 = arith.constant 0 : i32
    %c0_i32_0 = arith.constant 0 : i32
    %c0_i32_1 = arith.constant 0 : i32
    return %arg0, %c0_i32, %c0_i32_0 : i32, i32, i32
  }
  func.func @transform_19(%arg0: i32) -> (i32, i32, i32) {
    %c0_i32 = arith.constant 0 : i32
    %c0_i32_0 = arith.constant 0 : i32
    %c0_i32_1 = arith.constant 0 : i32
    return %arg0, %c0_i32, %c0_i32_0 : i32, i32, i32
  }
  func.func @transform_20(%arg0: i32) -> (i32, i32) {
    %c0_i32 = arith.constant 0 : i32
    %c0_i32_0 = arith.constant 0 : i32
    %c0_i32_1 = arith.constant 0 : i32
    return %c0_i32, %c0_i32_0 : i32, i32
  }
  func.func @transform_21(%arg0: i32) -> (i32, i32) {
    %c0_i32 = arith.constant 0 : i32
    %c0_i32_0 = arith.constant 0 : i32
    %c0_i32_1 = arith.constant 0 : i32
    return %c0_i32, %c0_i32_0 : i32, i32
  }
  func.func @transform_22(%arg0: i32) -> (i32, i32) {
    %c0_i32 = arith.constant 0 : i32
    %c0_i32_0 = arith.constant 0 : i32
    %c0_i32_1 = arith.constant 0 : i32
    return %c0_i32, %c0_i32_0 : i32, i32
  }
}

</mosaic_0001>

<bundles_post_ra>
// kernel: tpu_custom_call.1
= control target key start
LH: loop header
LB: loop body
LE: loop exit
PB: predicated region body
PF: predicated region fallthrough
CT: control target
= control target key end

     0   :  { %s7550_s0 = inlined_call_operand.vmem [shape: f32[16,32], index: 0, kind: input, shape index: {}]   ;;  %s7551_s1 = inlined_call_operand.hbm [shape: f32[16,32], index: 1, kind: input, shape index: {}]   ;;  %s7552_s2 = inlined_call_operand.hbm [shape: f32[2,8,8], index: 2, kind: input, shape index: {}]   ;;  %s7553_s3 = inlined_call_operand.hbm [shape: f32[2,1,8], index: 3, kind: input, shape index: {}]   ;;  %s7554_s4 = inlined_call_operand.vmem [shape: f32[2,32,96], index: 4, kind: input, shape index: {}]   ;;  %s7555_s5 = inlined_call_operand.hbm [shape: f32[2,1,96], index: 5, kind: input, shape index: {}]   ;;  %s7556_s6 = inlined_call_operand.vmem [shape: f32[2,32,32], index: 6, kind: input, shape index: {}]   ;;  %s7557_s7 = inlined_call_operand.hbm [shape: f32[2,1,32], index: 7, kind: input, shape index: {}]   ;;  %s7558_s8 = inlined_call_operand.vmem [shape: f32[2,32,32], index: 8, kind: input, shape index: {}]   ;;  %s7559_s9 = inlined_call_operand.hbm [shape: f32[2,1,32], index: 9, kind: input, shape index: {}]   ;;  %s7560_s10 = inlined_call_operand.hbm [shape: f32[2,32,64], index: 10, kind: input, shape index: {}]   ;;  %s7561_s11 = inlined_call_operand.hbm [shape: f32[2,1,64], index: 11, kind: input, shape index: {}]   ;;  %s7562_s12 = inlined_call_operand.hbm [shape: f32[2,32,32], index: 12, kind: input, shape index: {}]   ;;  %s7563_s13 = inlined_call_operand.hbm [shape: f32[2,1,32], index: 13, kind: input, shape index: {}]   ;;  %s7564_s14 = inlined_call_operand.hbm [shape: f32[2,32,64], index: 14, kind: input, shape index: {}]   ;;  %s7565_s15 = inlined_call_operand.hbm [shape: f32[2,1,64], index: 15, kind: input, shape index: {}]   ;;  %s7566_s16 = inlined_call_operand.vmem [shape: f32[2,64,32], index: 16, kind: input, shape index: {}]   ;;  %s7567_s17 = inlined_call_operand.hbm [shape: f32[2,1,32], index: 17, kind: input, shape index: {}]   ;;  %s7568_s18 = inlined_call_operand.vmem [shape: f32[2,3,32], index: 18, kind: input, shape index: {}]   ;;  %s7569_s19 = inlined_call_operand.vmem [shape: f32[2,3,32], index: 19, kind: input, shape index: {}]   ;;  %s7570_s20 = inlined_call_operand.vmem [shape: f32[1,32], index: 20, kind: input, shape index: {}]   ;;  %s7571_s21 = inlined_call_operand.vmem [shape: f32[1,32], index: 21, kind: input, shape index: {}]   ;;  %s7572_s22 = inlined_call_operand.hbm [shape: f32[16,32], index: 22, kind: output, shape index: {}]  }
   0x1   :  { %7608 = sst [smem:[#allocation38_spill]] %s7550_s0 }
   0x2   :  { %7609 = sst [smem:[#allocation39_spill]] %s7551_s1 }
   0x3   :  { %7610 = sst [smem:[#allocation40_spill]] %s7552_s2 }
   0x4   :  { %7611 = sst [smem:[#allocation41_spill]] %s7553_s3 }
   0x5   :  { %7612 = sst [smem:[#allocation42_spill]] %s7554_s4 }
   0x6   :  { %7613 = sst [smem:[#allocation43_spill]] %s7555_s5 }
   0x7   :  { %7614 = sst [smem:[#allocation44_spill]] %s7556_s6 }
   0x8   :  { %7615 = sst [smem:[#allocation45_spill]] %s7557_s7 }
   0x9   :  { %7616 = sst [smem:[#allocation46_spill]] %s7558_s8 }
   0xa   :  { %7617 = sst [smem:[#allocation47_spill]] %s7559_s9 }
   0xb   :  { %7618 = sst [smem:[#allocation48_spill]] %s7560_s10 }
   0xc   :  { %7619 = sst [smem:[#allocation49_spill]] %s7561_s11 }
   0xd   :  { %7620 = sst [smem:[#allocation50_spill]] %s7562_s12 }
   0xe   :  { %7621 = sst [smem:[#allocation51_spill]] %s7563_s13 }
   0xf   :  { %7622 = sst [smem:[#allocation52_spill]] %s7565_s15 }
  0x10   :  { %7623 = sst [smem:[#allocation53_spill]] %s7566_s16 }
  0x11   :  { %7624 = sst [smem:[#allocation54_spill]] %s7568_s18 }
  0x12   :  { %7625 = sst [smem:[#allocation55_spill]] %s7569_s19 }
  0x13   :  { %7626 = sst [smem:[#allocation56_spill]] %s7570_s20 }
  0x14   :  { %7627 = sst [smem:[#allocation57_spill]] %s7571_s21 }
  0x15   :  { %7628 = sst [smem:[#allocation58_spill]] %s7572_s22 }
  0x16   :  { %27 = vsyncpa [#allocation3], 0 }
  0x17   :  { %28 = vsyncpa [#allocation6], 0 }
  0x18   :  { %29 = vsyncpa [#allocation9], 0 }
  0x19   :  { %31 = vsyncpa [#allocation9 + $0x1], 0 }
  0x1a   :  { %32 = vsyncpa [#allocation12], 0 }
  0x1b   :  { %34 = vsyncpa [#allocation12 + $0x1], 0 }
  0x1c   :  { %35 = vsyncpa [#allocation15], 0 }
  0x1d   :  { %37 = vsyncpa [#allocation15 + $0x1], 0 }
  0x1e   :  { %38 = vsyncpa [#allocation18], 0 }
  0x1f   :  { %40 = vsyncpa [#allocation18 + $0x1], 0 }
  0x20   :  { %41 = vsyncpa [#allocation21], 0 }
  0x21   :  { %43 = vsyncpa [#allocation21 + $0x1], 0 }
  0x22   :  { %44 = vsyncpa [#allocation4], 0  ;;  %s6522_s3 = smov 0   ;;  %s6524_s28 = smov 0  }
  0x23   :  { %s6526_s29 = smov 0   ;;  %s6528_s30 = smov 0  }
  0x24 LB: > { %7629 = sst [smem:[#allocation32_spill]] %s6362_s28  ;;  %s6541_s4 = sadd.s32 4294967295, %s6370_s30   ;;  %s6370_s30 = sphi %s6528_s30, %s7705_s30   ;;  %s6366_s29 = sphi %s6526_s29, %s7708_s29   ;;  %s6362_s28 = sphi %s6524_s28, %s7707_s28   ;;  %s6358_s3 = sphi %s6522_s3, %s7706_s3  }
  0x25   : > { %7630 = sst [smem:[#allocation33_spill]] %s6366_s29  ;;  %s6544_s0 = sadd.s32 1, %s6370_s30  }
  0x26   : > { %7631 = sst [smem:[#allocation34_spill]] %s6541_s4  ;;  %s164_s23 = ssub.s32 %s6370_s30, %s6544_s0 }
  0x27   : > { %7632 = sst [smem:[#allocation35_spill]] %s6544_s0  ;;  %s167_s1 = sadd.s32 1, %s6366_s29 }
  0x28   : > { %p165_p0 = scmp.eq.s32.totalorder %s164_s23, 0  ;;  %p174_p1 = scmp.ne.s32.totalorder %s6366_s29, %s6362_s28 }
  0x29   : > { %p175_p2 = scmp.eq.s32.totalorder %s6370_s30, 0  ;;  %p180_p3 = scmp.ne.s32.totalorder %s6362_s28, %s6358_s3 }
  0x2a   : > { %s6554_s5 = scalar_select %p165_p0, %s6366_s29, %s167_s1  }
  0x2b   : > { %p6556_p4 = por %p175_p2, %p174_p1  ;;  %p7582_p5 = scmp.eq.s32.totalorder %s6541_s4, 0 }
  0x2c   : > { %7633 = sst [smem:[#allocation36_spill]] %s6554_s5  ;;  %p5113_p6 = scmp.ge.s32.totalorder %s6370_s30, 1 }
  0x2d   : > { %p618_p7 = scmp.lt.s32.totalorder %s6370_s30, 3  ;;  %p6565_p8 = por %p7582_p5, %p180_p3 }
  0x2e   : > { %s6372_s26 = smov [#allocation5]   ;;  %p5737_p13 = scmp.lt.s32.totalorder %s6370_s30, 2 }
  0x2f   : > { %s7635_s6 = scalar_select %p6565_p8, 1, 0 }
  0x30   : > { %p6570_p10 = pnand %p5113_p6, %p618_p7  ;;  %s646_s2 = sshll.u32 %s6372_s26, 4  ;;  %s647_s2 = int_to_ptr.vmem [resolvable:$true] %s646_s2 }
  0x31   : > { %7636 = sst [smem:[#allocation37_spill]] %s7635_s6  ;;  %s6584_s3 = sand.u32 1, %s6370_s30  }
  0x32   : > { %s7637_s25 = scalar_select %p6570_p10, 1, 0 }
  0x33   : > { %p5693_p11 = pneg %p6570_p10  ;;  %s6587_s23 = sand.u32 1, %s6366_s29  }
  0x34   : > { %p6591_p0 = pnand %p5737_p13, %p6556_p4  ;;  %s7640_s26 = sld [smem:[#allocation40_spill]] }
  0x35   : > { %p6578_p12 = pnand %p5693_p11, %p7582_p5 }
  0x36   : > { %s7639_s1 = scalar_select %p6591_p0, 1, 0 }
  0x37   : > { %s7638_s27 = scalar_select %p6578_p12, 1, 0 }
  0x38   : > { %p6603_p2 = pneg %p6578_p12 }
  0x3a   : > { %s5898_s22 = scalar_lea.hbm %s7640_s26, 256 }
  0x3b   : > { %p5899_p1 = scmp.ne.s32.totalorder %s7640_s26, %s5898_s22  ;;  %p5905_p6 = scmp.lt.u32.totalorder %s5898_s22, %s7640_s26 }
  0x3c   : > { %s7641_s19 = scalar_select %p6603_p2, 1, 0 }
  0x3d   : > { %p5901_p3 = pnand %p6603_p2, %p5899_p1 }
  0x3f   : > { %p5902_p4 = pneg %p5901_p3 }
  0x41   : > { %p5907_p7 = pnand %p5905_p6, %p5902_p4 }
  0x43   : > { %5910 = shalt.err (!%p5907_p7)
}
  0x44   : > { %s5911_s0 = scalar_lea.vmem %s647_s2, 256  ;;  %p5919_p5 = scmp.lt.s32.totalorder %s647_s2, %s647_s2 }
  0x45   : > { %p5912_p11 = scmp.ne.s32.totalorder %s647_s2, %s5911_s0  ;;  %p5920_p8 = scmp.lt.s32.totalorder %s5911_s0, %s5911_s0 }
  0x47   : > { %p5914_p13 = pnand %p5912_p11, %p6603_p2  ;;  %p5921_p10 = por %p5920_p8, %p5919_p5 }
  0x49   : > { %p5915_p9 = pneg %p5914_p13 }
  0x4b   : > { %p5922_p0 = pnand %p5921_p10, %p5915_p9 }
  0x4d   : > { %5925 = shalt.err (!%p5922_p0)
}
  0x4e   : > { %s7592_s20 = smov 128   ;;  %s7598_s21 = smov 8  }
  0x4f   : > { %5699 = dma.hbm_to_vmem [thread:$0]  (!%p6578_p12), %s7640_s26, 256, %s647_s2, [#allocation6], %s7592_s20, %s7592_s20, %s7598_s21  }
  0x50   : > { %s6623_s5 = sshll.u32 %s6370_s30, 4  ;;  %s7642_s18 = sld [smem:[#allocation43_spill]] }
  0x51   : > { %s690_s8 = scalar_lea.vmem [#allocation8], %s6587_s23  ;;  %s7600_s28 = scalar_lea.sflag [#allocation9], %s6584_s3 }
  0x52   : > { %s697_s6 = sshll.u32 %s690_s8, 4  ;;  %p7643_p8 = scmp.ne.s32.totalorder %s7639_s1, 0  ;;  %s6632_s6 = int_to_ptr.vmem [resolvable:$true] %s697_s6 }
  0x54   : > { %p6639_p9 = pneg %p7643_p8 }
  0x56   : > { %s6629_s16 = scalar_lea.hbm %s7642_s18, %s6623_s5  ;;  %s5931_s24 = scalar_lea.hbm %s7642_s18, 32 }
  0x57   : > { %s5926_s4 = scalar_lea.hbm %s6629_s16, 16  ;;  %p5932_p1 = scmp.lt.u32.totalorder %s6629_s16, %s7642_s18 }
  0x58   : > { %p5927_p5 = scmp.ne.s32.totalorder %s6629_s16, %s5926_s4  ;;  %p5933_p3 = scmp.lt.u32.totalorder %s5931_s24, %s5926_s4 }
  0x59   : > { %s7644_s2 = scalar_select %p6639_p9, 1, 0 }
  0x5a   : > { %p5929_p10 = pnand %p6639_p9, %p5927_p5  ;;  %p5934_p4 = por %p5933_p3, %p5932_p1 }
  0x5b   : > { %p5935_p6 = scmp.lt.u32.totalorder %s5926_s4, %s6629_s16 }
  0x5c   : > { %p5930_p0 = pneg %p5929_p10 }
  0x5d   : > { %p5936_p7 = por %p5935_p6, %p5934_p4 }
  0x5f   : > { %p5937_p11 = pnand %p5936_p7, %p5930_p0 }
  0x61   : > { %5940 = shalt.err (!%p5937_p11)
}
  0x62   : > { %s5941_s20 = scalar_lea.vmem %s6632_s6, 16  ;;  %s6375_s22 = smov [#allocation8]  }
  0x63   : > { %p5942_p13 = scmp.ne.s32.totalorder %s6632_s6, %s5941_s20  ;;  %s5946_s29 = sshll.u32 %s6375_s22, 4  ;;  %s5947_s29 = int_to_ptr.vmem [resolvable:$false] %s5946_s29 }
  0x64   : > { %s5948_s0 = scalar_lea.vmem %s5947_s29, 32  ;;  %p5949_p12 = scmp.lt.s32.totalorder %s6632_s6, %s5947_s29 }
  0x65   : > { %p5944_p5 = pnand %p5942_p13, %p6639_p9  ;;  %p5950_p2 = scmp.lt.s32.totalorder %s5948_s0, %s5941_s20 }
  0x67   : > { %p5945_p10 = pneg %p5944_p5  ;;  %p5951_p1 = por %p5950_p2, %p5949_p12 }
  0x69   : > { %p5952_p3 = pnand %p5951_p1, %p5945_p10 }
  0x6b   : > { %5955 = shalt.err (!%p5952_p3)
}
  0x6c   : > { %5706 = dma.hbm_to_vmem [thread:$0]  (!%p7643_p8), %s6629_s16, 16, %s6632_s6, %s7600_s28  }
  0x6d   : > { %s7645_s9 = sld [smem:[#allocation47_spill]]  ;;  %s740_s20 = scalar_lea.vmem [#allocation11], %s6587_s23 }
  0x6e   : > { %s747_s22 = sshll.u32 %s740_s20, 4  ;;  %s748_s22 = int_to_ptr.vmem [resolvable:$true] %s747_s22 }
  0x73   : > { %s6668_s8 = scalar_lea.hbm %s7645_s9, %s6623_s5  ;;  %s5961_s6 = scalar_lea.hbm %s7645_s9, 32 }
  0x74   : > { %s5956_s0 = scalar_lea.hbm %s6668_s8, 16  ;;  %p5962_p4 = scmp.lt.u32.totalorder %s6668_s8, %s7645_s9 }
  0x75   : > { %p5957_p12 = scmp.ne.s32.totalorder %s6668_s8, %s5956_s0  ;;  %p5963_p6 = scmp.lt.u32.totalorder %s5961_s6, %s5956_s0 }
  0x76   : > { %p5965_p11 = scmp.lt.u32.totalorder %s5956_s0, %s6668_s8 }
  0x77   : > { %p5959_p2 = pnand %p5957_p12, %p6639_p9  ;;  %p5964_p7 = por %p5963_p6, %p5962_p4 }
  0x79   : > { %p5960_p0 = pneg %p5959_p2  ;;  %p5966_p13 = por %p5965_p11, %p5964_p7 }
  0x7b   : > { %p5967_p5 = pnand %p5966_p13, %p5960_p0 }
  0x7d   : > { %5970 = shalt.err (!%p5967_p5)
}
  0x7e   : > { %s5971_s20 = scalar_lea.vmem %s748_s22, 16  ;;  %s6376_s28 = smov [#allocation11]  }
  0x7f   : > { %p5972_p10 = scmp.ne.s32.totalorder %s748_s22, %s5971_s20  ;;  %s5976_s29 = sshll.u32 %s6376_s28, 4  ;;  %s5977_s29 = int_to_ptr.vmem [resolvable:$false] %s5976_s29 }
  0x80   : > { %s5978_s21 = scalar_lea.vmem %s5977_s29, 32  ;;  %p5979_p12 = scmp.lt.s32.totalorder %s748_s22, %s5977_s29 }
  0x81   : > { %p5974_p1 = pnand %p5972_p10, %p6639_p9  ;;  %p5980_p2 = scmp.lt.s32.totalorder %s5978_s21, %s5971_s20 }
  0x83   : > { %p5975_p3 = pneg %p5974_p1  ;;  %p5981_p8 = por %p5980_p2, %p5979_p12 }
  0x85   : > { %p5982_p4 = pnand %p5981_p8, %p5975_p3 }
  0x87   : > { %5985 = shalt.err (!%p5982_p4)
}
  0x88   : > { %p7646_p6 = scmp.ne.s32.totalorder %s7639_s1, 0  ;;  %s7647_s0 = scalar_lea.sflag [#allocation12], %s6584_s3 }
  0x89   : > { %s7648_s11 = sld [smem:[#allocation49_spill]]  ;;  %s778_s29 = scalar_lea.vmem [#allocation14], %s6587_s23 }
  0x8a   : > { %5712 = dma.hbm_to_vmem [thread:$0]  (!%p7646_p6), %s6668_s8, 16, %s748_s22, %s7647_s0  }
  0x8b   : > { %s785_s4 = sshll.u32 %s778_s29, 4  ;;  %s786_s4 = int_to_ptr.vmem [resolvable:$true] %s785_s4 }
  0x8f   : > { %s6695_s28 = scalar_lea.hbm %s7648_s11, %s6623_s5  ;;  %s5991_s22 = scalar_lea.hbm %s7648_s11, 32 }
  0x90   : > { %s5986_s20 = scalar_lea.hbm %s6695_s28, 16  ;;  %p5992_p11 = scmp.lt.u32.totalorder %s6695_s28, %s7648_s11 }
  0x91   : > { %p5987_p8 = scmp.ne.s32.totalorder %s6695_s28, %s5986_s20  ;;  %p5993_p13 = scmp.lt.u32.totalorder %s5991_s22, %s5986_s20 }
  0x92   : > { %p5995_p10 = scmp.lt.u32.totalorder %s5986_s20, %s6695_s28 }
  0x93   : > { %p5989_p0 = pnand %p5987_p8, %p6639_p9  ;;  %p5994_p5 = por %p5993_p13, %p5992_p11 }
  0x95   : > { %p5990_p7 = pneg %p5989_p0  ;;  %p5996_p1 = por %p5995_p10, %p5994_p5 }
  0x97   : > { %p5997_p3 = pnand %p5996_p1, %p5990_p7 }
  0x99   : > { %6000 = shalt.err (!%p5997_p3)
}
  0x9a   : > { %s6001_s6 = scalar_lea.vmem %s786_s4, 16  ;;  %s6377_s29 = smov [#allocation14]  }
  0x9b   : > { %p6002_p12 = scmp.ne.s32.totalorder %s786_s4, %s6001_s6  ;;  %s6006_s24 = sshll.u32 %s6377_s29, 4  ;;  %s6007_s24 = int_to_ptr.vmem [resolvable:$false] %s6006_s24 }
  0x9c   : > { %s6008_s21 = scalar_lea.vmem %s6007_s24, 32  ;;  %p6009_p8 = scmp.lt.s32.totalorder %s786_s4, %s6007_s24 }
  0x9d   : > { %p6004_p2 = pnand %p6002_p12, %p6639_p9  ;;  %p6010_p0 = scmp.lt.s32.totalorder %s6008_s21, %s6001_s6 }
  0x9f   : > { %p6005_p4 = pneg %p6004_p2  ;;  %p6011_p6 = por %p6010_p0, %p6009_p8 }
  0xa1   : > { %p6012_p11 = pnand %p6011_p6, %p6005_p4 }
  0xa3   : > { %6015 = shalt.err (!%p6012_p11)
}
  0xa4   : > { %p7649_p13 = scmp.ne.s32.totalorder %s7639_s1, 0  ;;  %s7650_s20 = scalar_lea.sflag [#allocation15], %s6584_s3 }
  0xa5   : > { %s7651_s13 = sld [smem:[#allocation51_spill]]  ;;  %s816_s24 = scalar_lea.vmem [#allocation17], %s6587_s23 }
  0xa6   : > { %5718 = dma.hbm_to_vmem [thread:$0]  (!%p7649_p13), %s6695_s28, 16, %s786_s4, %s7650_s20  }
  0xa7   : > { %s823_s16 = sshll.u32 %s816_s24, 4  ;;  %s824_s16 = int_to_ptr.vmem [resolvable:$true] %s823_s16 }
  0xab   : > { %s6722_s0 = scalar_lea.hbm %s7651_s13, %s6623_s5  ;;  %s6021_s4 = scalar_lea.hbm %s7651_s13, 32 }
  0xac   : > { %s6016_s29 = scalar_lea.hbm %s6722_s0, 16  ;;  %p6022_p10 = scmp.lt.u32.totalorder %s6722_s0, %s7651_s13 }
  0xad   : > { %p6017_p6 = scmp.ne.s32.totalorder %s6722_s0, %s6016_s29  ;;  %p6023_p1 = scmp.lt.u32.totalorder %s6021_s4, %s6016_s29 }
  0xae   : > { %p6025_p12 = scmp.lt.u32.totalorder %s6016_s29, %s6722_s0 }
  0xaf   : > { %p6019_p7 = pnand %p6017_p6, %p6639_p9  ;;  %p6024_p3 = por %p6023_p1, %p6022_p10 }
  0xb1   : > { %p6020_p5 = pneg %p6019_p7  ;;  %p6026_p2 = por %p6025_p12, %p6024_p3 }
  0xb3   : > { %p6027_p4 = pnand %p6026_p2, %p6020_p5 }
  0xb5   : > { %6030 = shalt.err (!%p6027_p4)
}
  0xb6   : > { %s6031_s22 = scalar_lea.vmem %s824_s16, 16  ;;  %s6378_s24 = smov [#allocation17]  }
  0xb7   : > { %p6032_p8 = scmp.ne.s32.totalorder %s824_s16, %s6031_s22  ;;  %s6036_s6 = sshll.u32 %s6378_s24, 4  ;;  %s6037_s6 = int_to_ptr.vmem [resolvable:$false] %s6036_s6 }
  0xb8   : > { %s6038_s21 = scalar_lea.vmem %s6037_s6, 32  ;;  %p6039_p6 = scmp.lt.s32.totalorder %s824_s16, %s6037_s6 }
  0xb9   : > { %p6034_p0 = pnand %p6032_p8, %p6639_p9  ;;  %p6040_p7 = scmp.lt.s32.totalorder %s6038_s21, %s6031_s22 }
  0xbb   : > { %p6035_p11 = pneg %p6034_p0  ;;  %p6041_p13 = por %p6040_p7, %p6039_p6 }
  0xbd   : > { %p6042_p1 = pnand %p6041_p13, %p6035_p11 }
  0xbf   : > { %6045 = shalt.err (!%p6042_p1)
}
  0xc0   : > { %p7652_p10 = scmp.ne.s32.totalorder %s7639_s1, 0  ;;  %s7653_s29 = scalar_lea.sflag [#allocation18], %s6584_s3 }
  0xc1   : > { %s7654_s15 = sld [smem:[#allocation52_spill]]  ;;  %s854_s6 = scalar_lea.vmem [#allocation20], %s6587_s23 }
  0xc2   : > { %5724 = dma.hbm_to_vmem [thread:$0]  (!%p7652_p10), %s6722_s0, 16, %s824_s16, %s7653_s29  }
  0xc3   : > { %s861_s8 = sshll.u32 %s854_s6, 4  ;;  %s862_s8 = int_to_ptr.vmem [resolvable:$true] %s861_s8 }
  0xc7   : > { %s6749_s20 = scalar_lea.hbm %s7654_s15, %s6623_s5  ;;  %s6051_s16 = scalar_lea.hbm %s7654_s15, 32 }
  0xc8   : > { %s6046_s24 = scalar_lea.hbm %s6749_s20, 16  ;;  %p6052_p12 = scmp.lt.u32.totalorder %s6749_s20, %s7654_s15 }
  0xc9   : > { %p6047_p13 = scmp.ne.s32.totalorder %s6749_s20, %s6046_s24  ;;  %p6053_p2 = scmp.lt.u32.totalorder %s6051_s16, %s6046_s24 }
  0xca   : > { %p6055_p8 = scmp.lt.u32.totalorder %s6046_s24, %s6749_s20 }
  0xcb   : > { %p6049_p5 = pnand %p6047_p13, %p6639_p9  ;;  %p6054_p4 = por %p6053_p2, %p6052_p12 }
  0xcd   : > { %p6050_p3 = pneg %p6049_p5  ;;  %p6056_p0 = por %p6055_p8, %p6054_p4 }
  0xcf   : > { %p6057_p11 = pnand %p6056_p0, %p6050_p3 }
  0xd1   : > { %6060 = shalt.err (!%p6057_p11)
}
  0xd2   : > { %s6061_s4 = scalar_lea.vmem %s862_s8, 16  ;;  %s6379_s6 = smov [#allocation20]  }
  0xd3   : > { %p6062_p6 = scmp.ne.s32.totalorder %s862_s8, %s6061_s4  ;;  %s6066_s22 = sshll.u32 %s6379_s6, 4  ;;  %s6067_s22 = int_to_ptr.vmem [resolvable:$false] %s6066_s22 }
  0xd4   : > { %s6068_s21 = scalar_lea.vmem %s6067_s22, 32  ;;  %p6069_p13 = scmp.lt.s32.totalorder %s862_s8, %s6067_s22 }
  0xd5   : > { %p6064_p7 = pnand %p6062_p6, %p6639_p9  ;;  %p6070_p5 = scmp.lt.s32.totalorder %s6068_s21, %s6061_s4 }
  0xd7   : > { %p6065_p1 = pneg %p6064_p7  ;;  %p6071_p10 = por %p6070_p5, %p6069_p13 }
  0xd9   : > { %p6072_p2 = pnand %p6071_p10, %p6065_p1 }
  0xdb   : > { %6075 = shalt.err (!%p6072_p2)
}
  0xdc   : > { %p7655_p12 = scmp.ne.s32.totalorder %s7639_s1, 0  ;;  %s7656_s24 = scalar_lea.sflag [#allocation21], %s6584_s3 }
  0xdd   : > { %s6380_s0 = smov [#allocation2]   ;;  %s6381_s29 = smov [#allocation7]  }
  0xde   : > { %5730 = dma.hbm_to_vmem [thread:$0]  (!%p7655_p12), %s6749_s20, 16, %s862_s8, %s7656_s24  }
  0xdf   : > { %s633_s16 = sshll.u32 %s6380_s0, 4  ;;  %s659_s28 = sshll.u32 %s6381_s29, 4  ;;  %s634_s16 = int_to_ptr.vmem [resolvable:$true] %s633_s16  ;;  %s660_s28 = int_to_ptr.vmem [resolvable:$true] %s659_s28 }
  0xe0   : > { %s7657_s11 = sld [smem:[#allocation39_spill]]  ;;  %p7658_p3 = scmp.ne.s32.totalorder %s7641_s19, 0 }
  0xe6   : > { %s6076_s22 = scalar_lea.hbm %s7657_s11, 256 }
  0xe7   : > { %p6077_p10 = scmp.ne.s32.totalorder %s7657_s11, %s6076_s22  ;;  %p6083_p0 = scmp.lt.u32.totalorder %s6076_s22, %s7657_s11 }
  0xe9   : > { %p6079_p4 = pnand %p6077_p10, %p7658_p3 }
  0xeb   : > { %p6080_p8 = pneg %p6079_p4 }
  0xed   : > { %p6085_p11 = pnand %p6083_p0, %p6080_p8 }
  0xef   : > { %6088 = shalt.err (!%p6085_p11)
}
  0xf0   : > { %s6089_s20 = scalar_lea.vmem %s634_s16, 256  ;;  %p6097_p13 = scmp.lt.s32.totalorder %s634_s16, %s634_s16 }
  0xf1   : > { %p6090_p6 = scmp.ne.s32.totalorder %s634_s16, %s6089_s20  ;;  %p6098_p5 = scmp.lt.s32.totalorder %s6089_s20, %s6089_s20 }
  0xf3   : > { %p6092_p7 = pnand %p6090_p6, %p7658_p3  ;;  %p6099_p2 = por %p6098_p5, %p6097_p13 }
  0xf5   : > { %p6093_p1 = pneg %p6092_p7 }
  0xf7   : > { %p6100_p12 = pnand %p6099_p2, %p6093_p1 }
  0xf9   : > { %6103 = shalt.err (!%p6100_p12)
}
  0xfa   : > { %p7659_p10 = scmp.ne.s32.totalorder %s7638_s27, 0  ;;  %s7660_s9 = smov 8  }
  0xfb   : > { %s7661_s8 = smov 128   ;;  %s7662_s29 = sld [smem:[#allocation41_spill]] }
  0xfc   : > { %5696 = dma.hbm_to_vmem [thread:$0]  (!%p7659_p10), %s7657_s11, 256, %s634_s16, [#allocation3], %s7661_s8, %s7661_s8, %s7660_s9  }
 0x101   : > { %s7663_s6 = smov %s7662_s29  ;;  %s6104_s22 = scalar_lea.hbm %s7662_s29, 32 }
 0x102   : > { %p6105_p4 = scmp.ne.s32.totalorder %s7663_s6, %s6104_s22  ;;  %p6111_p0 = scmp.lt.u32.totalorder %s6104_s22, %s7663_s6 }
 0x104   : > { %p6107_p12 = pnand %p6105_p4, %p7658_p3 }
 0x106   : > { %p6108_p8 = pneg %p6107_p12 }
 0x108   : > { %p6113_p11 = pnand %p6111_p0, %p6108_p8 }
 0x10a   : > { %6116 = shalt.err (!%p6113_p11)
}
 0x10b   : > { %s6117_s13 = scalar_lea.vmem %s660_s28, 32  ;;  %p6125_p13 = scmp.lt.s32.totalorder %s660_s28, %s660_s28 }
 0x10c   : > { %p6118_p6 = scmp.ne.s32.totalorder %s660_s28, %s6117_s13  ;;  %p6126_p5 = scmp.lt.s32.totalorder %s6117_s13, %s6117_s13 }
 0x10e   : > { %p6120_p7 = pnand %p6118_p6, %p7658_p3  ;;  %p6127_p2 = por %p6126_p5, %p6125_p13 }
 0x110   : > { %p6121_p1 = pneg %p6120_p7 }
 0x112   : > { %p6128_p9 = pnand %p6127_p2, %p6121_p1 }
 0x114   : > { %6131 = shalt.err (!%p6128_p9)
}
 0x115   : > { %s6382_s16 = smov 16   ;;  %s6383_s18 = smov 1  }
 0x116   : > { %5702 = dma.hbm_to_vmem [thread:$0]  (!%p7659_p10), %s7663_s6, 32, %s660_s28, [#allocation6], %s6382_s16, %s6382_s16, %s6383_s18  }
 0x117   : > { %s7664_s7 = sld [smem:[#allocation45_spill]]  ;;  %s715_s22 = scalar_lea.vmem [#allocation10], %s6587_s23 }
 0x118   : > { %s722_s4 = sshll.u32 %s715_s22, 4  ;;  %s6819_s21 = sshll.u32 %s6587_s23, 5  ;;  %s723_s4 = int_to_ptr.vmem [resolvable:$true] %s722_s4 }
 0x119   : > { %p7665_p3 = scmp.ne.s32.totalorder %s7644_s2, 0 }
 0x11d   : > { %s6815_s29 = scalar_lea.hbm %s7664_s7, %s6623_s5  ;;  %s6137_s13 = scalar_lea.hbm %s7664_s7, 32 }
 0x11e   : > { %s6132_s20 = scalar_lea.hbm %s6815_s29, 16  ;;  %p6138_p10 = scmp.lt.u32.totalorder %s6815_s29, %s7664_s7 }
 0x11f   : > { %p6133_p9 = scmp.ne.s32.totalorder %s6815_s29, %s6132_s20  ;;  %p6139_p8 = scmp.lt.u32.totalorder %s6137_s13, %s6132_s20 }
 0x120   : > { %p6141_p11 = scmp.lt.u32.totalorder %s6132_s20, %s6815_s29 }
 0x121   : > { %p6135_p4 = pnand %p6133_p9, %p7665_p3  ;;  %p6140_p0 = por %p6139_p8, %p6138_p10 }
 0x123   : > { %p6136_p12 = pneg %p6135_p4  ;;  %p6142_p6 = por %p6141_p11, %p6140_p0 }
 0x125   : > { %p6143_p7 = pnand %p6142_p6, %p6136_p12 }
 0x127   : > { %6146 = shalt.err (!%p6143_p7)
}
 0x128   : > { %s6147_s15 = scalar_lea.vmem %s723_s4, 16  ;;  %s6384_s24 = smov [#allocation10]  }
 0x129   : > { %p6148_p1 = scmp.ne.s32.totalorder %s723_s4, %s6147_s15  ;;  %s6152_s19 = sshll.u32 %s6384_s24, 4  ;;  %s6153_s19 = int_to_ptr.vmem [resolvable:$false] %s6152_s19 }
 0x12a   : > { %s6154_s0 = scalar_lea.vmem %s6153_s19, 32  ;;  %p6155_p2 = scmp.lt.s32.totalorder %s723_s4, %s6153_s19 }
 0x12b   : > { %p6150_p13 = pnand %p6148_p1, %p7665_p3  ;;  %p6156_p9 = scmp.lt.s32.totalorder %s6154_s0, %s6147_s15 }
 0x12d   : > { %p6151_p5 = pneg %p6150_p13  ;;  %p6157_p4 = por %p6156_p9, %p6155_p2 }
 0x12f   : > { %p6158_p8 = pnand %p6157_p4, %p6151_p5 }
 0x131   : > { %6161 = shalt.err (!%p6158_p8)
}
 0x132   : > { %p7666_p10 = scmp.ne.s32.totalorder %s7639_s1, 0  ;;  %s7667_s22 = scalar_lea.sflag [#allocation9], %s6584_s3 }
 0x133   : > { %s6841_s20 = sshll.u32 %s6370_s30, 9  ;;  %s7668_s10 = sld [smem:[#allocation48_spill]] }
 0x134   : > { %5709 = dma.hbm_to_vmem [thread:$0]  (!%p7666_p10), %s6815_s29, 16, %s723_s4, %s7667_s22  }
 0x135   : > { %s758_s16 = scalar_lea.vmem [#allocation13], %s6819_s21 }
 0x136   : > { %s765_s18 = sshll.u32 %s758_s16, 4  ;;  %s6850_s18 = int_to_ptr.vmem [resolvable:$true] %s765_s18 }
 0x139   : > { %s6847_s13 = scalar_lea.hbm %s7668_s10, %s6841_s20  ;;  %s6167_s4 = scalar_lea.hbm %s7668_s10, 1024 }
 0x13a   : > { %s6162_s15 = scalar_lea.hbm %s6847_s13, 512  ;;  %p6168_p6 = scmp.lt.u32.totalorder %s6847_s13, %s7668_s10 }
 0x13b   : > { %p6163_p12 = scmp.ne.s32.totalorder %s6847_s13, %s6162_s15  ;;  %p6169_p7 = scmp.lt.u32.totalorder %s6167_s4, %s6162_s15 }
 0x13c   : > { %p6171_p13 = scmp.lt.u32.totalorder %s6162_s15, %s6847_s13 }
 0x13d   : > { %p6165_p0 = pnand %p6163_p12, %p7665_p3  ;;  %p6170_p1 = por %p6169_p7, %p6168_p6 }
 0x13f   : > { %p6166_p11 = pneg %p6165_p0  ;;  %p6172_p5 = por %p6171_p13, %p6170_p1 }
 0x141   : > { %p6173_p2 = pnand %p6172_p5, %p6166_p11 }
 0x143   : > { %6176 = shalt.err (!%p6173_p2)
}
 0x144   : > { %s6177_s0 = scalar_lea.vmem %s6850_s18, 512  ;;  %s6385_s22 = smov [#allocation13]  }
 0x145   : > { %p6178_p9 = scmp.ne.s32.totalorder %s6850_s18, %s6177_s0  ;;  %s6182_s27 = sshll.u32 %s6385_s22, 4  ;;  %s6183_s27 = int_to_ptr.vmem [resolvable:$false] %s6182_s27 }
 0x146   : > { %s6184_s28 = scalar_lea.vmem %s6183_s27, 1024  ;;  %p6185_p12 = scmp.lt.s32.totalorder %s6850_s18, %s6183_s27 }
 0x147   : > { %p6180_p4 = pnand %p6178_p9, %p7665_p3  ;;  %p6186_p0 = scmp.lt.s32.totalorder %s6184_s28, %s6177_s0 }
 0x149   : > { %p6181_p8 = pneg %p6180_p4  ;;  %p6187_p6 = por %p6186_p0, %p6185_p12 }
 0x14b   : > { %p6188_p7 = pnand %p6187_p6, %p6181_p8 }
 0x14d   : > { %6191 = shalt.err (!%p6188_p7)
}
 0x14e   : > { %s7669_s16 = scalar_lea.sflag [#allocation12], %s6584_s3  ;;  %s7670_s12 = sld [smem:[#allocation50_spill]] }
 0x14f   : > { %5715 = dma.hbm_to_vmem [thread:$0]  (!%p7666_p10), %s6847_s13, 512, %s6850_s18, %s7669_s16, %s7661_s8, %s7661_s8, %s7660_s9  }
 0x150   : > { %s796_s4 = scalar_lea.vmem [#allocation16], %s6819_s21 }
 0x151   : > { %s803_s24 = sshll.u32 %s796_s4, 4  ;;  %s6885_s24 = int_to_ptr.vmem [resolvable:$true] %s803_s24 }
 0x154   : > { %s6882_s29 = scalar_lea.hbm %s7670_s12, %s6841_s20  ;;  %s6197_s18 = scalar_lea.hbm %s7670_s12, 1024 }
 0x155   : > { %s6192_s19 = scalar_lea.hbm %s6882_s29, 512  ;;  %p6198_p5 = scmp.lt.u32.totalorder %s6882_s29, %s7670_s12 }
 0x156   : > { %p6193_p11 = scmp.ne.s32.totalorder %s6882_s29, %s6192_s19  ;;  %p6199_p2 = scmp.lt.u32.totalorder %s6197_s18, %s6192_s19 }
 0x157   : > { %p6201_p4 = scmp.lt.u32.totalorder %s6192_s19, %s6882_s29 }
 0x158   : > { %p6195_p1 = pnand %p6193_p11, %p7665_p3  ;;  %p6200_p9 = por %p6199_p2, %p6198_p5 }
 0x15a   : > { %p6196_p13 = pneg %p6195_p1  ;;  %p6202_p8 = por %p6201_p4, %p6200_p9 }
 0x15c   : > { %p6203_p12 = pnand %p6202_p8, %p6196_p13 }
 0x15e   : > { %6206 = shalt.err (!%p6203_p12)
}
 0x15f   : > { %s6207_s28 = scalar_lea.vmem %s6885_s24, 512  ;;  %s6386_s16 = smov [#allocation16]  }
 0x160   : > { %p6208_p0 = scmp.ne.s32.totalorder %s6885_s24, %s6207_s28  ;;  %s6212_s15 = sshll.u32 %s6386_s16, 4  ;;  %s6213_s15 = int_to_ptr.vmem [resolvable:$false] %s6212_s15 }
 0x161   : > { %s6214_s30 = scalar_lea.vmem %s6213_s15, 1024  ;;  %p6215_p11 = scmp.lt.s32.totalorder %s6885_s24, %s6213_s15 }
 0x162   : > { %p6210_p6 = pnand %p6208_p0, %p7665_p3  ;;  %p6216_p1 = scmp.lt.s32.totalorder %s6214_s30, %s6207_s28 }
 0x164   : > { %p6211_p7 = pneg %p6210_p6  ;;  %p6217_p5 = por %p6216_p1, %p6215_p11 }
 0x166   : > { %p6218_p2 = pnand %p6217_p5, %p6211_p7 }
 0x168   : > { %6221 = shalt.err (!%p6218_p2)
}
 0x169   : > { %s7671_s4 = scalar_lea.sflag [#allocation15], %s6584_s3  ;;  %s6917_s13 = scalar_lea.hbm %s7564_s14, %s6841_s20 }
 0x16a   : > { %5721 = dma.hbm_to_vmem [thread:$0]  (!%p7666_p10), %s6882_s29, 512, %s6885_s24, %s7671_s4, %s7661_s8, %s7661_s8, %s7660_s9  }
 0x16b   : > { %s834_s18 = scalar_lea.vmem [#allocation19], %s6819_s21  ;;  %s6222_s27 = scalar_lea.hbm %s6917_s13, 512 }
 0x16c   : > { %s841_s22 = sshll.u32 %s834_s18, 4  ;;  %p6223_p13 = scmp.ne.s32.totalorder %s6917_s13, %s6222_s27  ;;  %s6920_s22 = int_to_ptr.vmem [resolvable:$true] %s841_s22 }
 0x16d   : > { %s6227_s24 = scalar_lea.hbm %s7564_s14, 1024  ;;  %p6228_p8 = scmp.lt.u32.totalorder %s6917_s13, %s7564_s14 }
 0x16e   : > { %p6225_p9 = pnand %p6223_p13, %p7665_p3  ;;  %p6229_p12 = scmp.lt.u32.totalorder %s6227_s24, %s6222_s27 }
 0x16f   : > { %p6231_p6 = scmp.lt.u32.totalorder %s6222_s27, %s6917_s13 }
 0x170   : > { %p6226_p4 = pneg %p6225_p9  ;;  %p6230_p0 = por %p6229_p12, %p6228_p8 }
 0x172   : > { %p6232_p7 = por %p6231_p6, %p6230_p0 }
 0x174   : > { %p6233_p11 = pnand %p6232_p7, %p6226_p4 }
 0x176   : > { %6236 = shalt.err (!%p6233_p11)
}
 0x177   : > { %s6237_s21 = scalar_lea.vmem %s6920_s22, 512  ;;  %s6387_s15 = smov [#allocation19]  }
 0x178   : > { %p6238_p1 = scmp.ne.s32.totalorder %s6920_s22, %s6237_s21  ;;  %s6242_s30 = sshll.u32 %s6387_s15, 4  ;;  %s6243_s30 = int_to_ptr.vmem [resolvable:$false] %s6242_s30 }
 0x179   : > { %s6244_s4 = scalar_lea.vmem %s6243_s30, 1024  ;;  %p6245_p13 = scmp.lt.s32.totalorder %s6920_s22, %s6243_s30 }
 0x17a   : > { %p6240_p5 = pnand %p6238_p1, %p7665_p3  ;;  %p6246_p9 = scmp.lt.s32.totalorder %s6244_s4, %s6237_s21 }
 0x17c   : > { %p6241_p2 = pneg %p6240_p5  ;;  %p6247_p8 = por %p6246_p9, %p6245_p13 }
 0x17e   : > { %p6248_p12 = pnand %p6247_p8, %p6241_p2 }
 0x180   : > { %6251 = shalt.err (!%p6248_p12)
}
 0x181   : > { %s7672_s19 = scalar_lea.sflag [#allocation18], %s6584_s3  ;;  %s6952_s27 = scalar_lea.hbm %s7567_s17, %s6623_s5 }
 0x182   : > { %5727 = dma.hbm_to_vmem [thread:$0]  (!%p7666_p10), %s6917_s13, 512, %s6920_s22, %s7672_s19, %s7661_s8, %s7661_s8, %s7660_s9  }
 0x183   : > { %s879_s28 = scalar_lea.vmem [#allocation22], %s6587_s23  ;;  %s6252_s24 = scalar_lea.hbm %s6952_s27, 16 }
 0x184   : > { %s886_s29 = sshll.u32 %s879_s28, 4  ;;  %p6253_p4 = scmp.ne.s32.totalorder %s6952_s27, %s6252_s24  ;;  %s887_s29 = int_to_ptr.vmem [resolvable:$true] %s886_s29 }
 0x185   : > { %s6257_s9 = scalar_lea.hbm %s7567_s17, 32  ;;  %p6258_p7 = scmp.lt.u32.totalorder %s6952_s27, %s7567_s17 }
 0x186   : > { %p6255_p0 = pnand %p6253_p4, %p7665_p3  ;;  %p6259_p11 = scmp.lt.u32.totalorder %s6257_s9, %s6252_s24 }
 0x187   : > { %p6261_p5 = scmp.lt.u32.totalorder %s6252_s24, %s6952_s27 }
 0x188   : > { %p6256_p6 = pneg %p6255_p0  ;;  %p6260_p1 = por %p6259_p11, %p6258_p7 }
 0x18a   : > { %p6262_p2 = por %p6261_p5, %p6260_p1 }
 0x18c   : > { %p6263_p13 = pnand %p6262_p2, %p6256_p6 }
 0x18e   : > { %6266 = shalt.err (!%p6263_p13)
}
 0x18f   : > { %s6267_s23 = scalar_lea.vmem %s887_s29, 16  ;;  %s6388_s5 = smov [#allocation22]  }
 0x190   : > { %p6268_p9 = scmp.ne.s32.totalorder %s887_s29, %s6267_s23  ;;  %s6272_s22 = sshll.u32 %s6388_s5, 4  ;;  %s6273_s22 = int_to_ptr.vmem [resolvable:$false] %s6272_s22 }
 0x191   : > { %s6274_s21 = scalar_lea.vmem %s6273_s22, 32  ;;  %p6275_p4 = scmp.lt.s32.totalorder %s887_s29, %s6273_s22 }
 0x192   : > { %p6270_p8 = pnand %p6268_p9, %p7665_p3  ;;  %p6276_p0 = scmp.lt.s32.totalorder %s6274_s21, %s6267_s23 }
 0x194   : > { %p6271_p12 = pneg %p6270_p8  ;;  %p6277_p10 = por %p6276_p0, %p6275_p4 }
 0x196   : > { %p6278_p7 = pnand %p6277_p10, %p6271_p12 }
 0x198   : > { %6281 = shalt.err (!%p6278_p7)
}
 0x199   : > { %p7673_p11 = scmp.ne.s32.totalorder %s7639_s1, 0  ;;  %s7674_s15 = scalar_lea.sflag [#allocation21], %s6584_s3 }
 0x19a   : > { %p7675_p6 = scmp.ne.s32.totalorder %s7637_s25, 0 }
 0x19b   : > { %5733 = dma.hbm_to_vmem [thread:$0]  (!%p7673_p11), %s6952_s27, 16, %s887_s29, %s7674_s15  }
 0x19c   : > { %909 = sbr.rel (%p7675_p6) target bundleno = 5220 (0x1464), region = 108  ;;  %s7676_s2 = sld [smem:[#allocation34_spill]] (!%p7675_p6) }
 0x1a2   : > { %p7677_p3 = scmp.eq.s32.totalorder (!%p7675_p6), %s7676_s2, 0 }
 0x1a4   : > { %6325 = dma.done.wait (%p7677_p3), [#allocation3], 256   ;;  %p7678_p1 = pmov %p7677_p3 }
 0x1a6   : > { %6327 = vsyncadd (%p7678_p1), [#allocation3], 4294967040  ;;  %p7679_p5 = pmov %p7678_p1 }
 0x1a7   : > { %p7680_p10 = pmov %p7678_p1 }
 0x1a8   : > { %6329 = dma.done.wait (%p7679_p5), [#allocation6], 288  }
 0x1a9   : > { %6331 = vsyncadd (%p7680_p10), [#allocation6], 4294967008  ;;  %s7681_s1 = sld [smem:[#allocation32_spill]]  ;;  %s7682_s3 = sld [smem:[#allocation37_spill]] }
 0x1aa   : > { %s923_s30 = sand.u32 1, %s7676_s2  }
 0x1ab   : > { %s924_s25 = scalar_lea.sflag [#allocation9], %s923_s30 }
 0x1af   : > { %s6986_s4 = sand.u32 1, %s7681_s1   ;;  %p7683_p2 = scmp.ne.s32.totalorder %s7682_s3, 0 }
 0x1b1   : > { %6333 = dma.done.wait (%p7683_p2), %s924_s25, 32  }
 0x1b2   : > { %6335 = vsyncadd (%p7683_p2), %s924_s25, 4294967264  ;;  %s940_s18 = scalar_lea.sflag [#allocation12], %s923_s30 }
 0x1b3   : > { %6337 = dma.done.wait (%p7683_p2), %s940_s18, 528  }
 0x1b4   : > { %6339 = vsyncadd (%p7683_p2), %s940_s18, 4294966768  ;;  %s5138_s28 = sshll.u32 %s6986_s4, 5  ;;  %s957_s24 = scalar_lea.sflag [#allocation15], %s923_s30 }
 0x1b5   : > { %s7000_s29 = scalar_lea.vmem [#allocation13], %s5138_s28 }
 0x1b6   : > { %6341 = dma.done.wait (%p7683_p2), %s957_s24, 528  }
 0x1b7   : > { %6343 = vsyncadd (%p7683_p2), %s957_s24, 4294966768  ;;  %s7007_s20 = scalar_lea.vmem [#allocation16], %s5138_s28  ;;  %s974_s9 = scalar_lea.sflag [#allocation18], %s923_s30 }
 0x1b8   : > { %6345 = dma.done.wait (%p7683_p2), %s974_s9, 528  }
 0x1b9   : > { %6347 = vsyncadd (%p7683_p2), %s974_s9, 4294966768  ;;  %s7014_s13 = scalar_lea.vmem [#allocation19], %s5138_s28  ;;  %s991_s23 = scalar_lea.sflag [#allocation21], %s923_s30 }
 0x1ba   : > { %6349 = dma.done.wait (%p7683_p2), %s991_s23, 32  }
 0x1bb   : > { %6351 = vsyncadd (%p7683_p2), %s991_s23, 4294967264  ;;  %p1123_p13 = scmp.lt.s32.totalorder %s7676_s2, 1  ;;  %s7684_s18 = sld [smem:[#allocation42_spill]] }
 0x1bc   : > { %s7685_s9 = sld [smem:[#allocation44_spill]]  ;;  %s7686_s23 = sld [smem:[#allocation46_spill]] }
 0x1bd   : > { %s1124_s22 = scalar_select %p1123_p13, %s7676_s2, 1 }
 0x1be   : > { %s7687_s19 = sld [smem:[#allocation53_spill]]  ;;  %s7688_s25 = sld [smem:[#allocation54_spill]] }
 0x1bf   : > { %s5234_s21 = sshll.u32 %s1124_s22, 5  ;;  %s5237_s15 = sshll.u32 %s1124_s22, 6 }
 0x1c0   : > { %s5149_s7 = sshll.u32 %s1124_s22, 2  ;;  %s7689_s30 = sld [smem:[#allocation55_spill]] }
 0x1c1   : > { %s7026_s24 = scalar_lea.vmem %s7684_s18, %s5234_s21  ;;  %s1001_s12 = scalar_lea.vmem [#allocation22], %s6986_s4 }
 0x1c2   : > { %s7031_s5 = scalar_lea.vmem %s7685_s9, %s5234_s21  ;;  %s7036_s27 = scalar_lea.vmem %s7686_s23, %s5234_s21 }
 0x1c3   : > { %p7690_p9 = scmp.ne.s32.totalorder %s7676_s2, 0 }
 0x1c4   : > { %s7041_s6 = scalar_lea.vmem %s7687_s19, %s5237_s15  ;;  %s7046_s18 = scalar_lea.vmem %s7688_s25, %s5149_s7  ;;  %vm1157_vm0 = vcmask (!%p7690_p9), 261120  }
 0x1c5   : > { %1154 = sbr.rel (%p7690_p9) target bundleno = 461 (0x1cd), region = 164  ;;  %s7691_s0 = sld [smem:[#allocation38_spill]] (!%p7690_p9) }
 0x1c6   : > { %s7051_s9 = scalar_lea.vmem %s7689_s30, %s5149_s7 }
 0x1cb   : > { %v1155_v0 = vld [vmem:[%s7691_s0] sm:$0xff] (!%p7690_p9)  ;;  %v1156_v1 = vld [vmem:[%s7691_s0 + $0x8] sm:$0xff] (!%p7690_p9) }
 0x1cc   : > { %1158 = vst.msk [vmem:[#allocation23] sm:$0xff] %vm1157_vm0, %v1155_v0  ;;  %1159 = vst.msk [vmem:[#allocation23 + $0x8] sm:$0xff] %vm1157_vm0, %v1156_v1 }
 0x1cd PF: > { %vm1166_vm1 = vcmask 261120   ;;  %v1221_v16 = vld [vmem:[%s7026_s24] sm:$0xff]  ;;  %v1222_v17 = vld [vmem:[%s7026_s24 + $0x8] sm:$0xff]  ;;  %v1223_v18 = vld [vmem:[%s7026_s24 + $0x10] sm:$0xff]  ;;  %v1203_v27 = vlaneseq  ;;  %v6389_v53 = vmov 0.0   ;;  %vm6390_vm6 = vmmov 0  }
 0x1ce   : > { %v5593_v19 = vpack.c.bf16 %v1222_v17, %v1221_v16  ;;  %v1224_v20 = vld [vmem:[%s7026_s24 + $0x18] sm:$0xff]  ;;  %v7082_v40 = vld [vmem:[%s7046_s18] sm:$0x7]  ;;  %5369 = vmatprep.subr.mxu0 %v6389_v53  ;;  %5371 = vmatprep.mubr.msk.f32.mxu0 %vm6390_vm6, %v6389_v53  ;;  %s7692_s7 = scalar_lea.vmem [#allocation8], %s6986_s4  ;;  %s6391_s10 = smov 88   ;;  %vm1319_vm7 = vcmask 64512  }
 0x1cf   : > { %v5597_v21 = vpack.c.bf16 %v1224_v20, %v1223_v18  ;;  %v7078_v32 = vshrl.u32 %v1203_v27, 7  ;;  %v7086_v43 = vld [vmem:[%s7051_s9] sm:$0x7]  ;;  %s6392_s11 = smov 96   ;;  %s6393_s2 = smov 112   ;;  %vm1990_vm8 = vcmask 130048  }
 0x1d0   : > { %5594 = vmatprep.subr.bf16.mxu1 %v5593_v19  ;;  %v5152_v54 = vld [vmem:[%s7692_s7] ss:$0 sm:$0xff]  ;;  %s6394_s22 = smov 120   ;;  %s6395_s15 = smov 104   ;;  %vm1992_vm9 = vcmask 195584  }
 0x1d1   : > { %5596 = vmatpush3.bf16.msra.mxu1 %v5593_v19  ;;  %v1205_v38 = vsub.s32 0, %v7078_v32  ;;  %s6396_s24 = smov 80   ;;  %s6397_s3 = smov 72  }
 0x1d2   : > { %5598 = vmatprep.subr.bf16.mxu1 %v5597_v21  ;;  %s6398_s23 = smov 64   ;;  %s6399_s1 = smov 48  }
 0x1d3   : > { %v7062_v2 = vld [vmem:[#allocation23] sm:$0xff]  ;;  %v7064_v3 = vld [vmem:[#allocation23 + $0x8] sm:$0xff]  ;;  %v1206_v42 = vrot.slane %v7082_v40, %v1205_v38  ;;  %v1218_v45 = vrot.slane %v7086_v43, %v1205_v38  ;;  %s6400_s25 = smov 40   ;;  %s6401_s28 = smov 56  }
 0x1d4   : > { %v1167_v4 = vsel %vm1166_vm1, %v7062_v2, 0.0  ;;  %v1170_v5 = vsel %vm1166_vm1, %v7064_v3, 0.0  ;;  %s6402_s30 = smov 8   ;;  %s6403_s8 = smov 16  }
 0x1d5   : > { %1168 = vadd.xlane.f32.xlu0 %v1167_v4  ;;  %5600 = vmatpush3.bf16.msra.mxu1 %v5597_v21  ;;  %s6404_s21 = smov 24  }
 0x1d6   : > { %5359 = vmatprep.subr.mxu1 %v6389_v53 }
 0x1d9   : > { %1171 = vadd.xlane.f32.xlu0 %v1170_v5 }
 0x262   : > { %v1169_v6 = vpop.xlane.xlu0 %1168 }
 0x263   : > { %v1174_v7 = vmul.f32 0.03125, %v1169_v6 }
 0x265   : > { %v1176_v8 = vsub.f32 %v7062_v2, %v1174_v7 }
 0x266   : > { %v1172_v9 = vpop.xlane.xlu0 %1171 }
 0x267   : > { %v1175_v10 = vmul.f32 0.03125, %v1172_v9  ;;  %v1178_v11 = vmul.f32 %v1176_v8, %v1176_v8  ;;  %v1207_v44 = vmul.f32 %v1206_v42, %v1176_v8 }
 0x269   : > { %v1177_v12 = vsub.f32 %v7064_v3, %v1175_v10  ;;  %v1180_v13 = vsel %vm1166_vm1, %v1178_v11, 0.0 }
 0x26a   : > { %1181 = vadd.xlane.f32.xlu1 %v1180_v13  ;;  %v1315_v13 = vld [vmem:[#allocation5] sm:$0xff] }
 0x26b   : > { %v1179_v14 = vmul.f32 %v1177_v12, %v1177_v12  ;;  %v1208_v48 = vmul.f32 %v1206_v42, %v1177_v12 }
 0x26d   : > { %v1183_v15 = vsel %vm1166_vm1, %v1179_v14, 0.0 }
 0x26e   : > { %1184 = vadd.xlane.f32.xlu1 %v1183_v15 }
 0x2f7   : > { %v1182_v22 = vpop.xlane.xlu1 %1181 }
 0x2f8   : > { %v1187_v23 = vmul.f32 0.032258064, %v1182_v22 }
 0x2fa   : > { %5800 = vrsqrt.f32 %v1187_v23  ;;  %vm1191_vm2 = vcmp.eq.f32.partialorder %v1187_v23, inf  ;;  %v1194_v29 = vand.u32 2147483648, %v1187_v23  ;;  %vm1193_vm3 = vcmp.eq.f32.partialorder %v1187_v23, 0.0 }
 0x2fb   : > { %v1185_v24 = vpop.xlane.xlu1 %1184 }
 0x2fc   : > { %v1188_v25 = vmul.f32 0.032258064, %v1185_v24 }
 0x2fe   : > { %5802 = vrsqrt.f32 %v1188_v25  ;;  %vm1198_vm4 = vcmp.eq.f32.partialorder %v1188_v25, inf  ;;  %v1201_v36 = vand.u32 2147483648, %v1188_v25  ;;  %vm1200_vm5 = vcmp.eq.f32.partialorder %v1188_v25, 0.0 }
 0x304   : > { %v5801_v26 = vpop.eup %5800 }
 0x305   : > { %v1190_v28 = vmul.f32 %v5801_v26, %v1187_v23 }
 0x307   : > { %v1192_v30 = vsel %vm1191_vm2, %v1187_v23, %v1190_v28 }
 0x308   : > { %v5803_v31 = vpop.eup %5802  ;;  %v1195_v33 = vsel %vm1193_vm3, %v1194_v29, %v1192_v30  ;;  %v1995_v29 = vld [vmem:[#allocation5 + $0x8] sm:$0xff]  ;;  %vm4616_vm3 = vcmask 523264  }
 0x309   : > { %v1197_v34 = vmul.f32 %v5803_v31, %v1188_v25  ;;  %v1209_v35 = vadd.f32 1e-06, %v1195_v33 }
 0x30b   : > { %v1199_v37 = vsel %vm1198_vm4, %v1188_v25, %v1197_v34  ;;  %5804 = vrcp.f32 %v1209_v35 }
 0x30c   : > { %v1202_v39 = vsel %vm1200_vm5, %v1201_v36, %v1199_v37 }
 0x30d   : > { %v1210_v41 = vadd.f32 1e-06, %v1202_v39 }
 0x30f   : > { %5806 = vrcp.f32 %v1210_v41 }
 0x315   : > { %v5805_v46 = vpop.eup %5804 }
 0x316   : > { %v1212_v47 = vmul.f32 %v5805_v46, %v1207_v44 }
 0x318   : > { %v1219_v49 = vadd.f32 %v1218_v45, %v1212_v47 }
 0x319   : > { %v5807_v50 = vpop.eup %5806 }
 0x31a   : > { %v1214_v51 = vmul.f32 %v5807_v50, %v1208_v48  ;;  %5356 = vmatprep.mubr.msk.f32.mxu1 %vm1166_vm1, %v1219_v49 }
 0x31c   : > { %v1220_v52 = vadd.f32 %v1218_v45, %v1214_v51 }
 0x31e   : > { %5357 = vmatmul.mubr.msk.f32.vlgmr.msra.gmra.mrb[0].mxu1 %vm1166_vm1, %v1220_v52 }
 0x31f   : > { %5361 = vmatprep.mubr.msk.f32.mxu1 %vm6390_vm6, %v6389_v53 }
 0x3f1   : > { %v5358_v55 = vpop.f32.mrb[0].mxu1 }
 0x3f2   : > { %v1304_v56 = vpop.f32.mrb[1].mxu1  ;;  %v7111_v59 = vadd.f32 %v5358_v55, %v5152_v54 }
 0x3f3   : > { %v7099_v57 = vadd.f32 %v5152_v54, %v1304_v56 }
 0x3f4   : > { %v1314_v60 = vmul.f32 0.35355338, %v7111_v59 }
 0x3f5   : > { %1484 = vrot.lane.b32.xlu1 %v7099_v57, %s6391_s10  ;;  %1317 = vrot.lane.b32.xlu0 %v7099_v57, %s6392_s11  ;;  %v1313_v58 = vmul.f32 0.35355338, %v7099_v57 }
 0x3f9   : > { %1647 = vrot.lane.b32.xlu0 %v1313_v58, %s6393_s2  ;;  %1482 = vrot.lane.b32.xlu1 %v1313_v58, %s6394_s22 }
 0x3fd   : > { %1812 = vrot.lane.b32.xlu0 %v1313_v58, %s6395_s15  ;;  %1649 = vrot.lane.b32.xlu1 %v7099_v57, %s6396_s24 }
 0x401   : > { %2163 = vrot.lane.b32.xlu0 %v7111_v59, %s6391_s10  ;;  %1814 = vrot.lane.b32.xlu1 %v7099_v57, %s6397_s3 }
 0x405   : > { %2328 = vrot.lane.b32.xlu0 %v7111_v59, %s6396_s24  ;;  %1997 = vrot.lane.b32.xlu1 %v7111_v59, %s6392_s11 }
 0x409   : > { %2493 = vrot.lane.b32.xlu0 %v7111_v59, %s6397_s3  ;;  %2161 = vrot.lane.b32.xlu1 %v1314_v60, %s6394_s22 }
 0x40d   : > { %2326 = vrot.lane.b32.xlu1 %v1314_v60, %s6393_s2 }
 0x411   : > { %2491 = vrot.lane.b32.xlu1 %v1314_v60, %s6395_s15 }
 0x467   : > { %v1485_v61 = vpop.permute.xlu1 %1484  ;;  %v1318_v62 = vpop.permute.xlu0 %1317 }
 0x468   : > { %5360 = vmatpush3.xpose.msk.msra.mxu1 %vm1319_vm7, %v1318_v62  ;;  %5370 = vmatpush3.xpose.msk.msra.mxu0 %vm1319_vm7, %v1485_v61 }
 0x469   : > { %5379 = vmatprep.subr.mxu0 %v6389_v53  ;;  %5364 = vmatprep.subr.mxu1 %v6389_v53 }
 0x46b   : > { %v1648_v63 = vpop.permute.xlu0 %1647  ;;  %v1483_v0 = vpop.permute.xlu1 %1482  ;;  %5362 = vmatmul.mubr.msk.f32.vlgmr.msra.gmra.mrb[2].mxu1 %vm1319_vm7, %v1313_v58 }
 0x46c   : > { %5372 = vmatmul.mubr.msk.f32.vlgmr.msra.gmra.mrb[0].mxu0 %vm1319_vm7, %v1483_v0  ;;  %5366 = vmatprep.mubr.msk.f32.mxu1 %vm6390_vm6, %v6389_v53 }
 0x46d   : > { %5381 = vmatprep.mubr.msk.f32.mxu0 %vm6390_vm6, %v6389_v53 }
 0x46f   : > { %v1650_v1 = vpop.permute.xlu1 %1649  ;;  %v1813_v4 = vpop.permute.xlu0 %1812 }
 0x470   : > { %5380 = vmatpush3.xpose.msk.msra.mxu0 %vm1319_vm7, %v1650_v1 }
 0x471   : > { %5389 = vmatprep.subr.mxu0 %v6389_v53 }
 0x473   : > { %5382 = vmatmul.mubr.msk.f32.vlgmr.msra.gmra.mrb[2].mxu0 %vm1319_vm7, %v1648_v63  ;;  %v1815_v5 = vpop.permute.xlu1 %1814  ;;  %v2164_v6 = vpop.permute.xlu0 %2163 }
 0x474   : > { %5390 = vmatpush3.xpose.msk.msra.mxu0 %vm1319_vm7, %v1815_v5  ;;  %5391 = vmatprep.mubr.msk.f32.mxu0 %vm6390_vm6, %v6389_v53 }
 0x475   : > { %5399 = vmatprep.subr.mxu0 %v6389_v53 }
 0x477   : > { %5392 = vmatmul.mubr.msk.f32.vlgmr.msra.gmra.mrb[4].mxu0 %vm1319_vm7, %v1813_v4  ;;  %v1998_v7 = vpop.permute.xlu1 %1997  ;;  %v2329_v9 = vpop.permute.xlu0 %2328 }
 0x478   : > { %5400 = vmatpush3.xpose.msk.msra.mxu0 %vm1319_vm7, %v1998_v7  ;;  %5401 = vmatprep.mubr.msk.f32.mxu0 %vm6390_vm6, %v6389_v53 }
 0x479   : > { %5409 = vmatprep.subr.mxu0 %v6389_v53 }
 0x47b   : > { %5402 = vmatmul.mubr.msk.f32.vlgmr.msra.gmra.mrb[6].mxu0 %vm1319_vm7, %v1314_v60  ;;  %v2162_v8 = vpop.permute.xlu1 %2161  ;;  %v2494_v11 = vpop.permute.xlu0 %2493 }
 0x47c   : > { %5410 = vmatpush3.xpose.msk.msra.mxu0 %vm1319_vm7, %v2164_v6  ;;  %5411 = vmatprep.mubr.msk.f32.mxu0 %vm6390_vm6, %v6389_v53 }
 0x47d   : > { %5419 = vmatprep.subr.mxu0 %v6389_v53 }
 0x47f   : > { %5412 = vmatmul.mubr.msk.f32.vlgmr.msra.gmra.mrb[8].mxu0 %vm1319_vm7, %v2162_v8  ;;  %v2327_v10 = vpop.permute.xlu1 %2326 }
 0x480   : > { %5420 = vmatpush3.xpose.msk.msra.mxu0 %vm1319_vm7, %v2329_v9  ;;  %5421 = vmatprep.mubr.msk.f32.mxu0 %vm6390_vm6, %v6389_v53 }
 0x481   : > { %5429 = vmatprep.subr.mxu0 %v6389_v53 }
 0x483   : > { %5422 = vmatmul.mubr.msk.f32.vlgmr.msra.gmra.mrb[10].mxu0 %vm1319_vm7, %v2327_v10  ;;  %v2492_v12 = vpop.permute.xlu1 %2491 }
 0x484   : > { %5430 = vmatpush3.xpose.msk.msra.mxu0 %vm1319_vm7, %v2494_v11  ;;  %5431 = vmatprep.mubr.msk.f32.mxu0 %vm6390_vm6, %v6389_v53 }
 0x487   : > { %5432 = vmatmul.mubr.msk.f32.vlgmr.msra.gmra.mrb[12].mxu0 %vm1319_vm7, %v2492_v12 }
 0x53e   : > { %v1391_v14 = vpop.f32.mrb[2].mxu1 }
 0x53f   : > { %v1392_v15 = vadd.f32 %v1391_v14, %v1315_v13  ;;  %v5363_v16 = vpop.f32.mrb[3].mxu1  ;;  %v1556_v17 = vpop.f32.mrb[0].mxu0 }
 0x540   : > { %v1557_v18 = vadd.f32 %v1556_v17, %v1315_v13  ;;  %v5373_v19 = vpop.f32.mrb[1].mxu0 }
 0x541   : > { %v1395_v20 = vsel %vm1319_vm7, %v1392_v15, -inf }
 0x542   : > { %1396 = vmax.xlane.f32.xlu0 %v1395_v20  ;;  %v1560_v21 = vsel %vm1319_vm7, %v1557_v18, -inf }
 0x543   : > { %1561 = vmax.xlane.f32.xlu1 %v1560_v21 }
 0x546   : > { %v1721_v22 = vpop.f32.mrb[2].mxu0 }
 0x547   : > { %v7166_v23 = vadd.f32 %v1721_v22, %v1315_v13  ;;  %v5383_v24 = vpop.f32.mrb[3].mxu0 }
 0x549   : > { %v1725_v25 = vsel %vm1319_vm7, %v7166_v23, -inf }
 0x54a   : > { %v1886_v26 = vpop.f32.mrb[4].mxu0  ;;  %1726 = vmax.xlane.f32.xlu0 %v1725_v25 }
 0x54b   : > { %v1887_v27 = vadd.f32 %v1886_v26, %v1315_v13  ;;  %v5393_v28 = vpop.f32.mrb[5].mxu0 }
 0x54d   : > { %v1890_v30 = vsel %vm1319_vm7, %v1887_v27, -inf }
 0x54e   : > { %v2070_v31 = vpop.f32.mrb[6].mxu0  ;;  %1891 = vmax.xlane.f32.xlu0 %v1890_v30 }
 0x54f   : > { %v2071_v33 = vadd.f32 %v2070_v31, %v1995_v29  ;;  %v5403_v34 = vpop.f32.mrb[7].mxu0 }
 0x551   : > { %v2074_v35 = vsel %vm1319_vm7, %v2071_v33, -inf }
 0x552   : > { %v2235_v36 = vpop.f32.mrb[8].mxu0  ;;  %2075 = vmax.xlane.f32.xlu0 %v2074_v35 }
 0x553   : > { %v2236_v37 = vadd.f32 %v2235_v36, %v1995_v29  ;;  %v5413_v38 = vpop.f32.mrb[9].mxu0 }
 0x555   : > { %v2239_v39 = vsel %vm1319_vm7, %v2236_v37, -inf }
 0x556   : > { %2240 = vmax.xlane.f32.xlu1 %v2239_v39  ;;  %v2400_v41 = vpop.f32.mrb[10].mxu0 }
 0x557   : > { %v2401_v42 = vadd.f32 %v2400_v41, %v1995_v29  ;;  %v5423_v44 = vpop.f32.mrb[11].mxu0 }
 0x559   : > { %v2404_v45 = vsel %vm1319_vm7, %v2401_v42, -inf }
 0x55a   : > { %v2565_v46 = vpop.f32.mrb[12].mxu0  ;;  %2405 = vmax.xlane.f32.xlu0 %v2404_v45 }
 0x55b   : > { %v5433_v47 = vpop.f32.mrb[13].mxu0  ;;  %v2566_v48 = vadd.f32 %v2565_v46, %v1995_v29 }
 0x55d   : > { %v2569_v49 = vsel %vm1319_vm7, %v2566_v48, -inf }
 0x567   : > { %1406 = vrot.lane.b32.xlu1 %v7099_v57, %s6398_s23 }
 0x58b   : > { %2570 = vmax.xlane.f32.xlu1 %v2569_v49 }
 0x59c   : > { %1736 = vrot.lane.b32.xlu1 %v7099_v57, %s6399_s1 }
 0x5a0   : > { %1901 = vrot.lane.b32.xlu1 %v7099_v57, %s6400_s25 }
 0x5a4   : > { %2085 = vrot.lane.b32.xlu1 %v7111_v59, %s6398_s23 }
 0x5cf   : > { %v1397_v50 = vpop.xlane.xlu0 %1396 }
 0x5d0   : > { %v1398_v51 = vsub.f32 %v1392_v15, %v1397_v50  ;;  %v1562_v52 = vpop.xlane.xlu1 %1561 }
 0x5d1   : > { %v1563_v54 = vsub.f32 %v1557_v18, %v1562_v52 }
 0x5d2   : > { %v1399_v55 = vmul.f32 1.442695, %v1398_v51 }
 0x5d3   : > { %v1564_v56 = vmul.f32 1.442695, %v1563_v54 }
 0x5d4   : > { %5808 = vpow2.f32 %v1399_v55 }
 0x5d5   : > { %5810 = vpow2.f32 %v1564_v56 }
 0x5d7   : > { %v1727_v58 = vpop.xlane.xlu0 %1726 }
 0x5d8   : > { %v1728_v9 = vsub.f32 %v7166_v23, %v1727_v58 }
 0x5da   : > { %v1729_v11 = vmul.f32 1.442695, %v1728_v9  ;;  %v2671_v9 = vld [vmem:[%s7031_s5] sm:$0xff] }
 0x5db   : > { %v1892_v60 = vpop.xlane.xlu0 %1891 }
 0x5dc   : > { %v1893_v61 = vsub.f32 %v1887_v27, %v1892_v60 }
 0x5de   : > { %v5809_v62 = vpop.eup %5808  ;;  %v1894_v63 = vmul.f32 1.442695, %v1893_v61 }
 0x5df   : > { %v7181_v0 = vpop.eup %5810  ;;  %v1401_v1 = vsel %vm1319_vm7, %v5809_v62, 0.0  ;;  %v2076_v10 = vpop.xlane.xlu0 %2075 }
 0x5e0   : > { %5812 = vpow2.f32 %v1894_v63  ;;  %1402 = vadd.xlane.f32.xlu0 %v1401_v1  ;;  %v1566_v4 = vsel %vm1319_vm7, %v7181_v0, 0.0  ;;  %v2077_v12 = vsub.f32 %v2071_v33, %v2076_v10  ;;  %v2672_v10 = vld [vmem:[%s7031_s5 + $0x8] sm:$0xff] }
 0x5e1   : > { %1567 = vadd.xlane.f32.xlu1 %v1566_v4  ;;  %5814 = vpow2.f32 %v1729_v11 }
 0x5e2   : > { %v2078_v14 = vmul.f32 1.442695, %v2077_v12  ;;  %v5601_v12 = vpack.c.bf16 %v2672_v10, %v2671_v9  ;;  %v2822_v10 = vld [vmem:[%s7036_s27 + $0x18] sm:$0xff] }
 0x5e3   : > { %v2241_v5 = vpop.xlane.xlu1 %2240 }
 0x5e4   : > { %5816 = vpow2.f32 %v2078_v14  ;;  %v2242_v16 = vsub.f32 %v2236_v37, %v2241_v5  ;;  %5602 = vmatprep.subr.bf16.mxu0 %v5601_v12  ;;  %v2673_v14 = vld [vmem:[%s7031_s5 + $0x10] sm:$0xff] }
 0x5e5   : > { %5604 = vmatpush3.bf16.msra.mxu0 %v5601_v12 }
 0x5e6   : > { %v2243_v18 = vmul.f32 1.442695, %v2242_v16 }
 0x5e7   : > { %v1407_v6 = vpop.permute.xlu1 %1406  ;;  %v2406_v13 = vpop.xlane.xlu0 %2405 }
 0x5e8   : > { %5365 = vmatpush3.msra.mxu1 %v1407_v6  ;;  %v2407_v15 = vsub.f32 %v2401_v42, %v2406_v13 }
 0x5e9   : > { %5374 = vmatprep.subr.mxu1 %v6389_v53 }
 0x5ea   : > { %v7187_v7 = vpop.eup %5812  ;;  %v2408_v17 = vmul.f32 1.442695, %v2407_v15  ;;  %v2674_v15 = vld [vmem:[%s7031_s5 + $0x18] sm:$0xff]  ;;  %s7693_s5 = scalar_lea.vmem [#allocation10], %s6986_s4 }
 0x5eb   : > { %v1896_v8 = vsel %vm1319_vm7, %v7187_v7, 0.0  ;;  %v5815_v19 = vpop.eup %5814 }
 0x5ec   : > { %1897 = vadd.xlane.f32.xlu1 %v1896_v8  ;;  %5818 = vpow2.f32 %v2408_v17  ;;  %v5605_v17 = vpack.c.bf16 %v2674_v15, %v2673_v14 }
 0x5ed   : > { %5820 = vpow2.f32 %v2243_v18 }
 0x5ee   : > { %v5817_v20 = vpop.eup %5816  ;;  %5606 = vmatprep.subr.bf16.mxu0 %v5605_v17 }
 0x5ef   : > { %v2080_v22 = vsel %vm1319_vm7, %v5817_v20, 0.0  ;;  %5608 = vmatpush3.bf16.msra.mxu0 %v5605_v17 }
 0x5f6   : > { %1571 = vrot.lane.b32.xlu0 %v7099_v57, %s6401_s28  ;;  %v1731_v57 = vsel %vm1319_vm7, %v5815_v19, 0.0  ;;  %v7196_v23 = vpop.eup %5818 }
 0x5f7   : > { %v2410_v26 = vsel %vm1319_vm7, %v7196_v23, 0.0  ;;  %v5821_v27 = vpop.eup %5820 }
 0x5f8   : > { %v2245_v28 = vsel %vm1319_vm7, %v5821_v27, 0.0 }
 0x5fd   : > { %2250 = vrot.lane.b32.xlu1 %v7111_v59, %s6401_s28 }
 0x615   : > { %1732 = vadd.xlane.f32.xlu0 %v1731_v57 }
 0x618   : > { %v2571_v21 = vpop.xlane.xlu1 %2570 }
 0x619   : > { %v2572_v24 = vsub.f32 %v2566_v48, %v2571_v21  ;;  %2081 = vadd.xlane.f32.xlu0 %v2080_v22 }
 0x61b   : > { %v2573_v25 = vmul.f32 1.442695, %v2572_v24 }
 0x61c   : > { %v1737_v31 = vpop.permute.xlu1 %1736 }
 0x61d   : > { %5822 = vpow2.f32 %v2573_v25  ;;  %2411 = vadd.xlane.f32.xlu0 %v2410_v26 }
 0x620   : > { %v1902_v33 = vpop.permute.xlu1 %1901 }
 0x621   : > { %2246 = vadd.xlane.f32.xlu1 %v2245_v28 }
 0x624   : > { %v2086_v34 = vpop.permute.xlu1 %2085 }
 0x627   : > { %v7201_v29 = vpop.eup %5822 }
 0x628   : > { %v2575_v30 = vsel %vm1319_vm7, %v7201_v29, 0.0 }
 0x629   : > { %2576 = vadd.xlane.f32.xlu0 %v2575_v30 }
 0x632   : > { %2580 = vrot.lane.b32.xlu1 %v7111_v59, %s6400_s25 }
 0x63f   : > { %2415 = vrot.lane.b32.xlu0 %v7111_v59, %s6399_s1 }
 0x66d   : > { %v1403_v35 = vpop.xlane.xlu0 %1402 }
 0x66e   : > { %5824 = vrcp.f32 %v1403_v35  ;;  %v1568_v36 = vpop.xlane.xlu1 %1567 }
 0x66f   : > { %5826 = vrcp.f32 %v1568_v36 }
 0x671   : > { %v1572_v41 = vpop.permute.xlu0 %1571 }
 0x678   : > { %v5825_v37 = vpop.eup %5824 }
 0x679   : > { %v1405_v38 = vmul.f32 %v5825_v37, %v5809_v62  ;;  %v5827_v39 = vpop.eup %5826  ;;  %v1898_v59 = vpop.xlane.xlu1 %1897 }
 0x67a   : > { %v1570_v42 = vmul.f32 %v5827_v39, %v7181_v0 }
 0x67b   : > { %5367 = vmatmul.mubr.msk.f32.vlgmr.msra.gmra.mrb[4].mxu1 %vm1319_vm7, %v1405_v38 }
 0x67c   : > { %5375 = vmatpush3.msra.mxu1 %v1572_v41  ;;  %5376 = vmatprep.mubr.msk.f32.mxu1 %vm6390_vm6, %v6389_v53  ;;  %v5181_v41 = vld [vmem:[%s7693_s5] ss:$0 sm:$0xff] }
 0x67d   : > { %5384 = vmatprep.subr.mxu1 %v6389_v53  ;;  %v2251_v46 = vpop.permute.xlu1 %2250 }
 0x67f   : > { %5377 = vmatmul.mubr.msk.f32.vlgmr.msra.gmra.mrb[6].mxu1 %vm1319_vm7, %v1570_v42 }
 0x680   : > { %5385 = vmatpush3.msra.mxu1 %v1737_v31  ;;  %5386 = vmatprep.mubr.msk.f32.mxu1 %vm6390_vm6, %v6389_v53 }
 0x681   : > { %5394 = vmatprep.subr.mxu1 %v6389_v53 }
 0x6a2   : > { %v1733_v44 = vpop.xlane.xlu0 %1732 }
 0x6a3   : > { %5828 = vrcp.f32 %v1733_v44 }
 0x6a4   : > { %5830 = vrcp.f32 %v1898_v59 }
 0x6a6   : > { %v2082_v45 = vpop.xlane.xlu0 %2081 }
 0x6a7   : > { %5832 = vrcp.f32 %v2082_v45 }
 0x6aa   : > { %v2412_v49 = vpop.xlane.xlu0 %2411 }
 0x6ad   : > { %v5829_v47 = vpop.eup %5828 }
 0x6ae   : > { %v1735_v48 = vmul.f32 %v5829_v47, %v5815_v19  ;;  %v2247_v50 = vpop.xlane.xlu1 %2246  ;;  %v5831_v51 = vpop.eup %5830 }
 0x6af   : > { %5834 = vrcp.f32 %v2247_v50  ;;  %v1900_v52 = vmul.f32 %v5831_v51, %v7187_v7 }
 0x6b0   : > { %5387 = vmatmul.mubr.msk.f32.vlgmr.msra.gmra.mrb[8].mxu1 %vm1319_vm7, %v1735_v48  ;;  %5836 = vrcp.f32 %v2412_v49 }
 0x6b1   : > { %5395 = vmatpush3.msra.mxu1 %v1902_v33  ;;  %5396 = vmatprep.mubr.msk.f32.mxu1 %vm6390_vm6, %v6389_v53  ;;  %v5833_v54 = vpop.eup %5832 }
 0x6b2   : > { %5404 = vmatprep.subr.mxu1 %v6389_v53  ;;  %v2084_v55 = vmul.f32 %v5833_v54, %v5817_v20  ;;  %v2581_v0 = vpop.permute.xlu1 %2580 }
 0x6b4   : > { %5397 = vmatmul.mubr.msk.f32.vlgmr.msra.gmra.mrb[10].mxu1 %vm1319_vm7, %v1900_v52 }
 0x6b5   : > { %5405 = vmatpush3.msra.mxu1 %v2086_v34  ;;  %5406 = vmatprep.mubr.msk.f32.mxu1 %vm6390_vm6, %v6389_v53 }
 0x6b6   : > { %v2577_v56 = vpop.xlane.xlu0 %2576  ;;  %5414 = vmatprep.subr.mxu1 %v6389_v53 }
 0x6b7   : > { %5838 = vrcp.f32 %v2577_v56 }
 0x6b8   : > { %5407 = vmatmul.mubr.msk.f32.vlgmr.msra.gmra.mrb[12].mxu1 %vm1319_vm7, %v2084_v55 }
 0x6b9   : > { %v5835_v58 = vpop.eup %5834  ;;  %5415 = vmatpush3.msra.mxu1 %v2251_v46  ;;  %5416 = vmatprep.mubr.msk.f32.mxu1 %vm6390_vm6, %v6389_v53 }
 0x6ba   : > { %v2249_v60 = vmul.f32 %v5835_v58, %v5821_v27  ;;  %v2416_v61 = vpop.permute.xlu0 %2415  ;;  %5424 = vmatprep.subr.mxu1 %v6389_v53  ;;  %v5837_v62 = vpop.eup %5836 }
 0x6bb   : > { %v2414_v63 = vmul.f32 %v5837_v62, %v7196_v23 }
 0x6bc   : > { %5417 = vmatmul.mubr.msk.f32.vlgmr.msra.gmra.mrb[14].mxu1 %vm1319_vm7, %v2249_v60  ;;  %v2913_v60 = vld [vmem:[%s7000_s29] sm:$0xff] }
 0x6bd   : > { %5425 = vmatpush3.msra.mxu1 %v2416_v61  ;;  %5426 = vmatprep.mubr.msk.f32.mxu1 %vm6390_vm6, %v6389_v53  ;;  %v2914_v61 = vld [vmem:[%s7000_s29 + $0x8] sm:$0xff] }
 0x6be   : > { %5434 = vmatprep.subr.mxu1 %v6389_v53  ;;  %v5617_v62 = vpack.c.bf16 %v2914_v61, %v2913_v60 }
 0x6c0   : > { %5427 = vmatmul.mubr.msk.f32.vlgmr.msra.gmra.mrb[16].mxu1 %vm1319_vm7, %v2414_v63  ;;  %5618 = vmatprep.subr.bf16.mxu0 %v5617_v62  ;;  %v2915_v63 = vld [vmem:[%s7000_s29 + $0x10] sm:$0xff] }
 0x6c1   : > { %v5839_v1 = vpop.eup %5838  ;;  %5435 = vmatpush3.msra.mxu1 %v2581_v0  ;;  %5436 = vmatprep.mubr.msk.f32.mxu1 %vm6390_vm6, %v6389_v53  ;;  %v2916_v0 = vld [vmem:[%s7000_s29 + $0x18] sm:$0xff]  ;;  %s7695_s29 = scalar_lea.vmem [#allocation11], %s6986_s4 }
 0x6c2   : > { %v2579_v4 = vmul.f32 %v5839_v1, %v7201_v29  ;;  %v5621_v1 = vpack.c.bf16 %v2916_v0, %v2915_v63 }
 0x6c4   : > { %5437 = vmatmul.mubr.msk.f32.vlgmr.msra.gmra.mrb[18].mxu1 %vm1319_vm7, %v2579_v4  ;;  %v1162_v4 = vld [vmem:[#allocation2] sm:$0xff] }
 0x74e   : > { %v1478_v5 = vpop.f32.mrb[4].mxu1 }
 0x74f   : > { %v5368_v6 = vpop.f32.mrb[5].mxu1 }
 0x750   : > { %v2819_v6 = vld [vmem:[%s7036_s27] sm:$0xff] }
 0x752   : > { %v1643_v7 = vpop.f32.mrb[6].mxu1 }
 0x753   : > { %1978 = vrot.lane.b32.xlu0 %v1643_v7, %s6402_s30  ;;  %v5378_v8 = vpop.f32.mrb[7].mxu1  ;;  %v2820_v7 = vld [vmem:[%s7036_s27 + $0x8] sm:$0xff] }
 0x754   : > { %v2821_v8 = vld [vmem:[%s7036_s27 + $0x10] sm:$0xff]  ;;  %v5609_v9 = vpack.c.bf16 %v2820_v7, %v2819_v6  ;;  %s7694_s27 = scalar_lea.vmem [#allocation14], %s6986_s4 }
 0x756   : > { %5610 = vmatprep.subr.bf16.mxu1 %v5609_v9 }
 0x757   : > { %5612 = vmatpush3.bf16.msra.mxu1 %v5609_v9 }
 0x783   : > { %v1808_v11 = vpop.f32.mrb[8].mxu1 }
 0x784   : > { %1982 = vrot.lane.b32.xlu1 %v1808_v11, %s6403_s8  ;;  %v5388_v13 = vpop.f32.mrb[9].mxu1  ;;  %v5613_v11 = vpack.c.bf16 %v2822_v10, %v2821_v8 }
 0x786   : > { %5614 = vmatprep.subr.bf16.mxu1 %v5613_v11 }
 0x787   : > { %v1973_v16 = vpop.f32.mrb[10].mxu1  ;;  %5616 = vmatpush3.bf16.msra.mxu1 %v5613_v11 }
 0x788   : > { %1986 = vrot.lane.b32.xlu1 %v1973_v16, %s6404_s21  ;;  %v5398_v18 = vpop.f32.mrb[11].mxu1  ;;  %5472 = vmatprep.subr.mxu1 %v6389_v53 }
 0x78b   : > { %v2157_v19 = vpop.f32.mrb[12].mxu1 }
 0x78c   : > { %v5408_v57 = vpop.f32.mrb[13].mxu1 }
 0x78f   : > { %v2322_v20 = vpop.f32.mrb[14].mxu1 }
 0x790   : > { %2657 = vrot.lane.b32.xlu0 %v2322_v20, %s6402_s30  ;;  %v5418_v21 = vpop.f32.mrb[15].mxu1 }
 0x793   : > { %v2487_v22 = vpop.f32.mrb[16].mxu1 }
 0x794   : > { %2661 = vrot.lane.b32.xlu0 %v2487_v22, %s6403_s8  ;;  %v5428_v23 = vpop.f32.mrb[17].mxu1 }
 0x797   : > { %v2652_v24 = vpop.f32.mrb[18].mxu1 }
 0x798   : > { %2665 = vrot.lane.b32.xlu1 %v2652_v24, %s6404_s21  ;;  %v5438_v25 = vpop.f32.mrb[19].mxu1 }
 0x799   : > { %v2803_v25 = vsub.s32 1, %v7078_v32 }
 0x7c5   : > { %v1979_v26 = vpop.permute.xlu0 %1978 }
 0x7c6   : > { %v1989_v28 = vsel %vm1319_vm7, %v1478_v5, %v1979_v26  ;;  %v1163_v5 = vld [vmem:[#allocation2 + $0x8] sm:$0xff] }
 0x7f6   : > { %v1983_v27 = vpop.permute.xlu1 %1982 }
 0x7f7   : > { %v1991_v29 = vsel %vm1990_vm8, %v1989_v28, %v1983_v27  ;;  %v2804_v28 = vrot.slane %v7082_v40, %v2803_v25  ;;  %v5185_v40 = vld [vmem:[%s7694_s27] ss:$0 sm:$0xff] }
 0x7fa   : > { %v1987_v30 = vpop.permute.xlu1 %1986 }
 0x7fb   : > { %v1993_v31 = vsel %vm1992_vm9, %v1991_v29, %v1987_v30  ;;  %v2816_v29 = vrot.slane %v7086_v43, %v2803_v25 }
 0x7fc   : > { %5447 = vmatprep.mubr.msk.f32.mxu0 %vm1166_vm1, %v1993_v31 }
 0x802   : > { %v2658_v33 = vpop.permute.xlu0 %2657 }
 0x803   : > { %v2668_v35 = vsel %vm1319_vm7, %v2157_v19, %v2658_v33 }
 0x806   : > { %v2662_v34 = vpop.permute.xlu0 %2661 }
 0x807   : > { %v2669_v36 = vsel %vm1990_vm8, %v2668_v35, %v2662_v34 }
 0x80a   : > { %v2666_v37 = vpop.permute.xlu1 %2665 }
 0x80b   : > { %v2670_v38 = vsel %vm1992_vm9, %v2669_v36, %v2666_v37 }
 0x80c   : > { %5448 = vmatmul.mubr.msk.f32.vlgmr.msra.gmra.mrb[14].mxu0 %vm1166_vm1, %v2670_v38 }
 0x80d   : > { %5620 = vmatpush3.bf16.msra.mxu0 %v5617_v62  ;;  %5469 = vmatprep.mubr.msk.f32.mxu0 %vm1166_vm1, %v1162_v4 }
 0x80e   : > { %5622 = vmatprep.subr.bf16.mxu0 %v5621_v1 }
 0x811   : > { %5624 = vmatpush3.bf16.msra.mxu0 %v5621_v1  ;;  %v5188_v1 = vld [vmem:[#allocation7] ss:$0 sm:$0xff] }
 0x812   : > { %5482 = vmatprep.subr.mxu0 %v6389_v53 }
 0x814   : > { %5470 = vmatmul.mubr.msk.f32.vlgmr.msra.gmra.mrb[16].mxu0 %vm1166_vm1, %v1163_v5 }
 0x815   : > { %5484 = vmatprep.mubr.msk.f32.mxu0 %vm6390_vm6, %v6389_v53 }
 0x8df   : > { %v5449_v39 = vpop.f32.mrb[14].mxu0 }
 0x8e0   : > { %v2757_v42 = vadd.f32 %v5449_v39, %v7064_v3  ;;  %v2747_v59 = vpop.f32.mrb[15].mxu0 }
 0x8e1   : > { %v2756_v44 = vadd.f32 %v2747_v59, %v7062_v2 }
 0x8e2   : > { %v7263_v45 = vadd.f32 %v5181_v41, %v2757_v42 }
 0x8e3   : > { %v7265_v46 = vadd.f32 %v5181_v41, %v2756_v44  ;;  %v5182_v44 = vld [vmem:[%s7695_s29] ss:$0 sm:$0xff] }
 0x8e4   : > { %v2770_v47 = vsel %vm1166_vm1, %v7263_v45, 0.0 }
 0x8e5   : > { %2771 = vadd.xlane.f32.xlu1 %v2770_v47  ;;  %v2767_v48 = vsel %vm1166_vm1, %v7265_v46, 0.0 }
 0x8e6   : > { %2768 = vadd.xlane.f32.xlu0 %v2767_v48 }
 0x8e7   : > { %v5471_v43 = vpop.f32.mrb[16].mxu0 }
 0x8e8   : > { %v2996_v39 = vpop.f32.mrb[17].mxu0  ;;  %v7312_v42 = vadd.f32 %v5471_v43, %v5185_v40 }
 0x8e9   : > { %v7303_v41 = vadd.f32 %v5185_v40, %v2996_v39 }
 0x8f6   : > { %3342 = vrot.lane.b32.xlu1 %v7303_v41, %s6393_s2 }
 0x972   : > { %v2772_v49 = vpop.xlane.xlu1 %2771 }
 0x973   : > { %v2774_v50 = vmul.f32 0.03125, %v2772_v49  ;;  %v2769_v3 = vpop.xlane.xlu0 %2768 }
 0x974   : > { %v2773_v2 = vmul.f32 0.03125, %v2769_v3 }
 0x975   : > { %v7272_v51 = vsub.f32 %v7263_v45, %v2774_v50 }
 0x976   : > { %v2775_v52 = vsub.f32 %v7265_v46, %v2773_v2 }
 0x977   : > { %v2778_v56 = vmul.f32 %v7272_v51, %v7272_v51  ;;  %v2806_v34 = vmul.f32 %v2804_v28, %v7272_v51  ;;  %v3343_v51 = vpop.permute.xlu1 %3342 }
 0x978   : > { %v2777_v54 = vmul.f32 %v2775_v52, %v2775_v52  ;;  %v2805_v30 = vmul.f32 %v2804_v28, %v2775_v52 }
 0x979   : > { %v2782_v58 = vsel %vm1166_vm1, %v2778_v56, 0.0 }
 0x97a   : > { %v2779_v55 = vsel %vm1166_vm1, %v2777_v54, 0.0 }
 0x97b   : > { %2780 = vadd.xlane.f32.xlu0 %v2779_v55 }
 0x97f   : > { %2783 = vadd.xlane.f32.xlu0 %v2782_v58 }
 0x995   : > { %3177 = vrot.lane.b32.xlu0 %v7303_v41, %s6394_s22 }
 0x999   : > { %3507 = vrot.lane.b32.xlu0 %v7303_v41, %s6395_s15 }
 0x99d   : > { %3858 = vrot.lane.b32.xlu0 %v7312_v42, %s6394_s22 }
 0x9a1   : > { %4023 = vrot.lane.b32.xlu0 %v7312_v42, %s6393_s2 }
 0x9a5   : > { %4188 = vrot.lane.b32.xlu0 %v7312_v42, %s6395_s15 }
 0xa08   : > { %v2781_v12 = vpop.xlane.xlu0 %2780 }
 0xa09   : > { %v2785_v13 = vmul.f32 0.032258064, %v2781_v12 }
 0xa0b   : > { %5840 = vrsqrt.f32 %v2785_v13  ;;  %vm2789_vm10 = vcmp.eq.f32.partialorder %v2785_v13, inf  ;;  %v2792_v18 = vand.u32 2147483648, %v2785_v13  ;;  %vm2791_vm11 = vcmp.eq.f32.partialorder %v2785_v13, 0.0 }
 0xa0c   : > { %v2784_v14 = vpop.xlane.xlu0 %2783 }
 0xa0d   : > { %v2786_v15 = vmul.f32 0.032258064, %v2784_v14 }
 0xa0f   : > { %5842 = vrsqrt.f32 %v2786_v15  ;;  %vm2796_vm12 = vcmp.eq.f32.partialorder %v2786_v15, inf  ;;  %v2799_v23 = vand.u32 2147483648, %v2786_v15  ;;  %vm2798_vm13 = vcmp.eq.f32.partialorder %v2786_v15, 0.0 }
 0xa10   : > { %v3178_v59 = vpop.permute.xlu0 %3177 }
 0xa11   : > { %5483 = vmatpush3.xpose.msk.msra.mxu0 %vm1319_vm7, %v3178_v59 }
 0xa12   : > { %5492 = vmatprep.subr.mxu0 %v6389_v53 }
 0xa14   : > { %v3508_v54 = vpop.permute.xlu0 %3507 }
 0xa15   : > { %v5841_v16 = vpop.eup %5840 }
 0xa16   : > { %v2788_v17 = vmul.f32 %v5841_v16, %v2785_v13 }
 0xa18   : > { %v2790_v19 = vsel %vm2789_vm10, %v2785_v13, %v2788_v17  ;;  %v3859_v58 = vpop.permute.xlu0 %3858 }
 0xa19   : > { %v5843_v57 = vpop.eup %5842  ;;  %v2793_v20 = vsel %vm2791_vm11, %v2792_v18, %v2790_v19  ;;  %v5201_v19 = vld [vmem:[#allocation7 + $0x1] ss:$0 sm:$0xff] }
 0xa1a   : > { %v2795_v21 = vmul.f32 %v5843_v57, %v2786_v15  ;;  %v2807_v22 = vadd.f32 1e-06, %v2793_v20 }
 0xa1c   : > { %v2797_v24 = vsel %vm2796_vm12, %v2786_v15, %v2795_v21  ;;  %5844 = vrcp.f32 %v2807_v22  ;;  %v4024_v61 = vpop.permute.xlu0 %4023 }
 0xa1d   : > { %v2800_v26 = vsel %vm2798_vm13, %v2799_v23, %v2797_v24 }
 0xa1e   : > { %v2808_v27 = vadd.f32 1e-06, %v2800_v26 }
 0xa20   : > { %5846 = vrcp.f32 %v2808_v27  ;;  %v4189_v63 = vpop.permute.xlu0 %4188 }
 0xa26   : > { %v5845_v31 = vpop.eup %5844 }
 0xa27   : > { %v2810_v33 = vmul.f32 %v5845_v31, %v2805_v30 }
 0xa29   : > { %v2817_v35 = vadd.f32 %v2816_v29, %v2810_v33 }
 0xa2a   : > { %v5847_v36 = vpop.eup %5846 }
 0xa2b   : > { %5458 = vmatprep.mubr.msk.f32.mxu1 %vm1166_vm1, %v2817_v35  ;;  %v2812_v37 = vmul.f32 %v5847_v36, %v2806_v34 }
 0xa2d   : > { %v2818_v38 = vadd.f32 %v2816_v29, %v2812_v37 }
 0xa2f   : > { %5459 = vmatmul.mubr.msk.f32.vlgmr.msra.gmra.mrb[20].mxu1 %vm1166_vm1, %v2818_v38 }
 0xa30   : > { %5474 = vmatprep.mubr.msk.f32.mxu1 %vm6390_vm6, %v6389_v53  ;;  %5473 = vmatpush3.xpose.msk.msra.mxu1 %vm1319_vm7, %v7303_v41 }
 0xa31   : > { %5477 = vmatprep.subr.mxu1 %v6389_v53 }
 0xb02   : > { %v5460_v47 = vpop.f32.mrb[20].mxu1 }
 0xb03   : > { %v2902_v48 = vpop.f32.mrb[21].mxu1  ;;  %v2908_v3 = vadd.f32 %v5460_v47, %v5182_v44 }
 0xb04   : > { %v2903_v49 = vadd.f32 %v5182_v44, %v2902_v48 }
 0xb05   : > { %v2912_v2 = vmul.f32 0.35355338, %v2908_v3 }
 0xb06   : > { %v2911_v50 = vmul.f32 0.35355338, %v2903_v49 }
 0xb08   : > { %3175 = vrot.lane.b32.xlu1 %v2911_v50, %s6394_s22  ;;  %5475 = vmatmul.mubr.msk.f32.vlgmr.msra.gmra.mrb[22].mxu1 %vm1319_vm7, %v2911_v50 }
 0xb09   : > { %5479 = vmatprep.mubr.msk.f32.mxu1 %vm6390_vm6, %v6389_v53 }
 0xb0c   : > { %3340 = vrot.lane.b32.xlu1 %v2911_v50, %s6393_s2 }
 0xb10   : > { %3505 = vrot.lane.b32.xlu1 %v2911_v50, %s6395_s15 }
 0xb14   : > { %3856 = vrot.lane.b32.xlu1 %v2912_v2, %s6394_s22 }
 0xb18   : > { %4021 = vrot.lane.b32.xlu1 %v2912_v2, %s6393_s2 }
 0xb1c   : > { %4186 = vrot.lane.b32.xlu1 %v2912_v2, %s6395_s15 }
 0xb7a   : > { %v3176_v52 = vpop.permute.xlu1 %3175 }
 0xb7b   : > { %5485 = vmatmul.mubr.msk.f32.vlgmr.msra.gmra.mrb[18].mxu0 %vm1319_vm7, %v3176_v52 }
 0xb7c   : > { %5493 = vmatpush3.xpose.msk.msra.mxu0 %vm1319_vm7, %v3343_v51  ;;  %5494 = vmatprep.mubr.msk.f32.mxu0 %vm6390_vm6, %v6389_v53 }
 0xb7d   : > { %5502 = vmatprep.subr.mxu0 %v6389_v53 }
 0xb7e   : > { %v3341_v55 = vpop.permute.xlu1 %3340 }
 0xb7f   : > { %5495 = vmatmul.mubr.msk.f32.vlgmr.msra.gmra.mrb[20].mxu0 %vm1319_vm7, %v3341_v55 }
 0xb80   : > { %5503 = vmatpush3.xpose.msk.msra.mxu0 %vm1319_vm7, %v3508_v54  ;;  %5504 = vmatprep.mubr.msk.f32.mxu0 %vm6390_vm6, %v6389_v53 }
 0xb81   : > { %5512 = vmatprep.subr.mxu0 %v6389_v53 }
 0xb82   : > { %v3506_v56 = vpop.permute.xlu1 %3505 }
 0xb83   : > { %5505 = vmatmul.mubr.msk.f32.vlgmr.msra.gmra.mrb[22].mxu0 %vm1319_vm7, %v3506_v56 }
 0xb84   : > { %5513 = vmatpush3.xpose.msk.msra.mxu0 %vm1319_vm7, %v7312_v42  ;;  %5514 = vmatprep.mubr.msk.f32.mxu0 %vm6390_vm6, %v6389_v53 }
 0xb85   : > { %5522 = vmatprep.subr.mxu0 %v6389_v53 }
 0xb86   : > { %v3857_v60 = vpop.permute.xlu1 %3856 }
 0xb87   : > { %5515 = vmatmul.mubr.msk.f32.vlgmr.msra.gmra.mrb[24].mxu0 %vm1319_vm7, %v2912_v2 }
 0xb88   : > { %5523 = vmatpush3.xpose.msk.msra.mxu0 %vm1319_vm7, %v3859_v58  ;;  %5524 = vmatprep.mubr.msk.f32.mxu0 %vm6390_vm6, %v6389_v53 }
 0xb89   : > { %5532 = vmatprep.subr.mxu0 %v6389_v53 }
 0xb8a   : > { %v4022_v62 = vpop.permute.xlu1 %4021 }
 0xb8b   : > { %5525 = vmatmul.mubr.msk.f32.vlgmr.msra.gmra.mrb[26].mxu0 %vm1319_vm7, %v3857_v60 }
 0xb8c   : > { %5533 = vmatpush3.xpose.msk.msra.mxu0 %vm1319_vm7, %v4024_v61  ;;  %5534 = vmatprep.mubr.msk.f32.mxu0 %vm6390_vm6, %v6389_v53 }
 0xb8d   : > { %5542 = vmatprep.subr.mxu0 %v6389_v53 }
 0xb8e   : > { %v4187_v0 = vpop.permute.xlu1 %4186 }
 0xb8f   : > { %5535 = vmatmul.mubr.msk.f32.vlgmr.msra.gmra.mrb[28].mxu0 %vm1319_vm7, %v4022_v62 }
 0xb90   : > { %5543 = vmatpush3.xpose.msk.msra.mxu0 %vm1319_vm7, %v4189_v63  ;;  %5544 = vmatprep.mubr.msk.f32.mxu0 %vm6390_vm6, %v6389_v53 }
 0xb93   : > { %5545 = vmatmul.mubr.msk.f32.vlgmr.msra.gmra.mrb[30].mxu0 %vm1319_vm7, %v4187_v0 }
 0xbdb   : > { %v3084_v4 = vpop.f32.mrb[22].mxu1 }
 0xbdc   : > { %v3085_v5 = vadd.f32 %v5188_v1, %v3084_v4  ;;  %v5476_v6 = vpop.f32.mrb[23].mxu1 }
 0xbde   : > { %v3088_v7 = vsel %vm1319_vm7, %v3085_v5, -inf }
 0xbdf   : > { %3089 = vmax.xlane.f32.xlu0 %v3088_v7 }
 0xc4e   : > { %v3249_v8 = vpop.f32.mrb[18].mxu0 }
 0xc4f   : > { %v3250_v9 = vadd.f32 %v5188_v1, %v3249_v8  ;;  %v5486_v10 = vpop.f32.mrb[19].mxu0 }
 0xc51   : > { %v3253_v11 = vsel %vm1319_vm7, %v3250_v9, -inf }
 0xc52   : > { %3254 = vmax.xlane.f32.xlu1 %v3253_v11  ;;  %v3414_v12 = vpop.f32.mrb[20].mxu0 }
 0xc53   : > { %v3415_v13 = vadd.f32 %v5188_v1, %v3414_v12  ;;  %v5496_v14 = vpop.f32.mrb[21].mxu0 }
 0xc55   : > { %v3418_v15 = vsel %vm1319_vm7, %v3415_v13, -inf }
 0xc56   : > { %v3579_v16 = vpop.f32.mrb[22].mxu0  ;;  %3419 = vmax.xlane.f32.xlu0 %v3418_v15 }
 0xc57   : > { %v3580_v17 = vadd.f32 %v5188_v1, %v3579_v16  ;;  %v5506_v18 = vpop.f32.mrb[23].mxu0 }
 0xc59   : > { %v3583_v57 = vsel %vm1319_vm7, %v3580_v17, -inf }
 0xc5a   : > { %v3765_v20 = vpop.f32.mrb[24].mxu0  ;;  %3584 = vmax.xlane.f32.xlu0 %v3583_v57 }
 0xc5b   : > { %v3766_v21 = vadd.f32 %v5201_v19, %v3765_v20  ;;  %v5516_v22 = vpop.f32.mrb[25].mxu0 }
 0xc5d   : > { %v3769_v23 = vsel %vm1319_vm7, %v3766_v21, -inf }
 0xc5e   : > { %v3930_v24 = vpop.f32.mrb[26].mxu0  ;;  %3770 = vmax.xlane.f32.xlu0 %v3769_v23 }
 0xc5f   : > { %v7371_v25 = vadd.f32 %v5201_v19, %v3930_v24  ;;  %v5526_v26 = vpop.f32.mrb[27].mxu0 }
 0xc61   : > { %v3934_v27 = vsel %vm1319_vm7, %v7371_v25, -inf }
 0xc62   : > { %3935 = vmax.xlane.f32.xlu1 %v3934_v27  ;;  %v4095_v28 = vpop.f32.mrb[28].mxu0 }
 0xc63   : > { %v4096_v29 = vadd.f32 %v5201_v19, %v4095_v28  ;;  %v5536_v30 = vpop.f32.mrb[29].mxu0 }
 0xc65   : > { %v4099_v31 = vsel %vm1319_vm7, %v4096_v29, -inf }
 0xc66   : > { %v4260_v33 = vpop.f32.mrb[30].mxu0  ;;  %4100 = vmax.xlane.f32.xlu0 %v4099_v31 }
 0xc67   : > { %v5546_v34 = vpop.f32.mrb[31].mxu0  ;;  %v4261_v43 = vadd.f32 %v5201_v19, %v4260_v33 }
 0xc69   : > { %v4264_v39 = vsel %vm1319_vm7, %v4261_v43, -inf }
 0xc6c   : > { %v3090_v35 = vpop.xlane.xlu0 %3089 }
 0xc6d   : > { %v3091_v36 = vsub.f32 %v3085_v5, %v3090_v35 }
 0xc6f   : > { %v3092_v37 = vmul.f32 1.442695, %v3091_v36 }
 0xc71   : > { %5848 = vpow2.f32 %v3092_v37 }
 0xc73   : > { %3099 = vrot.lane.b32.xlu1 %v7303_v41, %s6392_s11 }
 0xc7b   : > { %v5849_v38 = vpop.eup %5848 }
 0xc7c   : > { %v3094_v40 = vsel %vm1319_vm7, %v5849_v38, 0.0 }
 0xc7d   : > { %3095 = vadd.xlane.f32.xlu0 %v3094_v40 }
 0xc93   : > { %3264 = vrot.lane.b32.xlu0 %v7303_v41, %s6391_s10 }
 0xc97   : > { %4265 = vmax.xlane.f32.xlu1 %v4264_v39 }
 0xca8   : > { %3429 = vrot.lane.b32.xlu1 %v7303_v41, %s6396_s24 }
 0xcac   : > { %3594 = vrot.lane.b32.xlu1 %v7303_v41, %s6397_s3 }
 0xcb0   : > { %3780 = vrot.lane.b32.xlu1 %v7312_v42, %s6392_s11 }
 0xcdf   : > { %v3255_v59 = vpop.xlane.xlu1 %3254 }
 0xce0   : > { %v3256_v44 = vsub.f32 %v3250_v9, %v3255_v59 }
 0xce2   : > { %v3257_v47 = vmul.f32 1.442695, %v3256_v44 }
 0xce3   : > { %v3420_v48 = vpop.xlane.xlu0 %3419 }
 0xce4   : > { %5850 = vpow2.f32 %v3257_v47  ;;  %v3421_v49 = vsub.f32 %v3415_v13, %v3420_v48 }
 0xce6   : > { %v3422_v50 = vmul.f32 1.442695, %v3421_v49 }
 0xce7   : > { %v3585_v3 = vpop.xlane.xlu0 %3584 }
 0xce8   : > { %5852 = vpow2.f32 %v3422_v50  ;;  %v3586_v2 = vsub.f32 %v3580_v17, %v3585_v3 }
 0xcea   : > { %v3587_v51 = vmul.f32 1.442695, %v3586_v2 }
 0xceb   : > { %v3771_v52 = vpop.xlane.xlu0 %3770 }
 0xcec   : > { %5854 = vpow2.f32 %v3587_v51  ;;  %v3772_v54 = vsub.f32 %v3766_v21, %v3771_v52 }
 0xcee   : > { %v5851_v55 = vpop.eup %5850  ;;  %v3773_v56 = vmul.f32 1.442695, %v3772_v54 }
 0xcef   : > { %v3936_v41 = vpop.xlane.xlu1 %3935  ;;  %v3259_v58 = vsel %vm1319_vm7, %v5851_v55, 0.0 }
 0xcf0   : > { %5856 = vpow2.f32 %v3773_v56  ;;  %3260 = vadd.xlane.f32.xlu1 %v3259_v58  ;;  %v3937_v13 = vsub.f32 %v7371_v25, %v3936_v41 }
 0xcf2   : > { %v5853_v60 = vpop.eup %5852  ;;  %v3938_v15 = vmul.f32 1.442695, %v3937_v13 }
 0xcf3   : > { %v3100_v61 = vpop.permute.xlu1 %3099  ;;  %v4101_v62 = vpop.xlane.xlu0 %4100  ;;  %v3424_v63 = vsel %vm1319_vm7, %v5853_v60, 0.0 }
 0xcf4   : > { %v4102_v0 = vsub.f32 %v4096_v29, %v4101_v62  ;;  %5478 = vmatpush3.msra.mxu1 %v3100_v61  ;;  %3425 = vadd.xlane.f32.xlu0 %v3424_v63  ;;  %v4366_v61 = vld [vmem:[%s7007_s20] sm:$0xff]  ;;  %v4367_v62 = vld [vmem:[%s7007_s20 + $0x8] sm:$0xff] }
 0xcf5   : > { %5487 = vmatprep.subr.mxu1 %v6389_v53  ;;  %v5625_v63 = vpack.c.bf16 %v4367_v62, %v4366_v61 }
 0xcf6   : > { %v5855_v1 = vpop.eup %5854  ;;  %v4103_v4 = vmul.f32 1.442695, %v4102_v0  ;;  %v4368_v0 = vld [vmem:[%s7007_s20 + $0x10] sm:$0xff] }
 0xcf7   : > { %v3589_v5 = vsel %vm1319_vm7, %v5855_v1, 0.0  ;;  %5626 = vmatprep.subr.bf16.mxu0 %v5625_v63 }
 0xcf8   : > { %5858 = vpow2.f32 %v4103_v4  ;;  %3590 = vadd.xlane.f32.xlu1 %v3589_v5  ;;  %5628 = vmatpush3.bf16.msra.mxu0 %v5625_v63 }
 0xcfa   : > { %v5857_v6 = vpop.eup %5856 }
 0xcfb   : > { %v3775_v7 = vsel %vm1319_vm7, %v5857_v6, 0.0 }
 0xcfc   : > { %3776 = vadd.xlane.f32.xlu0 %v3775_v7 }
 0xd02   : > { %v7393_v8 = vpop.eup %5858 }
 0xd03   : > { %v4105_v9 = vsel %vm1319_vm7, %v7393_v8, 0.0 }
 0xd04   : > { %4106 = vadd.xlane.f32.xlu0 %v4105_v9 }
 0xd09   : > { %3945 = vrot.lane.b32.xlu1 %v7312_v42, %s6391_s10 }
 0xd0a   : > { %v3096_v10 = vpop.xlane.xlu0 %3095 }
 0xd0b   : > { %5860 = vrcp.f32 %v3096_v10 }
 0xd0c   : > { %5862 = vpow2.f32 %v3938_v15 }
 0xd0e   : > { %v3265_v14 = vpop.permute.xlu0 %3264 }
 0xd15   : > { %v5861_v11 = vpop.eup %5860 }
 0xd16   : > { %v3098_v12 = vmul.f32 %v5861_v11, %v5849_v38  ;;  %v5863_v19 = vpop.eup %5862 }
 0xd17   : > { %v3940_v57 = vsel %vm1319_vm7, %v5863_v19, 0.0 }
 0xd18   : > { %5480 = vmatmul.mubr.msk.f32.vlgmr.msra.gmra.mrb[24].mxu1 %vm1319_vm7, %v3098_v12 }
 0xd19   : > { %5488 = vmatpush3.msra.mxu1 %v3265_v14  ;;  %5489 = vmatprep.mubr.msk.f32.mxu1 %vm6390_vm6, %v6389_v53 }
 0xd1a   : > { %5497 = vmatprep.subr.mxu1 %v6389_v53 }
 0xd24   : > { %v4266_v16 = vpop.xlane.xlu1 %4265 }
 0xd25   : > { %v4267_v17 = vsub.f32 %v4261_v43, %v4266_v16 }
 0xd27   : > { %v4268_v18 = vmul.f32 1.442695, %v4267_v17 }
 0xd28   : > { %v3430_v22 = vpop.permute.xlu1 %3429 }
 0xd29   : > { %5864 = vpow2.f32 %v4268_v18 }
 0xd2c   : > { %v3595_v23 = vpop.permute.xlu1 %3594 }
 0xd2d   : > { %3941 = vadd.xlane.f32.xlu1 %v3940_v57 }
 0xd30   : > { %v3781_v24 = vpop.permute.xlu1 %3780 }
 0xd33   : > { %v5865_v20 = vpop.eup %5864 }
 0xd34   : > { %v4270_v21 = vsel %vm1319_vm7, %v5865_v20, 0.0 }
 0xd35   : > { %4271 = vadd.xlane.f32.xlu0 %v4270_v21 }
 0xd3e   : > { %4275 = vrot.lane.b32.xlu1 %v7312_v42, %s6397_s3 }
 0xd4b   : > { %4110 = vrot.lane.b32.xlu0 %v7312_v42, %s6396_s24 }
 0xd7d   : > { %v3261_v25 = vpop.xlane.xlu1 %3260 }
 0xd7e   : > { %5866 = vrcp.f32 %v3261_v25 }
 0xd81   : > { %v3426_v26 = vpop.xlane.xlu0 %3425 }
 0xd82   : > { %5868 = vrcp.f32 %v3426_v26 }
 0xd85   : > { %v3591_v27 = vpop.xlane.xlu1 %3590 }
 0xd86   : > { %5870 = vrcp.f32 %v3591_v27 }
 0xd88   : > { %v5867_v28 = vpop.eup %5866 }
 0xd89   : > { %v3263_v29 = vmul.f32 %v5867_v28, %v5851_v55  ;;  %v3777_v30 = vpop.xlane.xlu0 %3776  ;;  %v3946_v37 = vpop.permute.xlu1 %3945 }
 0xd8a   : > { %5872 = vrcp.f32 %v3777_v30 }
 0xd8b   : > { %5490 = vmatmul.mubr.msk.f32.vlgmr.msra.gmra.mrb[26].mxu1 %vm1319_vm7, %v3263_v29 }
 0xd8c   : > { %v5869_v31 = vpop.eup %5868  ;;  %5498 = vmatpush3.msra.mxu1 %v3430_v22  ;;  %5499 = vmatprep.mubr.msk.f32.mxu1 %vm6390_vm6, %v6389_v53 }
 0xd8d   : > { %v3428_v42 = vmul.f32 %v5869_v31, %v5853_v60  ;;  %5507 = vmatprep.subr.mxu1 %v6389_v53 }
 0xd8f   : > { %5500 = vmatmul.mubr.msk.f32.vlgmr.msra.gmra.mrb[28].mxu1 %vm1319_vm7, %v3428_v42 }
 0xd90   : > { %v5871_v33 = vpop.eup %5870  ;;  %5508 = vmatpush3.msra.mxu1 %v3595_v23  ;;  %5509 = vmatprep.mubr.msk.f32.mxu1 %vm6390_vm6, %v6389_v53 }
 0xd91   : > { %v3593_v34 = vmul.f32 %v5871_v33, %v5855_v1  ;;  %5517 = vmatprep.subr.mxu1 %v6389_v53  ;;  %v4107_v38 = vpop.xlane.xlu0 %4106  ;;  %v4369_v1 = vld [vmem:[%s7007_s20 + $0x18] sm:$0xff]  ;;  %s7696_s20 = scalar_lea.vmem [#allocation17], %s6986_s4 }
 0xd92   : > { %v5629_v4 = vpack.c.bf16 %v4369_v1, %v4368_v0  ;;  %v5216_v23 = vld [vmem:[%s7696_s20] ss:$0 sm:$0xff] }
 0xd93   : > { %5510 = vmatmul.mubr.msk.f32.vlgmr.msra.gmra.mrb[30].mxu1 %vm1319_vm7, %v3593_v34 }
 0xd94   : > { %v5873_v35 = vpop.eup %5872  ;;  %5518 = vmatpush3.msra.mxu1 %v3781_v24  ;;  %5519 = vmatprep.mubr.msk.f32.mxu1 %vm6390_vm6, %v6389_v53 }
 0xd95   : > { %v3779_v36 = vmul.f32 %v5873_v35, %v5857_v6  ;;  %5527 = vmatprep.subr.mxu1 %v6389_v53  ;;  %5630 = vmatprep.subr.bf16.mxu0 %v5629_v4 }
 0xd96   : > { %5632 = vmatpush3.bf16.msra.mxu0 %v5629_v4 }
 0xd97   : > { %5520 = vmatmul.mubr.msk.f32.vlgmr.msra.gmra.mrb[32].mxu1 %vm1319_vm7, %v3779_v36 }
 0xd98   : > { %5528 = vmatpush3.msra.mxu1 %v3946_v37  ;;  %5529 = vmatprep.mubr.msk.f32.mxu1 %vm6390_vm6, %v6389_v53 }
 0xd99   : > { %5537 = vmatprep.subr.mxu1 %v6389_v53 }
 0xdba   : > { %v3942_v40 = vpop.xlane.xlu1 %3941 }
 0xdbb   : > { %5874 = vrcp.f32 %v3942_v40  ;;  %v4514_v40 = vld [vmem:[%s7014_s13] sm:$0xff] }
 0xdbc   : > { %5876 = vrcp.f32 %v4107_v38 }
 0xdbe   : > { %v4276_v49 = vpop.permute.xlu1 %4275 }
 0xdc2   : > { %v4272_v43 = vpop.xlane.xlu0 %4271 }
 0xdc3   : > { %5878 = vrcp.f32 %v4272_v43  ;;  %v4515_v43 = vld [vmem:[%s7014_s13 + $0x8] sm:$0xff] }
 0xdc5   : > { %v5875_v39 = vpop.eup %5874 }
 0xdc6   : > { %v3944_v59 = vmul.f32 %v5875_v39, %v5863_v19  ;;  %v4111_v44 = vpop.permute.xlu0 %4110  ;;  %v5877_v47 = vpop.eup %5876  ;;  %v4516_v39 = vld [vmem:[%s7014_s13 + $0x10] sm:$0xff] }
 0xdc7   : > { %v4109_v48 = vmul.f32 %v5877_v47, %v7393_v8 }
 0xdc8   : > { %5530 = vmatmul.mubr.msk.f32.vlgmr.msra.gmra.mrb[34].mxu1 %vm1319_vm7, %v3944_v59  ;;  %v5633_v59 = vpack.c.bf16 %v4515_v43, %v4514_v40 }
 0xdc9   : > { %5538 = vmatpush3.msra.mxu1 %v4111_v44  ;;  %5539 = vmatprep.mubr.msk.f32.mxu1 %vm6390_vm6, %v6389_v53  ;;  %v4517_v44 = vld [vmem:[%s7014_s13 + $0x18] sm:$0xff]  ;;  %s7697_s13 = scalar_lea.vmem [#allocation20], %s6986_s4 }
 0xdca   : > { %5547 = vmatprep.subr.mxu1 %v6389_v53  ;;  %v5637_v47 = vpack.c.bf16 %v4517_v44, %v4516_v39 }
 0xdcc   : > { %5540 = vmatmul.mubr.msk.f32.vlgmr.msra.gmra.mrb[36].mxu1 %vm1319_vm7, %v4109_v48  ;;  %v4608_v48 = vld [vmem:[%s7041_s6] sm:$0xff] }
 0xdcd   : > { %v5879_v50 = vpop.eup %5878  ;;  %5548 = vmatpush3.msra.mxu1 %v4276_v49  ;;  %5549 = vmatprep.mubr.msk.f32.mxu1 %vm6390_vm6, %v6389_v53  ;;  %v4609_v49 = vld [vmem:[%s7041_s6 + $0x8] sm:$0xff] }
 0xdce   : > { %v4274_v3 = vmul.f32 %v5879_v50, %v5865_v20  ;;  %5634 = vmatprep.subr.bf16.mxu1 %v5633_v59  ;;  %v4610_v50 = vld [vmem:[%s7041_s6 + $0x10] sm:$0xff] }
 0xdd0   : > { %5550 = vmatmul.mubr.msk.f32.vlgmr.msra.gmra.mrb[38].mxu1 %vm1319_vm7, %v4274_v3  ;;  %v5641_v3 = vpack.c.bf16 %v4609_v49, %v4608_v48 }
 0xdd1   : > { %5636 = vmatpush3.bf16.msra.mxu1 %v5633_v59 }
 0xdd2   : > { %5638 = vmatprep.subr.bf16.mxu1 %v5637_v47  ;;  %5642 = vmatprep.subr.bf16.mxu0 %v5641_v3 }
 0xdd5   : > { %5640 = vmatpush3.bf16.msra.mxu1 %v5637_v47 }
 0xdeb   : > { %v3171_v2 = vpop.f32.mrb[24].mxu1 }
 0xdec   : > { %v5481_v51 = vpop.f32.mrb[25].mxu1 }
 0xe5e   : > { %v3336_v52 = vpop.f32.mrb[26].mxu1 }
 0xe5f   : > { %3671 = vrot.lane.b32.xlu0 %v3336_v52, %s6402_s30  ;;  %v5491_v54 = vpop.f32.mrb[27].mxu1  ;;  %v4612_v52 = vld [vmem:[%s7041_s6 + $0x20] sm:$0xff] }
 0xe60   : > { %v4613_v54 = vld [vmem:[%s7041_s6 + $0x28] sm:$0xff] }
 0xe62   : > { %v3501_v55 = vpop.f32.mrb[28].mxu1 }
 0xe63   : > { %3675 = vrot.lane.b32.xlu1 %v3501_v55, %s6403_s8  ;;  %v5501_v56 = vpop.f32.mrb[29].mxu1  ;;  %v5649_v55 = vpack.c.bf16 %v4613_v54, %v4612_v52 }
 0xe66   : > { %v3666_v41 = vpop.f32.mrb[30].mxu1 }
 0xe67   : > { %3679 = vrot.lane.b32.xlu1 %v3666_v41, %s6404_s21  ;;  %v5511_v53 = vpop.f32.mrb[31].mxu1 }
 0xe6a   : > { %v3852_v58 = vpop.f32.mrb[32].mxu1 }
 0xe6b   : > { %v5521_v60 = vpop.f32.mrb[33].mxu1 }
 0xe9b   : > { %v4017_v5 = vpop.f32.mrb[34].mxu1 }
 0xe9c   : > { %4352 = vrot.lane.b32.xlu0 %v4017_v5, %s6402_s30  ;;  %v5531_v6 = vpop.f32.mrb[35].mxu1 }
 0xe9f   : > { %v4182_v7 = vpop.f32.mrb[36].mxu1 }
 0xea0   : > { %4356 = vrot.lane.b32.xlu0 %v4182_v7, %s6403_s8  ;;  %v5541_v8 = vpop.f32.mrb[37].mxu1 }
 0xea1   : > { %v4498_v8 = vsub.s32 2, %v7078_v32 }
 0xea3   : > { %v4347_v9 = vpop.f32.mrb[38].mxu1 }
 0xea4   : > { %4360 = vrot.lane.b32.xlu1 %v4347_v9, %s6404_s21  ;;  %v5551_v10 = vpop.f32.mrb[39].mxu1 }
 0xed1   : > { %v3672_v11 = vpop.permute.xlu0 %3671 }
 0xed2   : > { %v3682_v13 = vsel %vm1319_vm7, %v3171_v2, %v3672_v11  ;;  %v4611_v2 = vld [vmem:[%s7041_s6 + $0x18] sm:$0xff]  ;;  %v5888_v11 = vld [vmem:[%s7046_s18] sm:$0x7] }
 0xed3   : > { %v5645_v51 = vpack.c.bf16 %v4611_v2, %v4610_v50 }
 0xed5   : > { %v3676_v12 = vpop.permute.xlu1 %3675 }
 0xed6   : > { %v3683_v14 = vsel %vm1990_vm8, %v3682_v13, %v3676_v12  ;;  %v4499_v12 = vrot.slane %v5888_v11, %v4498_v8 }
 0xed9   : > { %v3680_v15 = vpop.permute.xlu1 %3679 }
 0xeda   : > { %v3684_v16 = vsel %vm1992_vm9, %v3683_v14, %v3680_v15  ;;  %v5889_v14 = vld [vmem:[%s7051_s9] sm:$0x7] }
 0xedb   : > { %5560 = vmatprep.mubr.msk.f32.mxu0 %vm1166_vm1, %v3684_v16  ;;  %v4511_v15 = vrot.slane %v5889_v14, %v4498_v8 }
 0xf0e   : > { %v4353_v17 = vpop.permute.xlu0 %4352 }
 0xf0f   : > { %v4363_v19 = vsel %vm1319_vm7, %v3852_v58, %v4353_v17 }
 0xf12   : > { %v4357_v18 = vpop.permute.xlu0 %4356 }
 0xf13   : > { %v4364_v57 = vsel %vm1990_vm8, %v4363_v19, %v4357_v18 }
 0xf16   : > { %v4361_v20 = vpop.permute.xlu1 %4360 }
 0xf17   : > { %v4365_v21 = vsel %vm1992_vm9, %v4364_v57, %v4361_v20 }
 0xf18   : > { %5561 = vmatmul.mubr.msk.f32.vlgmr.msra.gmra.mrb[32].mxu0 %vm1166_vm1, %v4365_v21  ;;  %v4614_v21 = vld [vmem:[%s7041_s6 + $0x30] sm:$0xff] }
 0xf19   : > { %5644 = vmatpush3.bf16.msra.mxu0 %v5641_v3 }
 0xf1a   : > { %5646 = vmatprep.subr.bf16.mxu0 %v5645_v51 }
 0xf1d   : > { %5648 = vmatpush3.bf16.msra.mxu0 %v5645_v51 }
 0xf1e   : > { %5650 = vmatprep.subr.bf16.mxu0 %v5649_v55 }
 0xf21   : > { %5652 = vmatpush3.bf16.msra.mxu0 %v5649_v55 }
 0xfeb   : > { %v5562_v22 = vpop.f32.mrb[32].mxu0 }
 0xfec   : > { %v4452_v24 = vadd.f32 %v5562_v22, %v7263_v45  ;;  %v4442_v25 = vpop.f32.mrb[33].mxu0  ;;  %v4615_v22 = vld [vmem:[%s7041_s6 + $0x38] sm:$0xff]  ;;  %s7698_s6 = sld [smem:[#allocation34_spill]] }
 0xfed   : > { %v4451_v26 = vadd.f32 %v4442_v25, %v7265_v46 }
 0xfee   : > { %v7457_v27 = vadd.f32 %v5216_v23, %v4452_v24  ;;  %v5217_v24 = vld [vmem:[%s7697_s13] ss:$0 sm:$0xff] }
 0xfef   : > { %v7459_v28 = vadd.f32 %v5216_v23, %v4451_v26  ;;  %v5653_v23 = vpack.c.bf16 %v4615_v22, %v4614_v21 }
 0xff0   : > { %v4465_v29 = vsel %vm1166_vm1, %v7457_v27, 0.0 }
 0xff1   : > { %4466 = vadd.xlane.f32.xlu1 %v4465_v29  ;;  %v4462_v30 = vsel %vm1166_vm1, %v7459_v28, 0.0  ;;  %5654 = vmatprep.subr.bf16.mxu0 %v5653_v23 }
 0xff2   : > { %4463 = vadd.xlane.f32.xlu0 %v4462_v30  ;;  %5656 = vmatpush3.bf16.msra.mxu0 %v5653_v23  ;;  %p5223_p8 = scmp.ge.s32.totalorder %s7698_s6, 1 }
0x107e   : > { %v4467_v31 = vpop.xlane.xlu1 %4466 }
0x107f   : > { %v4469_v45 = vmul.f32 0.03125, %v4467_v31  ;;  %v4464_v42 = vpop.xlane.xlu0 %4463 }
0x1080   : > { %v4468_v46 = vmul.f32 0.03125, %v4464_v42 }
0x1081   : > { %v7466_v33 = vsub.f32 %v7457_v27, %v4469_v45 }
0x1082   : > { %v4470_v34 = vsub.f32 %v7459_v28, %v4468_v46  ;;  %v5222_v46 = vld [vmem:[%s1001_s12] ss:$0 sm:$0xff] }
0x1083   : > { %v4473_v37 = vmul.f32 %v7466_v33, %v7466_v33  ;;  %v4501_v18 = vmul.f32 %v4499_v12, %v7466_v33 }
0x1084   : > { %v4472_v35 = vmul.f32 %v4470_v34, %v4470_v34  ;;  %v4500_v13 = vmul.f32 %v4499_v12, %v4470_v34 }
0x1085   : > { %v4477_v38 = vsel %vm1166_vm1, %v4473_v37, 0.0 }
0x1086   : > { %v4474_v36 = vsel %vm1166_vm1, %v4472_v35, 0.0 }
0x1087   : > { %4475 = vadd.xlane.f32.xlu0 %v4474_v36 }
0x108b   : > { %4478 = vadd.xlane.f32.xlu0 %v4477_v38 }
0x1114   : > { %v4476_v56 = vpop.xlane.xlu0 %4475 }
0x1115   : > { %v4480_v41 = vmul.f32 0.032258064, %v4476_v56 }
0x1117   : > { %5880 = vrsqrt.f32 %v4480_v41  ;;  %vm4484_vm14 = vcmp.eq.f32.partialorder %v4480_v41, inf  ;;  %v4487_v62 = vand.u32 2147483648, %v4480_v41  ;;  %vm4486_vm15 = vcmp.eq.f32.partialorder %v4480_v41, 0.0 }
0x1118   : > { %v4479_v53 = vpop.xlane.xlu0 %4478 }
0x1119   : > { %v4481_v58 = vmul.f32 0.032258064, %v4479_v53 }
0x111b   : > { %5882 = vrsqrt.f32 %v4481_v58  ;;  %vm4491_vm0 = vcmp.eq.f32.partialorder %v4481_v58, inf  ;;  %v4494_v6 = vand.u32 2147483648, %v4481_v58  ;;  %vm4493_vm2 = vcmp.eq.f32.partialorder %v4481_v58, 0.0 }
0x1121   : > { %v5881_v60 = vpop.eup %5880 }
0x1122   : > { %v4483_v61 = vmul.f32 %v5881_v60, %v4480_v41 }
0x1124   : > { %v4485_v63 = vsel %vm4484_vm14, %v4480_v41, %v4483_v61 }
0x1125   : > { %v5883_v0 = vpop.eup %5882  ;;  %v4488_v1 = vsel %vm4486_vm15, %v4487_v62, %v4485_v63 }
0x1126   : > { %v4490_v4 = vmul.f32 %v5883_v0, %v4481_v58  ;;  %v4502_v5 = vadd.f32 1e-06, %v4488_v1 }
0x1128   : > { %v4492_v7 = vsel %vm4491_vm0, %v4481_v58, %v4490_v4  ;;  %5884 = vrcp.f32 %v4502_v5 }
0x1129   : > { %v4495_v9 = vsel %vm4493_vm2, %v4494_v6, %v4492_v7 }
0x112a   : > { %v4503_v10 = vadd.f32 1e-06, %v4495_v9 }
0x112c   : > { %5886 = vrcp.f32 %v4503_v10 }
0x1132   : > { %v5885_v16 = vpop.eup %5884 }
0x1133   : > { %v4505_v17 = vmul.f32 %v5885_v16, %v4500_v13 }
0x1135   : > { %v4512_v19 = vadd.f32 %v4511_v15, %v4505_v17 }
0x1136   : > { %v5887_v57 = vpop.eup %5886 }
0x1137   : > { %v4507_v20 = vmul.f32 %v5887_v57, %v4501_v18  ;;  %5571 = vmatprep.mubr.msk.f32.mxu1 %vm1166_vm1, %v4512_v19 }
0x1139   : > { %v4513_v32 = vadd.f32 %v4511_v15, %v4507_v20 }
0x113b   : > { %5572 = vmatmul.mubr.msk.f32.vlgmr.msra.gmra.mrb[40].mxu1 %vm1166_vm1, %v4513_v32 }
0x120e   : > { %v5573_v25 = vpop.f32.mrb[40].mxu1 }
0x120f   : > { %v4603_v26 = vadd.f32 %v5573_v25, %v5217_v24  ;;  %v4597_v29 = vpop.f32.mrb[41].mxu1 }
0x1210   : > { %v4598_v30 = vadd.f32 %v5217_v24, %v4597_v29 }
0x1211   : > { %v4607_v45 = vmax.f32 %v4603_v26, 0.0 }
0x1212   : > { %v4606_v31 = vmax.f32 %v4598_v30, 0.0 }
0x1214   : > { %5590 = vmatprep.mubr.msk.f32.mxu0 %vm4616_vm3, %v4606_v31 }
0x1215   : > { %5591 = vmatmul.mubr.msk.f32.vlgmr.msra.gmra.mrb[34].mxu0 %vm4616_vm3, %v4607_v45 }
0x12e6   : > { %4712 = sbr.rel (%p5223_p8) target bundleno = 4847 (0x12ef), region = 168 }
0x12e8   : > { %v5592_v42 = vpop.f32.mrb[34].mxu0 }
0x12e9   : > { %v4699_v33 = vadd.f32 %v5592_v42, %v7457_v27  ;;  %v4689_v34 = vpop.f32.mrb[35].mxu0 }
0x12ea   : > { %v4698_v35 = vadd.f32 %v4689_v34, %v7459_v28 }
0x12eb   : > { %v4708_v36 = vadd.f32 %v5222_v46, %v4699_v33 }
0x12ec   : > { %v4707_v37 = vadd.f32 %v5222_v46, %v4698_v35 }
0x12ed   : > { %4714 = vst.msk [vmem:[#allocation23 + $0x8] sm:$0xff] %vm1166_vm1, %v4708_v36 }
0x12ee   : > { %4713 = vst.msk [vmem:[#allocation23] sm:$0xff] %vm1166_vm1, %v4707_v37 }
0x12ef PF: > { %s7699_s18 = sld [smem:[#allocation34_spill]] }
0x12f5   : > { %p5224_p12 = scmp.ne.s32.totalorder %s7699_s18, 1 }
0x12f6   : > { %v4721_v38 = vsel (!%p5224_p12), %vm1166_vm1, %v4707_v37, 0.0  ;;  %v4724_v27 = vsel (!%p5224_p12), %vm1166_vm1, %v4708_v36, 0.0  ;;  %s7700_s9 = sld [smem:[#allocation56_spill]] (!%p5224_p12)  ;;  %s7701_s7 = sld [smem:[#allocation57_spill]] (!%p5224_p12) }
0x12f7   : > { %4718 = sbr.rel (%p5224_p12) target bundleno = 5185 (0x1441), region = 172  ;;  %4722 = vadd.xlane.f32.xlu0 (!%p5224_p12), %v4721_v38 }
0x12fb   : > { %4725 = vadd.xlane.f32.xlu0 (!%p5224_p12), %v4724_v27 }
0x12fc   : > { %v5225_v4 = vld [vmem:[%s7700_s9] ss:$0 sm:$0xff] (!%p5224_p12) }
0x12fd   : > { %v5226_v7 = vld [vmem:[%s7701_s7] ss:$0 sm:$0xff] (!%p5224_p12) }
0x1384   : > { %v4723_v28 = vpop.xlane.xlu0 %4722 }
0x1385   : > { %v4727_v40 = vmul.f32 0.03125, %v4723_v28 }
0x1387   : > { %v4729_v43 = vsub.f32 %v4707_v37, %v4727_v40 }
0x1388   : > { %v4726_v39 = vpop.xlane.xlu0 %4725 }
0x1389   : > { %v4728_v59 = vmul.f32 0.03125, %v4726_v39  ;;  %v4731_v44 = vmul.f32 %v4729_v43, %v4729_v43  ;;  %v4761_v5 = vmul.f32 %v5225_v4, %v4729_v43 }
0x138b   : > { %v4730_v47 = vsub.f32 %v4708_v36, %v4728_v59  ;;  %v4733_v48 = vsel %vm1166_vm1, %v4731_v44, 0.0 }
0x138c   : > { %4734 = vadd.xlane.f32.xlu1 %v4733_v48 }
0x138d   : > { %v4732_v49 = vmul.f32 %v4730_v47, %v4730_v47  ;;  %v4762_v9 = vmul.f32 %v5225_v4, %v4730_v47 }
0x138f   : > { %v4736_v50 = vsel %vm1166_vm1, %v4732_v49, 0.0 }
0x1390   : > { %4737 = vadd.xlane.f32.xlu1 %v4736_v50 }
0x1419   : > { %v4735_v3 = vpop.xlane.xlu1 %4734 }
0x141a   : > { %v4739_v2 = vmul.f32 0.032258064, %v4735_v3 }
0x141c   : > { %5890 = vrsqrt.f32 %v4739_v2  ;;  %vm4743_vm4 = vcmp.eq.f32.partialorder %v4739_v2, inf  ;;  %v4746_v56 = vand.u32 2147483648, %v4739_v2  ;;  %vm4745_vm5 = vcmp.eq.f32.partialorder %v4739_v2, 0.0 }
0x141d   : > { %v4738_v51 = vpop.xlane.xlu1 %4737 }
0x141e   : > { %v4740_v52 = vmul.f32 0.032258064, %v4738_v51 }
0x1420   : > { %5892 = vrsqrt.f32 %v4740_v52  ;;  %vm4750_vm6 = vcmp.eq.f32.partialorder %v4740_v52, inf  ;;  %v4753_v62 = vand.u32 2147483648, %v4740_v52  ;;  %vm4752_vm7 = vcmp.eq.f32.partialorder %v4740_v52, 0.0 }
0x1426   : > { %v5891_v54 = vpop.eup %5890 }
0x1427   : > { %v4742_v55 = vmul.f32 %v5891_v54, %v4739_v2 }
0x1429   : > { %v4744_v41 = vsel %vm4743_vm4, %v4739_v2, %v4742_v55 }
0x142a   : > { %v5893_v53 = vpop.eup %5892  ;;  %v4747_v58 = vsel %vm4745_vm5, %v4746_v56, %v4744_v41 }
0x142b   : > { %v4763_v60 = vadd.f32 1e-06, %v4747_v58  ;;  %v4749_v61 = vmul.f32 %v5893_v53, %v4740_v52 }
0x142d   : > { %5894 = vrcp.f32 %v4763_v60  ;;  %v4751_v63 = vsel %vm4750_vm6, %v4740_v52, %v4749_v61 }
0x142e   : > { %v4754_v0 = vsel %vm4752_vm7, %v4753_v62, %v4751_v63 }
0x142f   : > { %v4764_v1 = vadd.f32 1e-06, %v4754_v0 }
0x1431   : > { %5896 = vrcp.f32 %v4764_v1 }
0x1437   : > { %v5895_v6 = vpop.eup %5894 }
0x1438   : > { %v4766_v8 = vmul.f32 %v5895_v6, %v4761_v5 }
0x143a   : > { %v4775_v10 = vadd.f32 %v5226_v7, %v4766_v8 }
0x143b   : > { %v5897_v11 = vpop.eup %5896 }
0x143c   : > { %4777 = vst.msk [vmem:[#allocation23] sm:$0xff] %vm1166_vm1, %v4775_v10  ;;  %v4768_v12 = vmul.f32 %v5897_v11, %v4762_v9 }
0x143e   : > { %v4776_v13 = vadd.f32 %v5226_v7, %v4768_v12 }
0x1440   : > { %4778 = vst.msk [vmem:[#allocation23 + $0x8] sm:$0xff] %vm1166_vm1, %v4776_v13 }
0x1441 PF: > { %s7702_s10 = sld [smem:[#allocation34_spill]]  ;;  %s6405_s11 = smov [#allocation23]  }
0x1442   : > { %s4785_s2 = sshll.u32 %s6405_s11, 4  ;;  %s4786_s2 = int_to_ptr.vmem [resolvable:$true] %s4785_s2 }
0x1443   : > { %s6282_s22 = scalar_lea.vmem %s4786_s2, 256  ;;  %p6289_p6 = scmp.lt.s32.totalorder %s4786_s2, %s4786_s2 }
0x1444   : > { %p6283_p0 = scmp.ne.s32.totalorder %s4786_s2, %s6282_s22  ;;  %p6290_p3 = scmp.lt.s32.totalorder %s6282_s22, %s6282_s22 }
0x1446   : > { %p6291_p1 = por %p6290_p3, %p6289_p6 }
0x1447   : > { %p5741_p4 = scmp.eq.s32.totalorder %s7702_s10, 1 }
0x1449   : > { %p6284_p7 = pnand %p6283_p0, %p5741_p4 }
0x144b   : > { %p6285_p11 = pneg %p6284_p7 }
0x144d   : > { %p6292_p5 = pnand %p6291_p1, %p6285_p11 }
0x144f   : > { %6295 = shalt.err (!%p6292_p5)
}
0x1450   : > { %s7703_s3 = sld [smem:[#allocation58_spill]] }
0x1456   : > { %s7704_s23 = smov %s7703_s3  ;;  %s6296_s1 = scalar_lea.hbm %s7703_s3, 256 }
0x1457   : > { %p6297_p10 = scmp.ne.s32.totalorder %s7704_s23, %s6296_s1  ;;  %p6302_p9 = scmp.lt.u32.totalorder %s6296_s1, %s7704_s23 }
0x1459   : > { %p6298_p2 = pnand %p6297_p10, %p5741_p4 }
0x145b   : > { %p6299_p13 = pneg %p6298_p2 }
0x145d   : > { %p6304_p8 = pnand %p6302_p9, %p6299_p13 }
0x145f   : > { %6307 = shalt.err (!%p6304_p8)
}
0x1460   : > { %s6406_s5 = smov 128  }
0x1461   : > { %5690 = dma.vmem_to_hbm [thread:$0]  (%p5741_p4), %s4786_s2, 256, %s7704_s23, [#allocation4], %s6406_s5, %s6406_s5, %s6402_s30  }
0x1462   : > { %6353 = dma.done.wait (%p5741_p4), [#allocation4], 256  }
0x1463   : > { %6355 = vsyncadd (%p5741_p4), [#allocation4], 4294967040 }
0x1464 PF: > { %s7705_s30 = sld [smem:[#allocation35_spill]]  ;;  %s7706_s3 = sld [smem:[#allocation32_spill]] }
0x1465   : > { %s7707_s28 = sld [smem:[#allocation33_spill]]  ;;  %s7708_s29 = sld [smem:[#allocation36_spill]] }
0x146a   : > { %p47_p12 = scmp.ge.s32.totalorder %s7705_s30, 4  }
0x146c   :  { %49 = sbr.rel (!%p47_p12) target bundleno = 36 (0x24), region = 297 }
0x1473   :  { %4801 = vsyncpa [#allocation3], 1 }
0x1474   :  { %4803 = vsyncpa [#allocation3 + $0x1], 1 }
0x1475   :  { %4804 = vsyncpa [#allocation6], 1 }
0x1476   :  { %4805 = vsyncpa [#allocation9], 1 }
0x1477   :  { %4807 = vsyncpa [#allocation9 + $0x1], 1 }
0x1478   :  { %4808 = vsyncpa [#allocation12], 1 }
0x1479   :  { %4810 = vsyncpa [#allocation12 + $0x1], 1 }
0x147a   :  { %4811 = vsyncpa [#allocation15], 1 }
0x147b   :  { %4813 = vsyncpa [#allocation15 + $0x1], 1 }
0x147c   :  { %4814 = vsyncpa [#allocation18], 1 }
0x147d   :  { %4816 = vsyncpa [#allocation18 + $0x1], 1 }
0x147e   :  { %4817 = vsyncpa [#allocation21], 1 }
0x147f   :  { %4819 = vsyncpa [#allocation21 + $0x1], 1 }
0x1480   :  { %4820 = vsyncpa [#allocation4], 1 }
0x1481   :  { %4822 = vsyncpa [#allocation4 + $0x1], 1 }

</bundles_post_ra>
